<compile_context>
chip_gen: v5e
topology: v5e:2x2
jax: 0.10.0
libtpu: 0.0.40
codegen_flags: <defaults>
</compile_context>

<pallas_src>
import jax
import jax.numpy as jnp
from jax.experimental import pallas as pl
from jax.experimental.pallas import tpu as pltpu

EPS = 1e-5


def _mlp_kernel(x_ref, w1_ref, b1_ref, w2_ref, b2_ref, o_ref):
    # ---- BatchNorm1d (training mode: batch stats, biased variance) --------
    # gamma/beta are already folded into w1/b1; only the batch-dependent
    # normalization stays in-kernel.
    x = x_ref[...].astype(jnp.float32)                       # (B, D)
    mean = jnp.mean(x, axis=0, keepdims=True)                # (1, D)
    xc = x - mean                                            # reused below
    var = jnp.mean(xc * xc, axis=0, keepdims=True)           # (1, D) biased
    xn = xc * jax.lax.rsqrt(var + EPS)                       # (B, D)

    # ---- fc1 + ReLU: bf16 MXU matmul, f32 accumulate ------------------------
    h = jnp.dot(xn.astype(jnp.bfloat16), w1_ref[...],
                preferred_element_type=jnp.float32)          # (B, FC1) f32
    h = jnp.maximum(h + b1_ref[...], 0.0)

    # ---- output layer (out_dim == 1) on the MXU -----------------------------
    # (1, FC1) @ (B, FC1)^T -> (1, B): trans_b matmul, lane-dense result row.
    logits = jax.lax.dot_general(
        w2_ref[...], h.astype(jnp.bfloat16),
        dimension_numbers=(((1,), (1,)), ((), ())),
        preferred_element_type=jnp.float32)                  # (1, B)

    # b2 is a scalar read from SMEM.
    o_ref[...] = jax.nn.sigmoid(logits + b2_ref[0, 0])       # (1, B)


def cat_predict_forward(x, gamma, beta, w1, b1, w2, b2):
    """Full forward pass in a single Pallas kernel (everything fits VMEM).

    x:      (B, D)      f32
    gamma:  (1, D)      BN scale     (folded into w1 here)
    beta:   (1, D)      BN shift     (folded into b1 here)
    w1:     (D, FC1)    fc1 weight, stored (in, out)
    b1:     (1, FC1)
    w2:     (FC1, 1)    output weight, stored (in, out)
    b2:     (1, 1)
    """
    B, D = x.shape
    FC1 = w1.shape[1]
    out_dim = w2.shape[1]
    assert out_dim == 1, "kernel specializes the output layer for out_dim == 1"

    # Fold BatchNorm affine (constants) into fc1 — exact rewrite.
    w1_folded = (gamma.reshape(-1, 1) * w1).astype(jnp.bfloat16)   # (D, FC1)
    b1_folded = (beta @ w1 + b1).astype(jnp.float32)               # (1, FC1)
    w2_row = w2.reshape(1, FC1).astype(jnp.bfloat16)               # (1, FC1)
    b2_s = b2.reshape(1, 1).astype(jnp.float32)                    # (1, 1) SMEM

    bytes_accessed = (x.size * 4 + w1_folded.size * 2 + b1_folded.size * 4 +
                      w2_row.size * 2 + b2_s.size * 4 + B * out_dim * 4)
    cost = pl.CostEstimate(
        flops=2 * B * D * FC1 + 2 * B * FC1 + 4 * B * D,
        transcendentals=2 * B + D,             # sigmoid (exp + recip) + rsqrt
        bytes_accessed=bytes_accessed)

    vmem = pl.BlockSpec(memory_space=pltpu.MemorySpace.VMEM)
    smem = pl.BlockSpec(memory_space=pltpu.MemorySpace.SMEM)

    out_row = pl.pallas_call(
        _mlp_kernel,
        out_shape=jax.ShapeDtypeStruct((1, B), jnp.float32),   # lane-dense
        in_specs=[vmem, vmem, vmem, vmem, smem],
        out_specs=vmem,
        cost_estimate=cost,
    )(x, w1_folded, b1_folded, w2_row, b2_s)

    # Kernel emits a lane-dense (1, B) row; present (B, 1) outside the kernel.
    return out_row.reshape(B, out_dim)


def reference_forward(x, gamma, beta, w1, b1, w2, b2):
    mean = jnp.mean(x, axis=0, keepdims=True)
    var = jnp.mean((x - mean) ** 2, axis=0, keepdims=True)
    xn = (x - mean) / jnp.sqrt(var + EPS) * gamma + beta
    h = jnp.maximum(xn @ w1 + b1, 0.0)
    return jax.nn.sigmoid(h @ w2 + b2)


if __name__ == "__main__":
    # TPU-friendly shapes consistent with the module (sizes are configurable
    # in __init__); B=256 fills MXU rows and makes the (1, B) output lane-dense.
    B = 256           # batch
    INPUT_SIZE = 512  # input_size
    FC1_SIZE = 256    # fc1_size
    OUT_SIZE = 1      # output_size

    key = jax.random.PRNGKey(0)
    kx, kg, kb, kw1, kb1, kw2, kb2 = jax.random.split(key, 7)

    x = jax.random.normal(kx, (B, INPUT_SIZE), dtype=jnp.float32)

    # Deterministic parameter init (shapes as in the nn.Module __init__).
    gamma = 1.0 + 0.01 * jax.random.normal(kg, (1, INPUT_SIZE), jnp.float32)
    beta = 0.01 * jax.random.normal(kb, (1, INPUT_SIZE), jnp.float32)
    # Linear weights stored as (in, out) = W.T relative to PyTorch's (out, in).
    w1 = jax.random.normal(kw1, (INPUT_SIZE, FC1_SIZE), jnp.float32) * (
        1.0 / jnp.sqrt(INPUT_SIZE))
    b1 = 0.01 * jax.random.normal(kb1, (1, FC1_SIZE), jnp.float32)
    w2 = jax.random.normal(kw2, (FC1_SIZE, OUT_SIZE), jnp.float32) * (
        1.0 / jnp.sqrt(FC1_SIZE))
    b2 = 0.01 * jax.random.normal(kb2, (1, OUT_SIZE), jnp.float32)

    out = cat_predict_forward(x, gamma, beta, w1, b1, w2, b2)
    out = jax.block_until_ready(out)

    ref = reference_forward(x, gamma, beta, w1, b1, w2, b2)
    assert out.shape == (B, OUT_SIZE), out.shape
    assert bool(jnp.all(jnp.isfinite(out))), "non-finite output"
    # Both matmuls run in bf16 on the MXU (f32 accumulate) -> loosened
    # tolerance vs the pure-f32 reference.
    assert jnp.allclose(out, ref, atol=1e-2, rtol=0.0), (
        "mismatch vs reference: max abs diff = "
        f"{float(jnp.max(jnp.abs(out - ref)))}")

    print("KERNEL_OK")
</pallas_src>

<mosaic_0001>
module attributes {stable_mosaic.version = 11 : i64} {
  func.func @_mlp_kernel(%arg0: memref<256x512xf32, #tpu.memory_space<vmem>>, %arg1: memref<512x256xbf16, #tpu.memory_space<vmem>>, %arg2: memref<1x256xf32, #tpu.memory_space<vmem>>, %arg3: memref<1x256xbf16, #tpu.memory_space<vmem>>, %arg4: memref<1x1xf32, #tpu.memory_space<smem>>, %arg5: memref<1x256xf32, #tpu.memory_space<vmem>>) attributes {dimension_semantics = [], scalar_prefetch = 0 : i64, scratch_operands = 0 : i64, tpu.core_type = #tpu.core_type<tc>} {
    %c0 = arith.constant 0 : index
    %c0_0 = arith.constant 0 : index
    %0 = vector.load %arg0[%c0, %c0_0] : memref<256x512xf32, #tpu.memory_space<vmem>>, vector<256x512xf32>
    %cst = arith.constant dense<0.000000e+00> : vector<512xf32>
    %1 = vector.multi_reduction <add>, %0, %cst [0] : vector<256x512xf32> to vector<512xf32>
    %2 = vector.shape_cast %1 : vector<512xf32> to vector<1x512xf32>
    %cst_1 = arith.constant 2.560000e+02 : f32
    %3 = vector.broadcast %cst_1 : f32 to vector<1x512xf32>
    %4 = arith.divf %2, %3 : vector<1x512xf32>
    %5 = vector.broadcast %4 : vector<1x512xf32> to vector<256x512xf32>
    %6 = arith.subf %0, %5 : vector<256x512xf32>
    %7 = arith.mulf %6, %6 : vector<256x512xf32>
    %cst_2 = arith.constant dense<0.000000e+00> : vector<512xf32>
    %8 = vector.multi_reduction <add>, %7, %cst_2 [0] : vector<256x512xf32> to vector<512xf32>
    %9 = vector.shape_cast %8 : vector<512xf32> to vector<1x512xf32>
    %cst_3 = arith.constant 2.560000e+02 : f32
    %10 = vector.broadcast %cst_3 : f32 to vector<1x512xf32>
    %11 = arith.divf %9, %10 : vector<1x512xf32>
    %cst_4 = arith.constant 9.99999974E-6 : f32
    %12 = vector.broadcast %cst_4 : f32 to vector<1x512xf32>
    %13 = arith.addf %11, %12 : vector<1x512xf32>
    %14 = math.rsqrt %13 : vector<1x512xf32>
    %15 = vector.broadcast %14 : vector<1x512xf32> to vector<256x512xf32>
    %16 = arith.mulf %6, %15 : vector<256x512xf32>
    %17 = arith.truncf %16 : vector<256x512xf32> to vector<256x512xbf16>
    %c0_5 = arith.constant 0 : index
    %c0_6 = arith.constant 0 : index
    %18 = vector.load %arg1[%c0_5, %c0_6] : memref<512x256xbf16, #tpu.memory_space<vmem>>, vector<512x256xbf16>
    %cst_7 = arith.constant dense<0.000000e+00> : vector<256x256xf32>
    %19 = tpu.matmul %17, %18, %cst_7 {dimension_numbers = #tpu.dot_dimension_numbers<[1], [0], [0], [1], [0, 0, 1, 1], [], []>} : vector<256x512xbf16>, vector<512x256xbf16>, vector<256x256xf32> -> vector<256x256xf32>
    %c0_8 = arith.constant 0 : index
    %c0_9 = arith.constant 0 : index
    %20 = vector.load %arg2[%c0_8, %c0_9] : memref<1x256xf32, #tpu.memory_space<vmem>>, vector<1x256xf32>
    %21 = vector.broadcast %20 : vector<1x256xf32> to vector<256x256xf32>
    %22 = arith.addf %19, %21 : vector<256x256xf32>
    %cst_10 = arith.constant 0.000000e+00 : f32
    %23 = vector.broadcast %cst_10 : f32 to vector<256x256xf32>
    %24 = arith.maximumf %22, %23 : vector<256x256xf32>
    %c0_11 = arith.constant 0 : index
    %c0_12 = arith.constant 0 : index
    %25 = vector.load %arg3[%c0_11, %c0_12] : memref<1x256xbf16, #tpu.memory_space<vmem>>, vector<1x256xbf16>
    %26 = arith.truncf %24 : vector<256x256xf32> to vector<256x256xbf16>
    %cst_13 = arith.constant dense<0.000000e+00> : vector<1x256xf32>
    %27 = tpu.matmul %25, %26, %cst_13 {dimension_numbers = #tpu.dot_dimension_numbers<[1], [1], [0], [0], [0, 0, 1, 0], [], []>} : vector<1x256xbf16>, vector<256x256xbf16>, vector<1x256xf32> -> vector<1x256xf32>
    %c0_14 = arith.constant 0 : index
    %c0_15 = arith.constant 0 : index
    %28 = memref.load %arg4[%c0_14, %c0_15] : memref<1x1xf32, #tpu.memory_space<smem>>
    %29 = vector.broadcast %28 : f32 to vector<1x256xf32>
    %30 = arith.addf %27, %29 : vector<1x256xf32>
    %31 = arith.negf %30 : vector<1x256xf32>
    %32 = math.exp %31 : vector<1x256xf32>
    %cst_16 = arith.constant 1.000000e+00 : f32
    %33 = vector.broadcast %cst_16 : f32 to vector<1x256xf32>
    %34 = arith.addf %33, %32 : vector<1x256xf32>
    %35 = arith.divf %33, %34 : vector<1x256xf32>
    %c0_17 = arith.constant 0 : index
    %c0_18 = arith.constant 0 : index
    %36 = vector.load %arg5[%c0_17, %c0_18] : memref<1x256xf32, #tpu.memory_space<vmem>>, vector<1x256xf32>
    tpu.vector_store %arg5[%c0_17, %c0_18], %35 {strides = array<i32>} : memref<1x256xf32, #tpu.memory_space<vmem>>, vector<1x256xf32>,
    return
  }
}

</mosaic_0001>

<bundles_post_ra>
// kernel: tpu_custom_call.1
= control target key start
LH: loop header
LB: loop body
LE: loop exit
PB: predicated region body
PF: predicated region fallthrough
CT: control target
= control target key end

     0   :  { %11 = vsyncpa [#allocation4], 0  ;;  %s4811_s0 = inlined_call_operand.hbm [shape: f32[256,512], index: 0, kind: input, shape index: {}]   ;;  %s4812_s1 = inlined_call_operand.hbm [shape: bf16[512,256], index: 1, kind: input, shape index: {}]   ;;  %s4813_s2 = inlined_call_operand.vmem [shape: f32[1,256], index: 2, kind: input, shape index: {}]   ;;  %s4814_s3 = inlined_call_operand.vmem [shape: bf16[1,256], index: 3, kind: input, shape index: {}]   ;;  %s4815_s4 = inlined_call_operand.<no memory space> [shape: f32[1,1], index: 4, kind: input, shape index: {}]   ;;  %s4816_s5 = inlined_call_operand.hbm [shape: f32[1,256], index: 5, kind: output, shape index: {}]  }
   0x1   :  { %12 = vsyncpa [#allocation7], 0 }
   0x2   :  { %13 = vsyncpa [#allocation5], 0  ;;  %s18_s20 = sshll.u32 %s4811_s0, 4  ;;  %s2738_s21 = smov [#allocation3]   ;;  %s19_s20 = int_to_ptr.hbm [resolvable:$true] %s18_s20 }
   0x3   :  { %s20_s22 = sshll.u32 %s2738_s21, 4  ;;  %s31_s25 = sshll.u32 %s4812_s1, 4  ;;  %s21_s22 = int_to_ptr.vmem [resolvable:$true] %s20_s22  ;;  %s32_s25 = int_to_ptr.hbm [resolvable:$true] %s31_s25 }
   0x4   :  { %s2739_s26 = smov 512   ;;  %s2740_s27 = smov 32  }
   0x5   :  { %26 = dma.hbm_to_vmem [thread:$0]  %s19_s20, 16384, %s21_s22, [#allocation4], %s2739_s26, %s2739_s26, %s2740_s27  }
   0x6   :  { %s2741_s28 = smov [#allocation6]   ;;  %s2742_s30 = smov 128  }
   0x7   :  { %s33_s29 = sshll.u32 %s2741_s28, 4  ;;  %s2743_s6 = smov 8   ;;  %s34_s29 = int_to_ptr.vmem [resolvable:$true] %s33_s29 }
   0x8   :  { %39 = dma.hbm_to_vmem [thread:$0]  %s32_s25, 8192, %s34_s29, [#allocation7], %s2742_s30, %s2742_s30, %s2743_s6  }
   0x9   :  { %2732 = dma.done.wait [#allocation4], 16384  }
   0xa   :  { %2733 = vsyncadd [#allocation4], 4294950912 }
   0xb   :  { %2734 = dma.done.wait [#allocation7], 8192  }
   0xc   :  { %2735 = vsyncadd [#allocation7], 4294959104  ;;  %v2369_v0 = vld [vmem:[#allocation6 + $0x70] sm:$0xf]  ;;  %v2584_v1 = vld [vmem:[#allocation6 + $0x74] sm:$0xf0] }
   0xd   :  { %v2433_v2 = vld [vmem:[#allocation6 + $0xf0] sm:$0xf]  ;;  %v2370_v3 = vor.u32 %v2584_v1, %v2369_v0  ;;  %v2600_v4 = vld [vmem:[#allocation6 + $0xf4] sm:$0xf0]  ;;  %v2361_v11 = vld [vmem:[#allocation6 + $0x60] sm:$0xf] }
   0xe   :  { %v2497_v5 = vld [vmem:[#allocation6 + $0x170] sm:$0xf]  ;;  %v2616_v6 = vld [vmem:[#allocation6 + $0x174] sm:$0xf0]  ;;  %v2434_v7 = vor.u32 %v2600_v4, %v2433_v2  ;;  %v2582_v13 = vld [vmem:[#allocation6 + $0x64] sm:$0xf0] }
   0xf   :  { %v2498_v8 = vor.u32 %v2616_v6, %v2497_v5  ;;  %v2561_v9 = vld [vmem:[#allocation6 + $0x1f0] sm:$0xf]  ;;  %v2632_v10 = vld [vmem:[#allocation6 + $0x1f4] sm:$0xf0]  ;;  %1375 = vmatpush.bf16.msra.mxu0 %v2370_v3  ;;  %v2425_v14 = vld [vmem:[#allocation6 + $0xe0] sm:$0xf]  ;;  %v2362_v16 = vor.u32 %v2582_v13, %v2361_v11 }
  0x10   :  { %v2562_v12 = vor.u32 %v2632_v10, %v2561_v9  ;;  %v2598_v15 = vld [vmem:[#allocation6 + $0xe4] sm:$0xf0]  ;;  %1464 = vmatpush.bf16.msra.mxu1 %v2434_v7  ;;  %v2489_v18 = vld [vmem:[#allocation6 + $0x160] sm:$0xf]  ;;  %v2353_v23 = vld [vmem:[#allocation6 + $0x50] sm:$0xf] }
  0x11   :  { %1553 = vmatpush.bf16.msra.mxu2 %v2498_v8  ;;  %v2426_v17 = vor.u32 %v2598_v15, %v2425_v14  ;;  %v2614_v19 = vld [vmem:[#allocation6 + $0x164] sm:$0xf0]  ;;  %v2553_v20 = vld [vmem:[#allocation6 + $0x1e0] sm:$0xf]  ;;  %v2580_v24 = vld [vmem:[#allocation6 + $0x54] sm:$0xf0] }
  0x12   :  { %1642 = vmatpush.bf16.msra.mxu3 %v2562_v12  ;;  %v2490_v21 = vor.u32 %v2614_v19, %v2489_v18  ;;  %v2630_v22 = vld [vmem:[#allocation6 + $0x1e4] sm:$0xf0]  ;;  %v2417_v26 = vld [vmem:[#allocation6 + $0xd0] sm:$0xf]  ;;  %v2596_v27 = vld [vmem:[#allocation6 + $0xd4] sm:$0xf0]  ;;  %v2354_v29 = vor.u32 %v2580_v24, %v2353_v23 }
  0x13   :  { %v2554_v25 = vor.u32 %v2630_v22, %v2553_v20  ;;  %v2481_v28 = vld [vmem:[#allocation6 + $0x150] sm:$0xf]  ;;  %1376 = vmatpush.bf16.msra.mxu0 %v2362_v16  ;;  %v2612_v30 = vld [vmem:[#allocation6 + $0x154] sm:$0xf0]  ;;  %v2418_v33 = vor.u32 %v2596_v27, %v2417_v26  ;;  %v2345_v35 = vld [vmem:[#allocation6 + $0x40] sm:$0xf] }
  0x14   :  { %v2545_v31 = vld [vmem:[#allocation6 + $0x1d0] sm:$0xf]  ;;  %v2628_v32 = vld [vmem:[#allocation6 + $0x1d4] sm:$0xf0]  ;;  %1465 = vmatpush.bf16.msra.mxu1 %v2426_v17  ;;  %v2482_v34 = vor.u32 %v2612_v30, %v2481_v28  ;;  %v2578_v36 = vld [vmem:[#allocation6 + $0x44] sm:$0xf0] }
  0x15   :  { %1554 = vmatpush.bf16.msra.mxu2 %v2490_v21  ;;  %v2409_v37 = vld [vmem:[#allocation6 + $0xc0] sm:$0xf]  ;;  %v2546_v38 = vor.u32 %v2628_v32, %v2545_v31  ;;  %v2594_v39 = vld [vmem:[#allocation6 + $0xc4] sm:$0xf0]  ;;  %v2346_v44 = vor.u32 %v2578_v36, %v2345_v35  ;;  %v2337_v47 = vld [vmem:[#allocation6 + $0x30] sm:$0xf] }
  0x16   :  { %1643 = vmatpush.bf16.msra.mxu3 %v2554_v25  ;;  %v2473_v40 = vld [vmem:[#allocation6 + $0x140] sm:$0xf]  ;;  %v2610_v41 = vld [vmem:[#allocation6 + $0x144] sm:$0xf0]  ;;  %v2410_v45 = vor.u32 %v2594_v39, %v2409_v37  ;;  %v2576_v48 = vld [vmem:[#allocation6 + $0x34] sm:$0xf0] }
  0x17   :  { %v2537_v42 = vld [vmem:[#allocation6 + $0x1c0] sm:$0xf]  ;;  %v2626_v43 = vld [vmem:[#allocation6 + $0x1c4] sm:$0xf0]  ;;  %1377 = vmatpush.bf16.msra.mxu0 %v2354_v29  ;;  %v2474_v46 = vor.u32 %v2610_v41, %v2473_v40  ;;  %v2401_v49 = vld [vmem:[#allocation6 + $0xb0] sm:$0xf]  ;;  %v2338_v56 = vor.u32 %v2576_v48, %v2337_v47 }
  0x18   :  { %1466 = vmatpush.bf16.msra.mxu1 %v2418_v33  ;;  %v2538_v50 = vor.u32 %v2626_v43, %v2537_v42  ;;  %v2592_v51 = vld [vmem:[#allocation6 + $0xb4] sm:$0xf0]  ;;  %v2465_v52 = vld [vmem:[#allocation6 + $0x130] sm:$0xf]  ;;  %v2329_v59 = vld [vmem:[#allocation6 + $0x20] sm:$0xf] }
  0x19   :  { %1555 = vmatpush.bf16.msra.mxu2 %v2482_v34  ;;  %v2608_v53 = vld [vmem:[#allocation6 + $0x134] sm:$0xf0]  ;;  %v2529_v54 = vld [vmem:[#allocation6 + $0x1b0] sm:$0xf]  ;;  %v2402_v57 = vor.u32 %v2592_v51, %v2401_v49  ;;  %v2574_v60 = vld [vmem:[#allocation6 + $0x24] sm:$0xf0] }
  0x1a   :  { %1644 = vmatpush.bf16.msra.mxu3 %v2546_v38  ;;  %v2624_v55 = vld [vmem:[#allocation6 + $0x1b4] sm:$0xf0]  ;;  %v2466_v58 = vor.u32 %v2608_v53, %v2465_v52  ;;  %v2393_v61 = vld [vmem:[#allocation6 + $0xa0] sm:$0xf]  ;;  %v2590_v63 = vld [vmem:[#allocation6 + $0xa4] sm:$0xf0]  ;;  %v2330_v4 = vor.u32 %v2574_v60, %v2329_v59 }
  0x1b   :  { %1378 = vmatpush.bf16.msra.mxu0 %v2346_v44  ;;  %v2530_v62 = vor.u32 %v2624_v55, %v2529_v54  ;;  %v2457_v0 = vld [vmem:[#allocation6 + $0x120] sm:$0xf]  ;;  %v2606_v1 = vld [vmem:[#allocation6 + $0x124] sm:$0xf0]  ;;  %v2321_v5 = vld [vmem:[#allocation6 + $0x10] sm:$0xf]  ;;  %v2394_v7 = vor.u32 %v2590_v63, %v2393_v61 }
  0x1c   :  { %1467 = vmatpush.bf16.msra.mxu1 %v2410_v45  ;;  %v2521_v2 = vld [vmem:[#allocation6 + $0x1a0] sm:$0xf]  ;;  %v2622_v3 = vld [vmem:[#allocation6 + $0x1a4] sm:$0xf0]  ;;  %v2572_v6 = vld [vmem:[#allocation6 + $0x14] sm:$0xf0]  ;;  %v2458_v8 = vor.u32 %v2606_v1, %v2457_v0 }
  0x1d   :  { %1556 = vmatpush.bf16.msra.mxu2 %v2474_v46  ;;  %v2385_v9 = vld [vmem:[#allocation6 + $0x90] sm:$0xf]  ;;  %v2588_v10 = vld [vmem:[#allocation6 + $0x94] sm:$0xf0]  ;;  %v2522_v12 = vor.u32 %v2622_v3, %v2521_v2  ;;  %v2782_v14 = vld [vmem:[#allocation3] sm:$0xff]  ;;  %v2322_v20 = vor.u32 %v2572_v6, %v2321_v5  ;;  %s2300_s14 = sshll.u32 %s4816_s5, 4  ;;  %s2301_s14 = int_to_ptr.hbm [resolvable:$true] %s2300_s14 }
  0x1e   :  { %1645 = vmatpush.bf16.msra.mxu3 %v2538_v50  ;;  %v2449_v11 = vld [vmem:[#allocation6 + $0x110] sm:$0xf]  ;;  %v2604_v13 = vld [vmem:[#allocation6 + $0x114] sm:$0xf0]  ;;  %v2784_v15 = vld [vmem:[#allocation3 + $0x20] sm:$0xff]  ;;  %v2386_v23 = vor.u32 %v2588_v10, %v2385_v9 }
  0x1f   :  { %1379 = vmatpush.bf16.msra.mxu0 %v2338_v56  ;;  %v2513_v16 = vld [vmem:[#allocation6 + $0x190] sm:$0xf]  ;;  %v2620_v17 = vld [vmem:[#allocation6 + $0x194] sm:$0xf0]  ;;  %v2786_v18 = vld [vmem:[#allocation3 + $0x40] sm:$0xff]  ;;  %v182_v19 = vadd.f32 %v2784_v15, %v2782_v14  ;;  %v2450_v24 = vor.u32 %v2604_v13, %v2449_v11 }
  0x20   :  { %1468 = vmatpush.bf16.msra.mxu1 %v2402_v57  ;;  %v2313_v21 = vld [vmem:[#allocation6] sm:$0xf]  ;;  %v2570_v25 = vld [vmem:[#allocation6 + $0x4] sm:$0xf0]  ;;  %v2514_v29 = vor.u32 %v2620_v17, %v2513_v16  ;;  %v2830_v61 = vld [vmem:[#allocation3 + $0x10] sm:$0xff] }
  0x21   :  { %1557 = vmatpush.bf16.msra.mxu2 %v2466_v58  ;;  %v2790_v22 = vld [vmem:[#allocation3 + $0x60] sm:$0xff]  ;;  %v2586_v27 = vld [vmem:[#allocation6 + $0x84] sm:$0xf0]  ;;  %v183_v28 = vadd.f32 %v182_v19, %v2786_v18  ;;  %v2314_v36 = vor.u32 %v2570_v25, %v2313_v21  ;;  %5016 = vst [vmem:[#allocation12_spill] sm:$0xff] %v2830_v61  ;;  %v2835_v0 = vld [vmem:[#allocation3 + $0x30] sm:$0xff] }
  0x22   :  { %1646 = vmatpush.bf16.msra.mxu3 %v2530_v62  ;;  %v2377_v26 = vld [vmem:[#allocation6 + $0x80] sm:$0xf]  ;;  %v2602_v31 = vld [vmem:[#allocation6 + $0x104] sm:$0xf0]  ;;  %5017 = vst [vmem:[#allocation13_spill] sm:$0xff] %v2835_v0  ;;  %v2837_v1 = vld [vmem:[#allocation3 + $0x50] sm:$0xff] }
  0x23   :  { %1380 = vmatpush.bf16.msra.mxu0 %v2330_v4  ;;  %v2441_v30 = vld [vmem:[#allocation6 + $0x100] sm:$0xf]  ;;  %v2618_v34 = vld [vmem:[#allocation6 + $0x184] sm:$0xf0]  ;;  %v184_v35 = vadd.f32 %v183_v28, %v2790_v22  ;;  %v2378_v38 = vor.u32 %v2586_v27, %v2377_v26  ;;  %5018 = vst [vmem:[#allocation14_spill] sm:$0xff] %v2837_v1  ;;  %v256_v4 = vadd.f32 %v2835_v0, %v2830_v61  ;;  %v2856_v13 = vld [vmem:[#allocation3 + $0x90] sm:$0xff] }
  0x24   :  { %1469 = vmatpush.bf16.msra.mxu1 %v2394_v7  ;;  %v2793_v32 = vld [vmem:[#allocation3 + $0x80] sm:$0xff]  ;;  %v2442_v39 = vor.u32 %v2602_v31, %v2441_v30  ;;  %v2805_v46 = vld [vmem:[#allocation3 + $0x8] sm:$0xff]  ;;  %v2847_v7 = vld [vmem:[#allocation3 + $0x70] sm:$0xff]  ;;  %5020 = vst [vmem:[#allocation16_spill] sm:$0xff] %v2856_v13 }
  0x25   :  { %1558 = vmatpush.bf16.msra.mxu2 %v2458_v8  ;;  %v2505_v33 = vld [vmem:[#allocation6 + $0x180] sm:$0xf]  ;;  %v185_v40 = vadd.f32 %v184_v35, %v2793_v32  ;;  %v2807_v47 = vld [vmem:[#allocation3 + $0x28] sm:$0xff]  ;;  %5019 = vst [vmem:[#allocation15_spill] sm:$0xff] %v2847_v7  ;;  %v257_v10 = vadd.f32 %v256_v4, %v2837_v1 }
  0x26   :  { %1647 = vmatpush.bf16.msra.mxu3 %v2522_v12  ;;  %v2796_v37 = vld [vmem:[#allocation3 + $0xa0] sm:$0xff]  ;;  %v2506_v41 = vor.u32 %v2618_v34, %v2505_v33  ;;  %v2809_v48 = vld [vmem:[#allocation3 + $0x48] sm:$0xff]  ;;  %v219_v50 = vadd.f32 %v2807_v47, %v2805_v46 }
  0x27   :  { %1381 = vmatpush.bf16.msra.mxu0 %v2322_v20  ;;  %v2799_v42 = vld [vmem:[#allocation3 + $0xc0] sm:$0xff]  ;;  %v186_v43 = vadd.f32 %v185_v40, %v2796_v37  ;;  %v2816_v52 = vld [vmem:[#allocation3 + $0x68] sm:$0xff]  ;;  %v258_v19 = vadd.f32 %v257_v10, %v2847_v7 }
  0x28   :  { %1470 = vmatpush.bf16.msra.mxu1 %v2386_v23  ;;  %v2802_v44 = vld [vmem:[#allocation3 + $0xe0] sm:$0xff]  ;;  %v220_v54 = vadd.f32 %v219_v50, %v2809_v48  ;;  %v2822_v56 = vld [vmem:[#allocation3 + $0x88] sm:$0xff]  ;;  %v2865_v23 = vld [vmem:[#allocation3 + $0xb0] sm:$0xff] }
  0x29   :  { %1559 = vmatpush.bf16.msra.mxu2 %v2450_v24  ;;  %v187_v45 = vadd.f32 %v186_v43, %v2799_v42  ;;  %v2811_v49 = vld [vmem:[#allocation3 + $0x100] sm:$0xff]  ;;  %v2828_v60 = vld [vmem:[#allocation3 + $0xa8] sm:$0xff]  ;;  %5021 = vst [vmem:[#allocation17_spill] sm:$0xff] %v2865_v23  ;;  %v259_v26 = vadd.f32 %v258_v19, %v2856_v13 }
  0x2a   :  { %1648 = vmatpush.bf16.msra.mxu3 %v2514_v29  ;;  %v2818_v53 = vld [vmem:[#allocation3 + $0x120] sm:$0xff]  ;;  %v221_v58 = vadd.f32 %v220_v54, %v2816_v52  ;;  %v2840_v3 = vld [vmem:[#allocation3 + $0xc8] sm:$0xff]  ;;  %v2874_v29 = vld [vmem:[#allocation3 + $0xd0] sm:$0xff] }
  0x2b   :  { %1382 = vmatpush.bf16.msra.mxu0 %v2314_v36  ;;  %v188_v51 = vadd.f32 %v187_v45, %v2802_v44  ;;  %v2824_v57 = vld [vmem:[#allocation3 + $0x140] sm:$0xff]  ;;  %v2850_v9 = vld [vmem:[#allocation3 + $0xe8] sm:$0xff]  ;;  %5022 = vst [vmem:[#allocation18_spill] sm:$0xff] %v2874_v29  ;;  %v260_v33 = vadd.f32 %v259_v26, %v2865_v23  ;;  %v2883_v36 = vld [vmem:[#allocation3 + $0xf0] sm:$0xff] }
  0x2c   :  { %1471 = vmatpush.bf16.msra.mxu1 %v2378_v38  ;;  %v2832_v62 = vld [vmem:[#allocation3 + $0x160] sm:$0xff]  ;;  %v222_v63 = vadd.f32 %v221_v58, %v2822_v56  ;;  %v2859_v17 = vld [vmem:[#allocation3 + $0x108] sm:$0xff]  ;;  %5023 = vst [vmem:[#allocation19_spill] sm:$0xff] %v2883_v36  ;;  %v2892_v45 = vld [vmem:[#allocation3 + $0x110] sm:$0xff] }
  0x2d   :  { %1560 = vmatpush.bf16.msra.mxu2 %v2442_v39  ;;  %v189_v55 = vadd.f32 %v188_v51, %v2811_v49  ;;  %v2844_v5 = vld [vmem:[#allocation3 + $0x180] sm:$0xff]  ;;  %v2868_v25 = vld [vmem:[#allocation3 + $0x128] sm:$0xff]  ;;  %v261_v40 = vadd.f32 %v260_v33, %v2874_v29  ;;  %5024 = vst [vmem:[#allocation20_spill] sm:$0xff] %v2892_v45  ;;  %v2900_v58 = vld [vmem:[#allocation3 + $0x38] sm:$0xff] }
  0x2e   :  { %1649 = vmatpush.bf16.msra.mxu3 %v2506_v41  ;;  %v223_v6 = vadd.f32 %v222_v63, %v2828_v60  ;;  %v2853_v11 = vld [vmem:[#allocation3 + $0x1a0] sm:$0xff]  ;;  %v2877_v31 = vld [vmem:[#allocation3 + $0x148] sm:$0xff]  ;;  %5026 = vst [vmem:[#allocation22_spill] sm:$0xff] %v2900_v58  ;;  %v2925_v33 = vld [vmem:[#allocation3 + $0x78] sm:$0xff] }
  0x2f   :  { %v190_v59 = vadd.f32 %v189_v55, %v2818_v53  ;;  %v2862_v20 = vld [vmem:[#allocation3 + $0x1c0] sm:$0xff]  ;;  %v2886_v39 = vld [vmem:[#allocation3 + $0x168] sm:$0xff]  ;;  %v262_v54 = vadd.f32 %v261_v40, %v2883_v36  ;;  %v2898_v55 = vld [vmem:[#allocation3 + $0x18] sm:$0xff]  ;;  %5032 = vst [vmem:[#allocation28_spill] sm:$0xff] %v2925_v33 }
  0x30   :  { %v224_v12 = vadd.f32 %v223_v6, %v2840_v3  ;;  %v2871_v27 = vld [vmem:[#allocation3 + $0x1e0] sm:$0xff]  ;;  %v2895_v51 = vld [vmem:[#allocation3 + $0x188] sm:$0xff]  ;;  %5025 = vst [vmem:[#allocation21_spill] sm:$0xff] %v2898_v55  ;;  %v293_v4 = vadd.f32 %v2900_v58, %v2898_v55  ;;  %v2930_v40 = vld [vmem:[#allocation3 + $0x170] sm:$0xff] }
  0x31   :  { %v191_v2 = vadd.f32 %v190_v59, %v2824_v57  ;;  %v2880_v34 = vld [vmem:[#allocation3 + $0x200] sm:$0xff]  ;;  %v263_v10 = vadd.f32 %v262_v54, %v2892_v45  ;;  %5033 = vst [vmem:[#allocation29_spill] sm:$0xff] %v2930_v40  ;;  %v2934_v54 = vld [vmem:[#allocation3 + $0x1e8] sm:$0xff] }
  0x32   :  { %v225_v21 = vadd.f32 %v224_v12, %v2850_v9  ;;  %v2889_v41 = vld [vmem:[#allocation3 + $0x220] sm:$0xff]  ;;  %v2913_v12 = vld [vmem:[#allocation3 + $0x58] sm:$0xff]  ;;  %5034 = vst [vmem:[#allocation30_spill] sm:$0xff] %v2934_v54  ;;  %v2946_v55 = vld [vmem:[#allocation3 + $0x208] sm:$0xff] }
  0x33   :  { %v192_v8 = vadd.f32 %v191_v2, %v2832_v62  ;;  %v2902_v59 = vld [vmem:[#allocation3 + $0x240] sm:$0xff]  ;;  %v2905_v2 = vld [vmem:[#allocation3 + $0x130] sm:$0xff]  ;;  %5029 = vst [vmem:[#allocation25_spill] sm:$0xff] %v2913_v12  ;;  %v2958_v45 = vld [vmem:[#allocation3 + $0x228] sm:$0xff] }
  0x34   :  { %v226_v28 = vadd.f32 %v225_v21, %v2859_v17  ;;  %5027 = vst [vmem:[#allocation23_spill] sm:$0xff] %v2905_v2  ;;  %v2918_v21 = vld [vmem:[#allocation3 + $0x150] sm:$0xff]  ;;  %v2970_v29 = vld [vmem:[#allocation3 + $0x248] sm:$0xff]  ;;  %v3032_v61 = vld [vmem:[#allocation3 + $0x3a0] sm:$0xff] }
  0x35   :  { %v193_v16 = vadd.f32 %v192_v8, %v2844_v5  ;;  %v2910_v8 = vld [vmem:[#allocation3 + $0x1a8] sm:$0xff]  ;;  %5030 = vst [vmem:[#allocation26_spill] sm:$0xff] %v2918_v21 }
  0x36   :  { %v227_v35 = vadd.f32 %v226_v28, %v2868_v25  ;;  %5028 = vst [vmem:[#allocation24_spill] sm:$0xff] %v2910_v8  ;;  %v2922_v28 = vld [vmem:[#allocation3 + $0x1c8] sm:$0xff] }
  0x37   :  { %v194_v24 = vadd.f32 %v193_v16, %v2853_v11  ;;  %v2915_v16 = vld [vmem:[#allocation3 + $0x260] sm:$0xff]  ;;  %5031 = vst [vmem:[#allocation27_spill] sm:$0xff] %v2922_v28  ;;  %v2982_v13 = vld [vmem:[#allocation3 + $0x268] sm:$0xff] }
  0x38   :  { %v228_v43 = vadd.f32 %v227_v35, %v2877_v31  ;;  %v2927_v35 = vld [vmem:[#allocation3 + $0x280] sm:$0xff]  ;;  %5037 = vst [vmem:[#allocation33_spill] sm:$0xff] %v2946_v55  ;;  %v3006_v1 = vld [vmem:[#allocation3 + $0x2a8] sm:$0xff] }
  0x39   :  { %v195_v30 = vadd.f32 %v194_v24, %v2862_v20  ;;  %v294_v24 = vadd.f32 %v293_v4, %v2913_v12  ;;  %v2937_v4 = vld [vmem:[#allocation3 + $0x98] sm:$0xff]  ;;  %v2942_v12 = vld [vmem:[#allocation3 + $0x190] sm:$0xff]  ;;  %5040 = vst [vmem:[#allocation36_spill] sm:$0xff] %v2958_v45  ;;  %v3025_v0 = vld [vmem:[#allocation3 + $0x2e8] sm:$0xff] }
  0x3a   :  { %v229_v63 = vadd.f32 %v228_v43, %v2886_v39  ;;  %5035 = vst [vmem:[#allocation31_spill] sm:$0xff] %v2937_v4 }
  0x3b   :  { %v196_v38 = vadd.f32 %v195_v30, %v2871_v27  ;;  %v264_v30 = vadd.f32 %v263_v10, %v2905_v2  ;;  %v295_v43 = vadd.f32 %v294_v24, %v2925_v33  ;;  %5036 = vst [vmem:[#allocation32_spill] sm:$0xff] %v2942_v12  ;;  %v2951_v33 = vld [vmem:[#allocation3 + $0x2c0] sm:$0xff] }
  0x3c   :  { %v230_v19 = vadd.f32 %v229_v63, %v2895_v51  ;;  %5043 = vst [vmem:[#allocation39_spill] sm:$0xff] %v2970_v29 }
  0x3d   :  { %v197_v50 = vadd.f32 %v196_v38, %v2880_v34  ;;  %v265_v63 = vadd.f32 %v264_v30, %v2918_v21  ;;  %v2954_v21 = vld [vmem:[#allocation3 + $0x1b0] sm:$0xff]  ;;  %5046 = vst [vmem:[#allocation42_spill] sm:$0xff] %v2982_v13 }
  0x3e   :  { %v231_v38 = vadd.f32 %v230_v19, %v2910_v8  ;;  %v296_v19 = vadd.f32 %v295_v43, %v2937_v4  ;;  %5039 = vst [vmem:[#allocation35_spill] sm:$0xff] %v2954_v21  ;;  %v2963_v4 = vld [vmem:[#allocation3 + $0x2e0] sm:$0xff] }
  0x3f   :  { %v198_v6 = vadd.f32 %v197_v50, %v2889_v41  ;;  %v266_v24 = vadd.f32 %v265_v63, %v2930_v40  ;;  %v2966_v40 = vld [vmem:[#allocation3 + $0x1d0] sm:$0xff]  ;;  %5052 = vst [vmem:[#allocation48_spill] sm:$0xff] %v3006_v1 }
  0x40   :  { %v232_v10 = vadd.f32 %v231_v38, %v2922_v28  ;;  %5042 = vst [vmem:[#allocation38_spill] sm:$0xff] %v2966_v40 }
  0x41   :  { %v199_v26 = vadd.f32 %v198_v6, %v2902_v59  ;;  %v2939_v6 = vld [vmem:[#allocation3 + $0x2a0] sm:$0xff]  ;;  %v267_v43 = vadd.f32 %v266_v24, %v2942_v12  ;;  %v2978_v12 = vld [vmem:[#allocation3 + $0x1f0] sm:$0xff]  ;;  %5056 = vst [vmem:[#allocation52_spill] sm:$0xff] %v3025_v0 }
  0x42   :  { %v233_v30 = vadd.f32 %v232_v10, %v2934_v54  ;;  %5045 = vst [vmem:[#allocation41_spill] sm:$0xff] %v2978_v12  ;;  %v3048_v54 = vld [vmem:[#allocation3 + $0x198] sm:$0xff] }
  0x43   :  { %v200_v50 = vadd.f32 %v199_v26, %v2915_v16  ;;  %v2949_v26 = vld [vmem:[#allocation3 + $0xb8] sm:$0xff]  ;;  %5059 = vst [vmem:[#allocation55_spill] sm:$0xff] %v3032_v61 }
  0x44   :  { %5038 = vst [vmem:[#allocation34_spill] sm:$0xff] %v2949_v26  ;;  %v297_v38 = vadd.f32 %v296_v19, %v2949_v26  ;;  %v234_v63 = vadd.f32 %v233_v30, %v2946_v55  ;;  %v2973_v19 = vld [vmem:[#allocation3 + $0xf8] sm:$0xff]  ;;  %v2975_v26 = vld [vmem:[#allocation3 + $0x300] sm:$0xff]  ;;  %v2744_v55 = vmov 256.0  }
  0x45   :  { %v201_v58 = vadd.f32 %v200_v50, %v2927_v35  ;;  %v2961_v50 = vld [vmem:[#allocation3 + $0xd8] sm:$0xff]  ;;  %5044 = vst [vmem:[#allocation40_spill] sm:$0xff] %v2973_v19  ;;  %2641 = vrcp.f32 %v2744_v55 }
  0x46   :  { %5041 = vst [vmem:[#allocation37_spill] sm:$0xff] %v2961_v50  ;;  %v298_v10 = vadd.f32 %v297_v38, %v2961_v50  ;;  %v235_v24 = vadd.f32 %v234_v63, %v2958_v45  ;;  %v2985_v38 = vld [vmem:[#allocation3 + $0x118] sm:$0xff]  ;;  %v2987_v50 = vld [vmem:[#allocation3 + $0x320] sm:$0xff]  ;;  %v2994_v45 = vld [vmem:[#allocation3 + $0x288] sm:$0xff] }
  0x47   :  { %v202_v2 = vadd.f32 %v201_v58, %v2939_v6  ;;  %v268_v58 = vadd.f32 %v267_v43, %v2954_v21  ;;  %5047 = vst [vmem:[#allocation43_spill] sm:$0xff] %v2985_v38  ;;  %v2990_v21 = vld [vmem:[#allocation3 + $0x210] sm:$0xff] }
  0x48   :  { %v299_v30 = vadd.f32 %v298_v10, %v2973_v19  ;;  %v236_v43 = vadd.f32 %v235_v24, %v2970_v29  ;;  %5048 = vst [vmem:[#allocation44_spill] sm:$0xff] %v2990_v21  ;;  %v2997_v10 = vld [vmem:[#allocation3 + $0x138] sm:$0xff]  ;;  %v2999_v19 = vld [vmem:[#allocation3 + $0x340] sm:$0xff] }
  0x49   :  { %v203_v36 = vadd.f32 %v202_v2, %v2951_v33  ;;  %v269_v2 = vadd.f32 %v268_v58, %v2966_v40  ;;  %5049 = vst [vmem:[#allocation45_spill] sm:$0xff] %v2994_v45  ;;  %v3002_v40 = vld [vmem:[#allocation3 + $0x230] sm:$0xff] }
  0x4a   :  { %v300_v63 = vadd.f32 %v299_v30, %v2985_v38  ;;  %5050 = vst [vmem:[#allocation46_spill] sm:$0xff] %v2997_v10  ;;  %v237_v58 = vadd.f32 %v236_v43, %v2982_v13  ;;  %v3009_v30 = vld [vmem:[#allocation3 + $0x158] sm:$0xff]  ;;  %v3011_v38 = vld [vmem:[#allocation3 + $0x360] sm:$0xff]  ;;  %v3017_v13 = vld [vmem:[#allocation3 + $0x2c8] sm:$0xff] }
  0x4b   :  { %v204_v23 = vadd.f32 %v203_v36, %v2963_v4  ;;  %v270_v36 = vadd.f32 %v269_v2, %v2978_v12  ;;  %5051 = vst [vmem:[#allocation47_spill] sm:$0xff] %v3002_v40  ;;  %v3014_v12 = vld [vmem:[#allocation3 + $0x250] sm:$0xff] }
  0x4c   :  { %v301_v24 = vadd.f32 %v300_v63, %v2997_v10  ;;  %5053 = vst [vmem:[#allocation49_spill] sm:$0xff] %v3009_v30  ;;  %v238_v2 = vadd.f32 %v237_v58, %v2994_v45  ;;  %v3020_v10 = vld [vmem:[#allocation3 + $0x380] sm:$0xff]  ;;  %v3027_v58 = vld [vmem:[#allocation3 + $0x270] sm:$0xff]  ;;  %v3030_v45 = vld [vmem:[#allocation3 + $0x178] sm:$0xff] }
  0x4d   :  { %v205_v7 = vadd.f32 %v204_v23, %v2975_v26  ;;  %v271_v23 = vadd.f32 %v270_v36, %v2990_v21  ;;  %5054 = vst [vmem:[#allocation50_spill] sm:$0xff] %v3014_v12 }
  0x4e   :  { %5055 = vst [vmem:[#allocation51_spill] sm:$0xff] %v3017_v13  ;;  %v302_v36 = vadd.f32 %v301_v24, %v3009_v30  ;;  %v3038_v24 = vld [vmem:[#allocation3 + $0x3c0] sm:$0xff] }
  0x4f   :  { %v206_v29 = vadd.f32 %v205_v7, %v2987_v50  ;;  %v272_v63 = vadd.f32 %v271_v23, %v3002_v40  ;;  %v239_v7 = vadd.f32 %v238_v2, %v3006_v1  ;;  %5057 = vst [vmem:[#allocation53_spill] sm:$0xff] %v3027_v58  ;;  %v3036_v40 = vld [vmem:[#allocation3 + $0x308] sm:$0xff]  ;;  %v3046_v1 = vld [vmem:[#allocation3 + $0x290] sm:$0xff] }
  0x50   :  { %5058 = vst [vmem:[#allocation54_spill] sm:$0xff] %v3030_v45  ;;  %v303_v30 = vadd.f32 %v302_v36, %v3030_v45 }
  0x51   :  { %v207_v43 = vadd.f32 %v206_v29, %v2999_v19  ;;  %v273_v29 = vadd.f32 %v272_v63, %v3014_v12  ;;  %v240_v23 = vadd.f32 %v239_v7, %v3017_v13  ;;  %5060 = vst [vmem:[#allocation56_spill] sm:$0xff] %v3036_v40  ;;  %v3044_v12 = vld [vmem:[#allocation3 + $0x328] sm:$0xff]  ;;  %v3050_v7 = vld [vmem:[#allocation3 + $0x3e0] sm:$0xff]  ;;  %v2642_v13 = vpop.eup %2641 }
  0x52   :  { %5061 = vst [vmem:[#allocation57_spill] sm:$0xff] %v3038_v24  ;;  %v331_v8 = vmul.f32 256.0, %v2642_v13  ;;  %vm335_vm0 = vweird.f32 %v2642_v13 }
  0x53   :  { %v208_v21 = vadd.f32 %v207_v43, %v3011_v38  ;;  %v241_v55 = vadd.f32 %v240_v23, %v3025_v0  ;;  %v274_v43 = vadd.f32 %v273_v29, %v3027_v58  ;;  %5062 = vst [vmem:[#allocation58_spill] sm:$0xff] %v3044_v12  ;;  %v3054_v23 = vld [vmem:[#allocation3 + $0x348] sm:$0xff]  ;;  %v3060_v58 = vld [vmem:[#allocation3 + $0x2b0] sm:$0xff]  ;;  %v3062_v0 = vld [vmem:[#allocation3 + $0x1b8] sm:$0xff] }
  0x54   :  { %5063 = vst [vmem:[#allocation59_spill] sm:$0xff] %v3046_v1 }
  0x55   :  { %v209_v2 = vadd.f32 %v208_v21, %v3020_v10  ;;  %5064 = vst [vmem:[#allocation60_spill] sm:$0xff] %v3048_v54  ;;  %v242_v21 = vadd.f32 %v241_v55, %v3036_v40  ;;  %v275_v36 = vadd.f32 %v274_v43, %v3046_v1  ;;  %v3074_v1 = vld [vmem:[#allocation3 + $0x388] sm:$0xff] }
  0x56   :  { %5065 = vst [vmem:[#allocation61_spill] sm:$0xff] %v3050_v7 }
  0x57   :  { %v210_v63 = vadd.f32 %v209_v2, %v3032_v61  ;;  %5066 = vst [vmem:[#allocation62_spill] sm:$0xff] %v3054_v23  ;;  %v243_v29 = vadd.f32 %v242_v21, %v3044_v12  ;;  %v304_v2 = vadd.f32 %v303_v30, %v3048_v54  ;;  %v3064_v61 = vld [vmem:[#allocation3 + $0x368] sm:$0xff]  ;;  %v276_v40 = vadd.f32 %v275_v36, %v3060_v58  ;;  %v3070_v30 = vld [vmem:[#allocation3 + $0x2d0] sm:$0xff] }
  0x58   :  { %5067 = vst [vmem:[#allocation63_spill] sm:$0xff] %v3060_v58  ;;  %v332_v54 = vsub.f32 1.0, %v331_v8  ;;  %v3079_v58 = vld [vmem:[#allocation3 + $0x2f0] sm:$0xff] }
  0x59   :  { %v211_v28 = vadd.f32 %v210_v63, %v3038_v24  ;;  %5068 = vst [vmem:[#allocation64_spill] sm:$0xff] %v3062_v0  ;;  %v244_v55 = vadd.f32 %v243_v29, %v3054_v23  ;;  %v305_v21 = vadd.f32 %v304_v2, %v3062_v0  ;;  %v277_v24 = vadd.f32 %v276_v40, %v3070_v30  ;;  %v3088_v40 = vld [vmem:[#allocation3 + $0x310] sm:$0xff] }
  0x5a   :  { %5069 = vst [vmem:[#allocation65_spill] sm:$0xff] %v3064_v61  ;;  %v333_v2 = vmul.f32 %v2642_v13, %v332_v54 }
  0x5b   :  { %v212_v45 = vadd.f32 %v211_v28, %v3050_v7  ;;  %v245_v43 = vadd.f32 %v244_v55, %v3064_v61  ;;  %5070 = vst [vmem:[#allocation66_spill] sm:$0xff] %v3070_v30  ;;  %v3072_v28 = vld [vmem:[#allocation3 + $0x1d8] sm:$0xff]  ;;  %v3083_v55 = vld [vmem:[#allocation3 + $0x3a8] sm:$0xff] }
  0x5c   :  { %5071 = vst [vmem:[#allocation67_spill] sm:$0xff] %v3072_v28  ;;  %v306_v29 = vadd.f32 %v305_v21, %v3072_v28  ;;  %v3090_v21 = vld [vmem:[#allocation3 + $0x218] sm:$0xff] }
  0x5d   :  { %v213_v63 = vrot.slane %v212_v45, 4  ;;  %v246_v36 = vadd.f32 %v245_v43, %v3074_v1  ;;  %5072 = vst [vmem:[#allocation68_spill] sm:$0xff] %v3079_v58 }
  0x5e   :  { %5074 = vst [vmem:[#allocation70_spill] sm:$0xff] %v3083_v55 }
  0x5f   :  { %v214_v12 = vadd.f32 %v213_v63, %v212_v45  ;;  %v3081_v45 = vld [vmem:[#allocation3 + $0x1f8] sm:$0xff]  ;;  %v278_v63 = vadd.f32 %v277_v24, %v3079_v58  ;;  %v247_v61 = vadd.f32 %v246_v36, %v3083_v55  ;;  %5075 = vst [vmem:[#allocation71_spill] sm:$0xff] %v3090_v21  ;;  %v3097_v58 = vld [vmem:[#allocation3 + $0x330] sm:$0xff] }
  0x60   :  { %5073 = vst [vmem:[#allocation69_spill] sm:$0xff] %v3081_v45  ;;  %v307_v8 = vadd.f32 %v306_v29, %v3081_v45  ;;  %v3099_v29 = vld [vmem:[#allocation3 + $0x238] sm:$0xff]  ;;  %v3103_v45 = vld [vmem:[#allocation3 + $0x3e8] sm:$0xff] }
  0x61   :  { %v215_v7 = vrot.slane %v214_v12, 2  ;;  %v279_v43 = vadd.f32 %v278_v63, %v3088_v40  ;;  %5076 = vst [vmem:[#allocation72_spill] sm:$0xff] %v3097_v58 }
  0x62   :  { %v308_v54 = vadd.f32 %v307_v8, %v3090_v21  ;;  %5077 = vst [vmem:[#allocation73_spill] sm:$0xff] %v3099_v29  ;;  %v3143_v21 = vld [vmem:[#allocation3 + $0x390] sm:$0xff] }
  0x63   :  { %v216_v23 = vadd.f32 %v215_v7, %v214_v12  ;;  %v334_v12 = vadd.f32 %v2642_v13, %v333_v2  ;;  %v3092_v7 = vld [vmem:[#allocation3 + $0x3c8] sm:$0xff]  ;;  %v280_v2 = vadd.f32 %v279_v43, %v3097_v58  ;;  %v3125_v43 = vld [vmem:[#allocation3 + $0x370] sm:$0xff]  ;;  %5086 = vst [vmem:[#allocation82_spill] sm:$0xff] %v3143_v21  ;;  %v3181_v58 = vld [vmem:[#allocation3 + $0x2d8] sm:$0xff] }
  0x64   :  { %v248_v24 = vadd.f32 %v247_v61, %v3092_v7  ;;  %v309_v30 = vadd.f32 %v308_v54, %v3099_v29  ;;  %v3113_v61 = vld [vmem:[#allocation3 + $0x258] sm:$0xff]  ;;  %5082 = vst [vmem:[#allocation78_spill] sm:$0xff] %v3125_v43 }
  0x65   :  { %v217_v0 = vrot.slane %v216_v23, 1  ;;  %v3101_v36 = vsel %vm335_vm0, %v2642_v13, %v334_v12  ;;  %5079 = vst [vmem:[#allocation75_spill] sm:$0xff] %v3113_v61  ;;  %v3127_v54 = vld [vmem:[#allocation3 + $0x278] sm:$0xff] }
  0x66   :  { %v249_v63 = vadd.f32 %v248_v24, %v3103_v45  ;;  %v310_v13 = vadd.f32 %v309_v30, %v3113_v61  ;;  %5083 = vst [vmem:[#allocation79_spill] sm:$0xff] %v3127_v54 }
  0x67   :  { %v218_v28 = vadd.f32 %v217_v0, %v216_v23  ;;  %v3111_v0 = vld [vmem:[#allocation3 + $0x350] sm:$0xff] }
  0x68   :  { %5078 = vst [vmem:[#allocation74_spill] sm:$0xff] %v3111_v0  ;;  %v281_v23 = vadd.f32 %v280_v2, %v3111_v0  ;;  %v311_v30 = vadd.f32 %v310_v13, %v3127_v54  ;;  %v3145_v0 = vld [vmem:[#allocation3 + $0x298] sm:$0xff] }
  0x69   :  { %v3108_v55 = vmul.f32 %v3101_v36, %v218_v28  ;;  %v250_v28 = vrot.slane %v249_v63, 4  ;;  %5087 = vst [vmem:[#allocation83_spill] sm:$0xff] %v3145_v0 }
  0x6a   :  { %v282_v2 = vadd.f32 %v281_v23, %v3125_v43  ;;  %v312_v13 = vadd.f32 %v311_v30, %v3145_v0 }
  0x6b   :  { %v3119_v8 = vsub.f32 %v2782_v14, %v3108_v55  ;;  %v3123_v12 = vsub.f32 %v2784_v15, %v3108_v55  ;;  %v3131_v24 = vsub.f32 %v2786_v18, %v3108_v55  ;;  %v3137_v14 = vsub.f32 %v2790_v22, %v3108_v55 }
  0x6c   :  { %v251_v29 = vadd.f32 %v250_v28, %v249_v63  ;;  %v3149_v18 = vsub.f32 %v2793_v32, %v3108_v55  ;;  %v283_v22 = vadd.f32 %v282_v2, %v3143_v21  ;;  %v3157_v54 = vsub.f32 %v2796_v37, %v3108_v55  ;;  %v3163_v32 = vld [vmem:[#allocation3 + $0x2b8] sm:$0xff] }
  0x6d   :  { %5080 = vst [vmem:[#allocation76_spill] sm:$0xff] %v3119_v8  ;;  %v469_v15 = vmul.f32 %v3119_v8, %v3119_v8  ;;  %v473_v61 = vmul.f32 %v3123_v12, %v3123_v12  ;;  %v477_v23 = vmul.f32 %v3131_v24, %v3131_v24  ;;  %v481_v63 = vmul.f32 %v3137_v14, %v3137_v14  ;;  %v3161_v8 = vld [vmem:[#allocation3 + $0x3b0] sm:$0xff] }
  0x6e   :  { %5081 = vst [vmem:[#allocation77_spill] sm:$0xff] %v3123_v12  ;;  %v252_v12 = vrot.slane %v251_v29, 2  ;;  %v485_v2 = vmul.f32 %v3149_v18, %v3149_v18  ;;  %v284_v37 = vadd.f32 %v283_v22, %v3161_v8  ;;  %v313_v21 = vadd.f32 %v312_v13, %v3163_v32 }
  0x6f   :  { %5084 = vst [vmem:[#allocation80_spill] sm:$0xff] %v3131_v24  ;;  %v597_v28 = vadd.f32 %v473_v61, %v469_v15  ;;  %v3167_v24 = vsub.f32 %v2799_v42, %v3108_v55  ;;  %v3175_v61 = vsub.f32 %v2802_v44, %v3108_v55  ;;  %v489_v15 = vmul.f32 %v3157_v54, %v3157_v54  ;;  %v3179_v42 = vld [vmem:[#allocation3 + $0x3d0] sm:$0xff] }
  0x70   :  { %5085 = vst [vmem:[#allocation81_spill] sm:$0xff] %v3137_v14  ;;  %v253_v0 = vadd.f32 %v252_v12, %v251_v29  ;;  %v3185_v29 = vsub.f32 %v2811_v49, %v3108_v55  ;;  %v285_v44 = vadd.f32 %v284_v37, %v3179_v42  ;;  %v3192_v13 = vsub.f32 %v2818_v53, %v3108_v55 }
  0x71   :  { %5088 = vst [vmem:[#allocation84_spill] sm:$0xff] %v3157_v54  ;;  %v598_v30 = vadd.f32 %v597_v28, %v477_v23  ;;  %v493_v12 = vmul.f32 %v3167_v24, %v3167_v24  ;;  %v314_v49 = vadd.f32 %v313_v21, %v3181_v58  ;;  %v3199_v54 = vld [vmem:[#allocation3 + $0x2f8] sm:$0xff]  ;;  %v3213_v37 = vsub.f32 %v2832_v62, %v3108_v55 }
  0x72   :  { %v254_v43 = vrot.slane %v253_v0, 1  ;;  %5089 = vst [vmem:[#allocation85_spill] sm:$0xff] %v3185_v29  ;;  %v505_v21 = vmul.f32 %v3192_v13, %v3192_v13 }
  0x73   :  { %v599_v14 = vadd.f32 %v598_v30, %v481_v63  ;;  %5090 = vst [vmem:[#allocation86_spill] sm:$0xff] %v3192_v13  ;;  %v497_v63 = vmul.f32 %v3175_v61, %v3175_v61  ;;  %v3196_v30 = vld [vmem:[#allocation3 + $0x3f0] sm:$0xff]  ;;  %v3274_v13 = vld [vmem:[#allocation3 + $0x358] sm:$0xff] }
  0x74   :  { %v255_v22 = vadd.f32 %v254_v43, %v253_v0  ;;  %v501_v0 = vmul.f32 %v3185_v29, %v3185_v29  ;;  %5092 = vst [vmem:[#allocation88_spill] sm:$0xff] %v3213_v37 }
  0x75   :  { %v600_v23 = vadd.f32 %v599_v14, %v485_v2  ;;  %v3203_v14 = vsub.f32 %v2824_v57, %v3108_v55  ;;  %v286_v2 = vadd.f32 %v285_v44, %v3196_v30  ;;  %v315_v57 = vadd.f32 %v314_v49, %v3199_v54 }
  0x76   :  { %v3208_v53 = vmul.f32 %v3101_v36, %v255_v22  ;;  %v3236_v49 = vsub.f32 %v2853_v11, %v3108_v55 }
  0x77   :  { %v601_v28 = vadd.f32 %v600_v23, %v489_v15  ;;  %5091 = vst [vmem:[#allocation87_spill] sm:$0xff] %v3203_v14  ;;  %v3218_v23 = vld [vmem:[#allocation3 + $0x318] sm:$0xff]  ;;  %v509_v22 = vmul.f32 %v3203_v14, %v3203_v14 }
  0x78   :  { %v3228_v62 = vsub.f32 %v2805_v46, %v3208_v53  ;;  %5094 = vst [vmem:[#allocation90_spill] sm:$0xff] %v3236_v49  ;;  %v316_v14 = vadd.f32 %v315_v57, %v3218_v23  ;;  %v3245_v46 = vld [vmem:[#allocation3 + $0x338] sm:$0xff] }
  0x79   :  { %v602_v43 = vadd.f32 %v601_v28, %v493_v12  ;;  %v3222_v12 = vsub.f32 %v2844_v5, %v3108_v55  ;;  %v3232_v28 = vsub.f32 %v2807_v47, %v3208_v53  ;;  %v513_v5 = vmul.f32 %v3213_v37, %v3213_v37 }
  0x7a   :  { %v3249_v47 = vsub.f32 %v2862_v20, %v3108_v55  ;;  %v3255_v37 = vsub.f32 %v2816_v52, %v3208_v53  ;;  %v521_v20 = vmul.f32 %v3236_v49, %v3236_v49  ;;  %v3270_v52 = vsub.f32 %v2822_v56, %v3208_v53 }
  0x7b   :  { %v603_v15 = vadd.f32 %v602_v43, %v497_v63  ;;  %5093 = vst [vmem:[#allocation89_spill] sm:$0xff] %v3222_v12  ;;  %v287_v63 = vrot.slane %v286_v2, 4  ;;  %v517_v11 = vmul.f32 %v3222_v12, %v3222_v12  ;;  %v3290_v49 = vsub.f32 %v2889_v41, %v3108_v55 }
  0x7c   :  { %5095 = vst [vmem:[#allocation91_spill] sm:$0xff] %v3249_v47  ;;  %v482_v56 = vmul.f32 %v3255_v37, %v3255_v37  ;;  %v3305_v41 = vsub.f32 %v2902_v59, %v3108_v55 }
  0x7d   :  { %v604_v44 = vadd.f32 %v603_v15, %v501_v0  ;;  %v3243_v0 = vsub.f32 %v2809_v48, %v3208_v53  ;;  %v474_v48 = vmul.f32 %v3232_v28, %v3232_v28  ;;  %v288_v57 = vadd.f32 %v287_v63, %v286_v2  ;;  %5098 = vst [vmem:[#allocation94_spill] sm:$0xff] %v3290_v49 }
  0x7e   :  { %v3278_v2 = vsub.f32 %v2880_v34, %v3108_v55  ;;  %5100 = vst [vmem:[#allocation96_spill] sm:$0xff] %v3305_v41  ;;  %v537_v59 = vmul.f32 %v3290_v49, %v3290_v49  ;;  %v5129_v49 = vld [vmem:[#allocation12_spill] sm:$0xff] }
  0x7f   :  { %v605_v43 = vadd.f32 %v604_v44, %v505_v21  ;;  %v470_v21 = vmul.f32 %v3228_v62, %v3228_v62  ;;  %v3263_v44 = vsub.f32 %v2871_v27, %v3108_v55  ;;  %v525_v27 = vmul.f32 %v3249_v47, %v3249_v47 }
  0x80   :  { %5097 = vst [vmem:[#allocation93_spill] sm:$0xff] %v3278_v2 }
  0x81   :  { %v606_v15 = vadd.f32 %v605_v43, %v509_v22  ;;  %5096 = vst [vmem:[#allocation92_spill] sm:$0xff] %v3263_v44  ;;  %v317_v22 = vadd.f32 %v316_v14, %v3245_v46  ;;  %v478_v43 = vmul.f32 %v3243_v0, %v3243_v0  ;;  %v3284_v14 = vsub.f32 %v2828_v60, %v3208_v53 }
  0x82   :  { %v529_v34 = vmul.f32 %v3263_v44, %v3263_v44  ;;  %v486_v60 = vmul.f32 %v3270_v52, %v3270_v52 }
  0x83   :  { %v607_v12 = vadd.f32 %v606_v15, %v513_v5  ;;  %v634_v5 = vadd.f32 %v474_v48, %v470_v21  ;;  %v289_v15 = vrot.slane %v288_v57, 2  ;;  %v318_v47 = vadd.f32 %v317_v22, %v3274_v13  ;;  %v3301_v21 = vld [vmem:[#allocation3 + $0x378] sm:$0xff] }
  0x84   :  { %v533_v48 = vmul.f32 %v3278_v2, %v3278_v2  ;;  %v3311_v22 = vsub.f32 %v2850_v9, %v3208_v53 }
  0x85   :  { %v608_v63 = vadd.f32 %v607_v12, %v517_v11  ;;  %v3297_v12 = vsub.f32 %v2840_v3, %v3208_v53  ;;  %v635_v11 = vadd.f32 %v634_v5, %v478_v43  ;;  %v490_v3 = vmul.f32 %v3284_v14, %v3284_v14 }
  0x86   :  { %5101 = vst [vmem:[#allocation97_spill] sm:$0xff] %v3311_v22  ;;  %v290_v44 = vadd.f32 %v289_v15, %v288_v57  ;;  %v3317_v43 = vsub.f32 %v2915_v16, %v3108_v55  ;;  %v319_v2 = vadd.f32 %v318_v47, %v3301_v21  ;;  %v3332_v16 = vsub.f32 %v2927_v35, %v3108_v55 }
  0x87   :  { %v609_v29 = vadd.f32 %v608_v63, %v521_v20  ;;  %5099 = vst [vmem:[#allocation95_spill] sm:$0xff] %v3297_v12  ;;  %v636_v63 = vadd.f32 %v635_v11, %v482_v56  ;;  %v494_v9 = vmul.f32 %v3297_v12, %v3297_v12  ;;  %v3328_v56 = vld [vmem:[#allocation3 + $0x398] sm:$0xff]  ;;  %v3336_v57 = vsub.f32 %v2939_v6, %v3108_v55 }
  0x88   :  { %5102 = vst [vmem:[#allocation98_spill] sm:$0xff] %v3317_v43  ;;  %v541_v47 = vmul.f32 %v3305_v41, %v3305_v41  ;;  %v291_v11 = vrot.slane %v290_v44, 1  ;;  %v3348_v35 = vsub.f32 %v2951_v33, %v3108_v55  ;;  %v545_v6 = vmul.f32 %v3317_v43, %v3317_v43  ;;  %v3363_v33 = vld [vmem:[#allocation3 + $0x3b8] sm:$0xff] }
  0x89   :  { %v610_v20 = vadd.f32 %v609_v29, %v525_v27  ;;  %v3324_v29 = vsub.f32 %v2859_v17, %v3208_v53  ;;  %v637_v27 = vadd.f32 %v636_v63, %v486_v60  ;;  %5104 = vst [vmem:[#allocation100_spill] sm:$0xff] %v3332_v16  ;;  %v3342_v17 = vsub.f32 %v2868_v25, %v3208_v53  ;;  %v5125_v41 = vld [vmem:[#allocation27_spill] sm:$0xff] }
  0x8a   :  { %5105 = vst [vmem:[#allocation101_spill] sm:$0xff] %v3336_v57  ;;  %v320_v63 = vadd.f32 %v319_v2, %v3328_v56  ;;  %v3359_v25 = vsub.f32 %v2877_v31, %v3208_v53  ;;  %v3371_v2 = vsub.f32 %v2987_v50, %v3108_v55  ;;  %v3377_v31 = vsub.f32 %v2886_v39, %v3208_v53 }
  0x8b   :  { %v611_v5 = vadd.f32 %v610_v20, %v529_v34  ;;  %5103 = vst [vmem:[#allocation99_spill] sm:$0xff] %v3324_v29  ;;  %v498_v34 = vmul.f32 %v3311_v22, %v3311_v22  ;;  %v638_v60 = vadd.f32 %v637_v27, %v490_v3  ;;  %v502_v3 = vmul.f32 %v3324_v29, %v3324_v29 }
  0x8c   :  { %5106 = vst [vmem:[#allocation102_spill] sm:$0xff] %v3342_v17  ;;  %v3367_v27 = vsub.f32 %v2975_v26, %v3108_v55  ;;  %v3383_v26 = vsub.f32 %v2999_v19, %v3108_v55  ;;  %v553_v50 = vmul.f32 %v3336_v57, %v3336_v57  ;;  %v3394_v39 = vsub.f32 %v2895_v51, %v3208_v53  ;;  %v3398_v19 = vld [vmem:[#allocation3 + $0x3d8] sm:$0xff]  ;;  %v5119_v51 = vld [vmem:[#allocation24_spill] sm:$0xff] }
  0x8d   :  { %v612_v15 = vadd.f32 %v611_v5, %v533_v48  ;;  %5107 = vst [vmem:[#allocation103_spill] sm:$0xff] %v3348_v35  ;;  %v3355_v48 = vsub.f32 %v2963_v4, %v3108_v55  ;;  %v639_v5 = vadd.f32 %v638_v60, %v494_v9  ;;  %v549_v4 = vmul.f32 %v3332_v16, %v3332_v16 }
  0x8e   :  { %5109 = vst [vmem:[#allocation105_spill] sm:$0xff] %v3359_v25  ;;  %v506_v9 = vmul.f32 %v3342_v17, %v3342_v17  ;;  %v292_v60 = vadd.f32 %v291_v11, %v290_v44  ;;  %v321_v16 = vadd.f32 %v320_v63, %v3363_v33  ;;  %v510_v44 = vmul.f32 %v3359_v25, %v3359_v25 }
  0x8f   :  { %v613_v20 = vadd.f32 %v612_v15, %v537_v59  ;;  %5108 = vst [vmem:[#allocation104_spill] sm:$0xff] %v3355_v48  ;;  %v640_v15 = vadd.f32 %v639_v5, %v498_v34  ;;  %v3402_v11 = vsub.f32 %v3020_v10, %v3108_v55  ;;  %v3412_v5 = vsub.f32 %v5119_v51, %v3208_v53  ;;  %v5121_v10 = vld [vmem:[#allocation57_spill] sm:$0xff] }
  0x90   :  { %5110 = vst [vmem:[#allocation106_spill] sm:$0xff] %v3367_v27  ;;  %v3421_v57 = vsub.f32 %v5121_v10, %v3108_v55  ;;  %v3436_v10 = vld [vmem:[#allocation3 + $0x3f8] sm:$0xff] }
  0x91   :  { %5111 = vst [vmem:[#allocation107_spill] sm:$0xff] %v3371_v2  ;;  %v614_v59 = vadd.f32 %v613_v20, %v541_v47  ;;  %v3390_v47 = vsub.f32 %v3011_v38, %v3108_v55  ;;  %v641_v34 = vadd.f32 %v640_v15, %v502_v3  ;;  %v557_v38 = vmul.f32 %v3348_v35, %v3348_v35 }
  0x92   :  { %5112 = vst [vmem:[#allocation108_spill] sm:$0xff] %v3377_v31  ;;  %v514_v3 = vmul.f32 %v3377_v31, %v3377_v31  ;;  %v3417_v15 = vmul.f32 %v3101_v36, %v292_v60  ;;  %v518_v60 = vmul.f32 %v3394_v39, %v3394_v39 }
  0x93   :  { %5113 = vst [vmem:[#allocation109_spill] sm:$0xff] %v3383_v26  ;;  %v615_v43 = vadd.f32 %v614_v59, %v545_v6  ;;  %v5117_v6 = vld [vmem:[#allocation55_spill] sm:$0xff]  ;;  %v642_v59 = vadd.f32 %v641_v34, %v506_v9  ;;  %v3432_v9 = vsub.f32 %v5125_v41, %v3208_v53  ;;  %v522_v41 = vmul.f32 %v3412_v5, %v3412_v5 }
  0x94   :  { %5114 = vst [vmem:[#allocation110_spill] sm:$0xff] %v3390_v47  ;;  %v3406_v20 = vsub.f32 %v5117_v6, %v3108_v55  ;;  %v561_v6 = vmul.f32 %v3355_v48, %v3355_v48  ;;  %v565_v48 = vmul.f32 %v3367_v27, %v3367_v27  ;;  %v5131_v27 = vld [vmem:[#allocation33_spill] sm:$0xff] }
  0x95   :  { %5115 = vst [vmem:[#allocation111_spill] sm:$0xff] %v3394_v39  ;;  %v616_v63 = vadd.f32 %v615_v43, %v549_v4  ;;  %v322_v43 = vadd.f32 %v321_v16, %v3398_v19  ;;  %v5123_v4 = vld [vmem:[#allocation61_spill] sm:$0xff]  ;;  %v643_v34 = vadd.f32 %v642_v59, %v510_v44  ;;  %v569_v16 = vmul.f32 %v3371_v2, %v3371_v2 }
  0x96   :  { %5116 = vst [vmem:[#allocation112_spill] sm:$0xff] %v3402_v11  ;;  %v3428_v51 = vsub.f32 %v5123_v4, %v3108_v55  ;;  %v5127_v55 = vld [vmem:[#allocation30_spill] sm:$0xff]  ;;  %v3450_v44 = vsub.f32 %v5129_v49, %v3417_v15  ;;  %v5130_v59 = vld [vmem:[#allocation13_spill] sm:$0xff]  ;;  %v573_v2 = vmul.f32 %v3383_v26, %v3383_v26  ;;  %v526_v49 = vmul.f32 %v3432_v9, %v3432_v9 }
  0x97   :  { %5118 = vst [vmem:[#allocation55_spill] sm:$0xff] %v3406_v20  ;;  %v617_v35 = vadd.f32 %v616_v63, %v553_v50  ;;  %v3444_v63 = vsub.f32 %v5127_v55, %v3208_v53  ;;  %v644_v4 = vadd.f32 %v643_v34, %v514_v3  ;;  %v3454_v39 = vsub.f32 %v5130_v59, %v3417_v15  ;;  %v5133_v59 = vld [vmem:[#allocation14_spill] sm:$0xff] }
  0x98   :  { %5120 = vst [vmem:[#allocation24_spill] sm:$0xff] %v3412_v5  ;;  %v323_v55 = vadd.f32 %v322_v43, %v3436_v10  ;;  %v3463_v3 = vsub.f32 %v5131_v27, %v3208_v53  ;;  %v3469_v5 = vsub.f32 %v5133_v59, %v3417_v15  ;;  %v581_v26 = vmul.f32 %v3402_v11, %v3402_v11  ;;  %v5137_v59 = vld [vmem:[#allocation39_spill] sm:$0xff] }
  0x99   :  { %5122 = vst [vmem:[#allocation57_spill] sm:$0xff] %v3421_v57  ;;  %v618_v50 = vadd.f32 %v617_v35, %v557_v38  ;;  %v577_v35 = vmul.f32 %v3390_v47, %v3390_v47  ;;  %v645_v34 = vadd.f32 %v644_v4, %v518_v60  ;;  %v530_v27 = vmul.f32 %v3444_v63, %v3444_v63  ;;  %v5136_v47 = vld [vmem:[#allocation15_spill] sm:$0xff] }
  0x9a   :  { %5124 = vst [vmem:[#allocation61_spill] sm:$0xff] %v3428_v51  ;;  %v471_v60 = vmul.f32 %v3450_v44, %v3450_v44  ;;  %v475_v4 = vmul.f32 %v3454_v39, %v3454_v39  ;;  %v324_v11 = vrot.slane %v323_v55, 4  ;;  %v479_v25 = vmul.f32 %v3469_v5, %v3469_v5 }
  0x9b   :  { %5126 = vst [vmem:[#allocation27_spill] sm:$0xff] %v3432_v9  ;;  %v619_v38 = vadd.f32 %v618_v50, %v561_v6  ;;  %v5134_v6 = vld [vmem:[#allocation36_spill] sm:$0xff]  ;;  %v646_v43 = vadd.f32 %v645_v34, %v522_v41  ;;  %v3481_v9 = vsub.f32 %v5136_v47, %v3417_v15  ;;  %v534_v41 = vmul.f32 %v3463_v3, %v3463_v3 }
  0x9c   :  { %5128 = vst [vmem:[#allocation30_spill] sm:$0xff] %v3444_v63  ;;  %v3475_v50 = vsub.f32 %v5134_v6, %v3208_v53  ;;  %v3491_v6 = vsub.f32 %v5137_v59, %v3208_v53  ;;  %v5139_v34 = vld [vmem:[#allocation16_spill] sm:$0xff]  ;;  %v671_v29 = vadd.f32 %v475_v4, %v471_v60 }
  0x9d   :  { %5132 = vst [vmem:[#allocation12_spill] sm:$0xff] %v3463_v3  ;;  %v620_v31 = vadd.f32 %v619_v38, %v565_v48  ;;  %v585_v48 = vmul.f32 %v3406_v20, %v3406_v20  ;;  %v647_v47 = vadd.f32 %v646_v43, %v526_v49  ;;  %v3497_v63 = vsub.f32 %v5139_v34, %v3417_v15  ;;  %v5142_v49 = vld [vmem:[#allocation17_spill] sm:$0xff] }
  0x9e   :  { %5135 = vst [vmem:[#allocation13_spill] sm:$0xff] %v3475_v50  ;;  %v589_v20 = vmul.f32 %v3421_v57, %v3421_v57  ;;  %v538_v17 = vmul.f32 %v3475_v50, %v3475_v50  ;;  %v3511_v43 = vsub.f32 %v5142_v49, %v3417_v15  ;;  %v483_v34 = vmul.f32 %v3481_v9, %v3481_v9  ;;  %v5143_v57 = vld [vmem:[#allocation45_spill] sm:$0xff] }
  0x9f   :  { %v621_v38 = vadd.f32 %v620_v31, %v569_v16  ;;  %5138 = vst [vmem:[#allocation33_spill] sm:$0xff] %v3491_v6  ;;  %v5140_v16 = vld [vmem:[#allocation42_spill] sm:$0xff]  ;;  %v648_v3 = vadd.f32 %v647_v47, %v530_v27  ;;  %v487_v49 = vmul.f32 %v3497_v63, %v3497_v63  ;;  %v672_v50 = vadd.f32 %v671_v29, %v479_v25 }
  0xa0   :  { %v3505_v59 = vsub.f32 %v5140_v16, %v3208_v53  ;;  %v325_v16 = vadd.f32 %v324_v11, %v323_v55  ;;  %v5145_v27 = vld [vmem:[#allocation18_spill] sm:$0xff] }
  0xa1   :  { %v622_v31 = vadd.f32 %v621_v38, %v573_v2  ;;  %v3517_v2 = vsub.f32 %v5143_v57, %v3208_v53  ;;  %v542_v38 = vmul.f32 %v3491_v6, %v3491_v6  ;;  %v649_v12 = vadd.f32 %v648_v3, %v534_v41  ;;  %v5147_v57 = vld [vmem:[#allocation48_spill] sm:$0xff]  ;;  %v5149_v3 = vld [vmem:[#allocation19_spill] sm:$0xff] }
  0xa2   :  { %5141 = vst [vmem:[#allocation14_spill] sm:$0xff] %v3505_v59  ;;  %v3523_v47 = vsub.f32 %v5145_v27, %v3417_v15  ;;  %v3531_v4 = vsub.f32 %v5147_v57, %v3208_v53  ;;  %v546_v11 = vmul.f32 %v3505_v59, %v3505_v59  ;;  %v3537_v41 = vsub.f32 %v5149_v3, %v3417_v15  ;;  %v5151_v27 = vld [vmem:[#allocation51_spill] sm:$0xff] }
  0xa3   :  { %v623_v22 = vadd.f32 %v622_v31, %v577_v35  ;;  %5144 = vst [vmem:[#allocation36_spill] sm:$0xff] %v3517_v2  ;;  %v593_v35 = vmul.f32 %v3428_v51, %v3428_v51  ;;  %v650_v55 = vadd.f32 %v649_v12, %v538_v17  ;;  %v491_v31 = vmul.f32 %v3511_v43, %v3511_v43  ;;  %v5153_v12 = vld [vmem:[#allocation20_spill] sm:$0xff] }
  0xa4   :  { %5146 = vst [vmem:[#allocation15_spill] sm:$0xff] %v3523_v47  ;;  %v673_v29 = vadd.f32 %v672_v50, %v483_v34  ;;  %v326_v57 = vrot.slane %v325_v16, 2  ;;  %v3549_v17 = vsub.f32 %v5153_v12, %v3417_v15  ;;  %v495_v3 = vmul.f32 %v3523_v47, %v3523_v47  ;;  %v5155_v50 = vld [vmem:[#allocation52_spill] sm:$0xff] }
  0xa5   :  { %v624_v60 = vadd.f32 %v623_v22, %v581_v26  ;;  %5148 = vst [vmem:[#allocation39_spill] sm:$0xff] %v3531_v4  ;;  %v3543_v22 = vsub.f32 %v5151_v27, %v3208_v53  ;;  %v550_v26 = vmul.f32 %v3517_v2, %v3517_v2  ;;  %v651_v51 = vadd.f32 %v650_v55, %v542_v38  ;;  %v5157_v27 = vld [vmem:[#allocation23_spill] sm:$0xff] }
  0xa6   :  { %5150 = vst [vmem:[#allocation16_spill] sm:$0xff] %v3537_v41  ;;  %v674_v59 = vadd.f32 %v673_v29, %v487_v49  ;;  %v554_v34 = vmul.f32 %v3531_v4, %v3531_v4  ;;  %v3561_v38 = vsub.f32 %v5157_v27, %v3417_v15  ;;  %v499_v55 = vmul.f32 %v3537_v41, %v3537_v41  ;;  %v5159_v49 = vld [vmem:[#allocation56_spill] sm:$0xff] }
  0xa7   :  { %v625_v25 = vadd.f32 %v624_v60, %v585_v48  ;;  %5152 = vst [vmem:[#allocation42_spill] sm:$0xff] %v3543_v22  ;;  %v3555_v48 = vsub.f32 %v5155_v50, %v3208_v53  ;;  %v652_v60 = vadd.f32 %v651_v51, %v546_v11  ;;  %v558_v29 = vmul.f32 %v3543_v22, %v3543_v22  ;;  %v5161_v51 = vld [vmem:[#allocation26_spill] sm:$0xff] }
  0xa8   :  { %5154 = vst [vmem:[#allocation17_spill] sm:$0xff] %v3549_v17  ;;  %v675_v12 = vadd.f32 %v674_v59, %v491_v31  ;;  %v3573_v11 = vsub.f32 %v5161_v51, %v3417_v15  ;;  %v503_v27 = vmul.f32 %v3549_v17, %v3549_v17 }
  0xa9   :  { %v626_v6 = vadd.f32 %v625_v25, %v589_v20  ;;  %5156 = vst [vmem:[#allocation45_spill] sm:$0xff] %v3555_v48  ;;  %v3567_v20 = vsub.f32 %v5159_v49, %v3208_v53  ;;  %v327_v25 = vadd.f32 %v326_v57, %v325_v16  ;;  %v653_v50 = vadd.f32 %v652_v60, %v550_v26  ;;  %v5165_v16 = vld [vmem:[#allocation29_spill] sm:$0xff] }
  0xaa   :  { %5158 = vst [vmem:[#allocation18_spill] sm:$0xff] %v3561_v38  ;;  %v676_v4 = vadd.f32 %v675_v12, %v495_v3  ;;  %v3585_v26 = vsub.f32 %v5165_v16, %v3417_v15  ;;  %v507_v57 = vmul.f32 %v3561_v38, %v3561_v38  ;;  %v5167_v3 = vld [vmem:[#allocation62_spill] sm:$0xff]  ;;  %v511_v16 = vmul.f32 %v3573_v11, %v3573_v11 }
  0xab   :  { %v627_v2 = vadd.f32 %v626_v6, %v593_v35  ;;  %5160 = vst [vmem:[#allocation48_spill] sm:$0xff] %v3567_v20  ;;  %v5163_v6 = vld [vmem:[#allocation58_spill] sm:$0xff]  ;;  %v562_v35 = vmul.f32 %v3555_v48, %v3555_v48  ;;  %v654_v31 = vadd.f32 %v653_v50, %v554_v34  ;;  %v3591_v12 = vsub.f32 %v5167_v3, %v3208_v53  ;;  %v5169_v34 = vld [vmem:[#allocation32_spill] sm:$0xff]  ;;  %v5173_v3 = vld [vmem:[#allocation35_spill] sm:$0xff] }
  0xac   :  { %5162 = vst [vmem:[#allocation19_spill] sm:$0xff] %v3573_v11  ;;  %v3579_v59 = vsub.f32 %v5163_v6, %v3208_v53  ;;  %v677_v60 = vadd.f32 %v676_v4, %v499_v55  ;;  %v566_v51 = vmul.f32 %v3567_v20, %v3567_v20  ;;  %v328_v6 = vrot.slane %v327_v25, 1 }
  0xad   :  { %v628_v41 = vrot.slane %v627_v2, 4  ;;  %5166 = vst [vmem:[#allocation20_spill] sm:$0xff] %v3585_v26  ;;  %v655_v22 = vadd.f32 %v654_v31, %v558_v29  ;;  %v3597_v50 = vsub.f32 %v5169_v34, %v3417_v15  ;;  %v3609_v29 = vsub.f32 %v5173_v3, %v3417_v15 }
  0xae   :  { %5164 = vst [vmem:[#allocation51_spill] sm:$0xff] %v3579_v59  ;;  %v678_v48 = vadd.f32 %v677_v60, %v503_v27  ;;  %v515_v31 = vmul.f32 %v3585_v26, %v3585_v26  ;;  %v3615_v27 = vsub.f32 %v3074_v1, %v3208_v53  ;;  %v574_v60 = vmul.f32 %v3591_v12, %v3591_v12 }
  0xaf   :  { %v629_v49 = vadd.f32 %v628_v41, %v627_v2  ;;  %5168 = vst [vmem:[#allocation52_spill] sm:$0xff] %v3591_v12  ;;  %v5171_v2 = vld [vmem:[#allocation65_spill] sm:$0xff]  ;;  %v570_v41 = vmul.f32 %v3579_v59, %v3579_v59  ;;  %v656_v55 = vadd.f32 %v655_v22, %v562_v35  ;;  %v5176_v22 = vld [vmem:[#allocation38_spill] sm:$0xff]  ;;  %v519_v3 = vmul.f32 %v3597_v50, %v3597_v50 }
  0xb0   :  { %5170 = vst [vmem:[#allocation23_spill] sm:$0xff] %v3597_v50  ;;  %v3603_v4 = vsub.f32 %v5171_v2, %v3208_v53  ;;  %v679_v34 = vadd.f32 %v678_v48, %v507_v57  ;;  %v329_v2 = vadd.f32 %v328_v6, %v327_v25  ;;  %v3621_v35 = vsub.f32 %v5176_v22, %v3417_v15  ;;  %v5178_v48 = vld [vmem:[#allocation70_spill] sm:$0xff]  ;;  %v5180_v25 = vld [vmem:[#allocation41_spill] sm:$0xff] }
  0xb1   :  { %v630_v38 = vrot.slane %v629_v49, 2  ;;  %5174 = vst [vmem:[#allocation26_spill] sm:$0xff] %v3609_v29  ;;  %v657_v11 = vadd.f32 %v656_v55, %v566_v51  ;;  %v523_v51 = vmul.f32 %v3609_v29, %v3609_v29 }
  0xb2   :  { %5172 = vst [vmem:[#allocation56_spill] sm:$0xff] %v3603_v4  ;;  %v680_v59 = vadd.f32 %v679_v34, %v511_v16  ;;  %v578_v1 = vmul.f32 %v3603_v4, %v3603_v4  ;;  %v3639_v16 = vsub.f32 %v3092_v7, %v3208_v53  ;;  %v582_v34 = vmul.f32 %v3615_v27, %v3615_v27 }
  0xb3   :  { %v631_v20 = vadd.f32 %v630_v38, %v629_v49  ;;  %5175 = vst [vmem:[#allocation58_spill] sm:$0xff] %v3615_v27  ;;  %v3627_v38 = vsub.f32 %v5178_v48, %v3208_v53  ;;  %v658_v57 = vadd.f32 %v657_v11, %v570_v41  ;;  %v3633_v49 = vsub.f32 %v5180_v25, %v3417_v15  ;;  %v5183_v41 = vld [vmem:[#allocation44_spill] sm:$0xff] }
  0xb4   :  { %5177 = vst [vmem:[#allocation29_spill] sm:$0xff] %v3621_v35  ;;  %v681_v6 = vadd.f32 %v680_v59, %v515_v31  ;;  %v3644_v22 = vmul.f32 %v3101_v36, %v329_v2  ;;  %v3648_v48 = vsub.f32 %v5183_v41, %v3417_v15  ;;  %v527_v25 = vmul.f32 %v3621_v35, %v3621_v35 }
  0xb5   :  { %v632_v26 = vrot.slane %v631_v20, 1  ;;  %5179 = vst [vmem:[#allocation62_spill] sm:$0xff] %v3627_v38  ;;  %v659_v11 = vadd.f32 %v658_v57, %v574_v60  ;;  %v3655_v7 = vsub.f32 %v3103_v45, %v3208_v53  ;;  %v586_v60 = vmul.f32 %v3627_v38, %v3627_v38  ;;  %v5190_v45 = vld [vmem:[#allocation21_spill] sm:$0xff] }
  0xb6   :  { %5181 = vst [vmem:[#allocation32_spill] sm:$0xff] %v3633_v49  ;;  %v682_v59 = vadd.f32 %v681_v6, %v519_v3  ;;  %v531_v57 = vmul.f32 %v3633_v49, %v3633_v49  ;;  %v5188_v3 = vld [vmem:[#allocation50_spill] sm:$0xff]  ;;  %v3673_v53 = vsub.f32 %v5190_v45, %v3644_v22  ;;  %v5194_v45 = vld [vmem:[#allocation25_spill] sm:$0xff]  ;;  %v5206_v49 = vld [vmem:[#allocation31_spill] sm:$0xff] }
  0xb7   :  { %v633_v55 = vadd.f32 %v632_v26, %v631_v20  ;;  %5182 = vst [vmem:[#allocation65_spill] sm:$0xff] %v3639_v16  ;;  %v5186_v26 = vld [vmem:[#allocation47_spill] sm:$0xff]  ;;  %v660_v2 = vadd.f32 %v659_v11, %v578_v1  ;;  %v3669_v6 = vsub.f32 %v5188_v3, %v3417_v15  ;;  %v590_v1 = vmul.f32 %v3639_v16, %v3639_v16  ;;  %v5198_v16 = vld [vmem:[#allocation28_spill] sm:$0xff] }
  0xb8   :  { %5184 = vst [vmem:[#allocation35_spill] sm:$0xff] %v3648_v48  ;;  %v3659_v31 = vsub.f32 %v5186_v26, %v3417_v15  ;;  %v683_v41 = vadd.f32 %v682_v59, %v523_v51  ;;  %v535_v51 = vmul.f32 %v3648_v48, %v3648_v48  ;;  %v3690_v38 = vsub.f32 %v5194_v45, %v3644_v22 }
  0xb9   :  { %v745_v20 = vmul.f32 %v633_v55, %v3101_v36  ;;  %5185 = vst [vmem:[#allocation38_spill] sm:$0xff] %v3655_v7  ;;  %v5191_v55 = vld [vmem:[#allocation22_spill] sm:$0xff]  ;;  %v661_v11 = vadd.f32 %v660_v2, %v582_v34  ;;  %v472_v45 = vmul.f32 %v3673_v53, %v3673_v53  ;;  %v3724_v35 = vsub.f32 %v5206_v49, %v3644_v22 }
  0xba   :  { %5187 = vst [vmem:[#allocation70_spill] sm:$0xff] %v3659_v31  ;;  %v3677_v26 = vsub.f32 %v5191_v55, %v3644_v22  ;;  %v684_v59 = vadd.f32 %v683_v41, %v527_v25  ;;  %v594_v55 = vmul.f32 %v3655_v7, %v3655_v7  ;;  %v539_v34 = vmul.f32 %v3659_v31, %v3659_v31  ;;  %v5196_v25 = vld [vmem:[#allocation59_spill] sm:$0xff]  ;;  %v5211_v49 = vld [vmem:[#allocation34_spill] sm:$0xff] }
  0xbb   :  { %v3665_v27 = vadd.f32 1e-05, %v745_v20  ;;  %5189 = vst [vmem:[#allocation41_spill] sm:$0xff] %v3669_v6  ;;  %v5192_v20 = vld [vmem:[#allocation53_spill] sm:$0xff]  ;;  %v662_v4 = vadd.f32 %v661_v11, %v586_v60  ;;  %v3698_v41 = vsub.f32 %v5196_v25, %v3417_v15  ;;  %v5200_v60 = vld [vmem:[#allocation63_spill] sm:$0xff]  ;;  %v5202_v25 = vld [vmem:[#allocation66_spill] sm:$0xff]  ;;  %v3740_v29 = vsub.f32 %v5211_v49, %v3644_v22 }
  0xbc   :  { %v3686_v3 = vsub.f32 %v5192_v20, %v3417_v15  ;;  %5195 = vst [vmem:[#allocation47_spill] sm:$0xff] %v3690_v38  ;;  %v685_v2 = vadd.f32 %v684_v59, %v531_v57  ;;  %v3702_v20 = vsub.f32 %v5198_v16, %v3644_v22  ;;  %v476_v12 = vmul.f32 %v3677_v26, %v3677_v26  ;;  %v5204_v16 = vld [vmem:[#allocation68_spill] sm:$0xff] }
  0xbd   :  { %2643 = vrsqrt.f32 %v3665_v27  ;;  %5197 = vst [vmem:[#allocation50_spill] sm:$0xff] %v3698_v41  ;;  %v663_v7 = vadd.f32 %v662_v4, %v590_v1  ;;  %v3710_v11 = vsub.f32 %v5200_v60, %v3417_v15  ;;  %v543_v57 = vmul.f32 %v3669_v6, %v3669_v6 }
  0xbe   :  { %5193 = vst [vmem:[#allocation44_spill] sm:$0xff] %v3686_v3  ;;  %v686_v59 = vadd.f32 %v685_v2, %v535_v51  ;;  %v3716_v31 = vsub.f32 %v5202_v25, %v3417_v15  ;;  %v3720_v48 = vsub.f32 %v5204_v16, %v3417_v15  ;;  %v480_v4 = vmul.f32 %v3690_v38, %v3690_v38  ;;  %v5209_v16 = vld [vmem:[#allocation72_spill] sm:$0xff] }
  0xbf   :  { %5199 = vst [vmem:[#allocation21_spill] sm:$0xff] %v3702_v20  ;;  %v664_v1 = vadd.f32 %v663_v7, %v594_v55  ;;  %v3730_v60 = vsub.f32 %v3088_v40, %v3417_v15  ;;  %v547_v51 = vmul.f32 %v3686_v3, %v3686_v3  ;;  %v3736_v6 = vsub.f32 %v5209_v16, %v3417_v15  ;;  %v5212_v16 = vld [vmem:[#allocation37_spill] sm:$0xff] }
  0xc0   :  { %5201 = vst [vmem:[#allocation22_spill] sm:$0xff] %v3710_v11  ;;  %v687_v2 = vadd.f32 %v686_v59, %v539_v34  ;;  %v484_v7 = vmul.f32 %v3702_v20, %v3702_v20  ;;  %v708_v55 = vadd.f32 %v476_v12, %v472_v45  ;;  %v551_v3 = vmul.f32 %v3698_v41, %v3698_v41 }
  0xc1   :  { %5203 = vst [vmem:[#allocation53_spill] sm:$0xff] %v3716_v31  ;;  %v665_v50 = vrot.slane %v664_v1, 4  ;;  %v555_v59 = vmul.f32 %v3710_v11, %v3710_v11  ;;  %v3751_v17 = vsub.f32 %v5212_v16, %v3644_v22  ;;  %v488_v49 = vmul.f32 %v3724_v35, %v3724_v35 }
  0xc2   :  { %5205 = vst [vmem:[#allocation25_spill] sm:$0xff] %v3720_v48  ;;  %v688_v34 = vadd.f32 %v687_v2, %v543_v57  ;;  %v709_v38 = vadd.f32 %v708_v55, %v480_v4  ;;  %v559_v45 = vmul.f32 %v3716_v31, %v3716_v31  ;;  %vm759_vm1 = vweird.f32 %v3665_v27  ;;  %v5214_v57 = vld [vmem:[#allocation40_spill] sm:$0xff] }
  0xc3   :  { %5207 = vst [vmem:[#allocation59_spill] sm:$0xff] %v3724_v35  ;;  %v2644_v25 = vpop.eup %2643  ;;  %v666_v12 = vadd.f32 %v665_v50, %v664_v1  ;;  %v3760_v2 = vsub.f32 %v5214_v57, %v3644_v22  ;;  %v492_v16 = vmul.f32 %v3740_v29, %v3740_v29  ;;  %v5216_v50 = vld [vmem:[#allocation74_spill] sm:$0xff] }
  0xc4   :  { %5208 = vst [vmem:[#allocation28_spill] sm:$0xff] %v3730_v60  ;;  %v754_v40 = vmul.f32 %v2644_v25, %v3665_v27  ;;  %v689_v47 = vadd.f32 %v688_v34, %v547_v51  ;;  %v710_v11 = vadd.f32 %v709_v38, %v484_v7  ;;  %vm760_vm2 = vweird.f32 %v2644_v25  ;;  %v5218_v51 = vld [vmem:[#allocation43_spill] sm:$0xff]  ;;  %v5221_v7 = vld [vmem:[#allocation46_spill] sm:$0xff] }
  0xc5   :  { %5210 = vst [vmem:[#allocation63_spill] sm:$0xff] %v3736_v6  ;;  %v667_v35 = vrot.slane %v666_v12, 2  ;;  %v3766_v1 = vsub.f32 %v5216_v50, %v3417_v15  ;;  %v3770_v55 = vsub.f32 %v5218_v51, %v3644_v22  ;;  %v563_v38 = vmul.f32 %v3720_v48, %v3720_v48  ;;  %vm761_vm3 = vmor %vm759_vm1, %vm760_vm2 }
  0xc6   :  { %5213 = vst [vmem:[#allocation66_spill] sm:$0xff] %v3751_v17  ;;  %v755_v20 = vmul.f32 %v2644_v25, %v754_v40  ;;  %v690_v4 = vadd.f32 %v689_v47, %v551_v3  ;;  %v496_v40 = vmul.f32 %v3751_v17, %v3751_v17  ;;  %v711_v34 = vadd.f32 %v710_v11, %v488_v49  ;;  %v5219_v47 = vld [vmem:[#allocation78_spill] sm:$0xff] }
  0xc7   :  { %5215 = vst [vmem:[#allocation68_spill] sm:$0xff] %v3760_v2  ;;  %v668_v31 = vadd.f32 %v667_v35, %v666_v12  ;;  %v3780_v3 = vsub.f32 %v5219_v47, %v3417_v15  ;;  %v3784_v50 = vsub.f32 %v5221_v7, %v3644_v22  ;;  %v500_v11 = vmul.f32 %v3760_v2, %v3760_v2 }
  0xc8   :  { %v756_v41 = vmul.f32 0.5, %v755_v20  ;;  %5217 = vst [vmem:[#allocation31_spill] sm:$0xff] %v3766_v1  ;;  %v691_v20 = vadd.f32 %v690_v4, %v555_v59  ;;  %v567_v59 = vmul.f32 %v3730_v60, %v3730_v60  ;;  %v571_v27 = vmul.f32 %v3736_v6, %v3736_v6  ;;  %v5222_v4 = vld [vmem:[#allocation49_spill] sm:$0xff] }
  0xc9   :  { %5220 = vst [vmem:[#allocation72_spill] sm:$0xff] %v3780_v3  ;;  %v669_v49 = vrot.slane %v668_v31, 1  ;;  %v3794_v51 = vsub.f32 %v5222_v4, %v3644_v22  ;;  %v504_v47 = vmul.f32 %v3770_v55, %v3770_v55  ;;  %v5225_v6 = vld [vmem:[#allocation77_spill] sm:$0xff]  ;;  %v508_v4 = vmul.f32 %v3784_v50, %v3784_v50 }
  0xca   :  { %v757_v57 = vsub.f32 1.5, %v756_v41  ;;  %v712_v41 = vadd.f32 %v711_v34, %v492_v16  ;;  %v692_v12 = vadd.f32 %v691_v20, %v559_v45  ;;  %v5224_v45 = vld [vmem:[#allocation76_spill] sm:$0xff] }
  0xcb   :  { %v670_v16 = vadd.f32 %v669_v49, %v668_v31  ;;  %v5229_v49 = vld [vmem:[#allocation60_spill] sm:$0xff] }
  0xcc   :  { %v758_v35 = vmul.f32 %v2644_v25, %v757_v57  ;;  %v713_v7 = vadd.f32 %v712_v41, %v496_v40  ;;  %v693_v34 = vadd.f32 %v692_v12, %v563_v38  ;;  %v5223_v57 = vld [vmem:[#allocation54_spill] sm:$0xff]  ;;  %v575_v38 = vmul.f32 %v3766_v1, %v3766_v1 }
  0xcd   :  { %v3802_v2 = vsub.f32 %v5223_v57, %v3644_v22  ;;  %v746_v40 = vmul.f32 %v670_v16, %v3101_v36  ;;  %v3821_v12 = vsub.f32 %v5229_v49, %v3644_v22  ;;  %v3827_v16 = vsub.f32 %v3161_v8, %v3417_v15 }
  0xce   :  { %v3798_v48 = vsel %vm761_vm3, %v2644_v25, %v758_v35  ;;  %v714_v17 = vadd.f32 %v713_v7, %v500_v11  ;;  %v5226_v25 = vld [vmem:[#allocation82_spill] sm:$0xff]  ;;  %v694_v41 = vadd.f32 %v693_v34, %v567_v59  ;;  %v579_v57 = vmul.f32 %v3780_v3, %v3780_v3 }
  0xcf   :  { %v793_v20 = vmul.f32 %v3798_v48, %v5224_v45  ;;  %v797_v60 = vmul.f32 %v3798_v48, %v5225_v6  ;;  %v3813_v31 = vsub.f32 %v5226_v25, %v3417_v15  ;;  %v512_v6 = vmul.f32 %v3794_v51, %v3794_v51  ;;  %5230 = vst [vmem:[#allocation40_spill] sm:$0xff] %v3827_v16 }
  0xd0   :  { %v715_v11 = vadd.f32 %v714_v17, %v504_v47  ;;  %v750_v7 = vadd.f32 1e-05, %v746_v40  ;;  %v695_v45 = vadd.f32 %v694_v41, %v571_v27  ;;  %v516_v34 = vmul.f32 %v3802_v2, %v3802_v2  ;;  %v5233_v27 = vld [vmem:[#allocation67_spill] sm:$0xff] }
  0xd1   :  { %5227 = vst [vmem:[#allocation34_spill] sm:$0xff] %v3813_v31  ;;  %v3817_v35 = vpack.c.bf16 %v797_v60, %v793_v20  ;;  %v5231_v60 = vld [vmem:[#allocation64_spill] sm:$0xff]  ;;  %v3840_v17 = vsub.f32 %v3179_v42, %v3417_v15  ;;  %v583_v8 = vmul.f32 %v3813_v31, %v3813_v31  ;;  %v3846_v40 = vsub.f32 %v5233_v27, %v3644_v22  ;;  %v5238_v31 = vld [vmem:[#allocation75_spill] sm:$0xff] }
  0xd2   :  { %v3834_v59 = vsub.f32 %v5231_v60, %v3644_v22  ;;  %v716_v20 = vadd.f32 %v715_v11, %v508_v4  ;;  %2645 = vrsqrt.f32 %v750_v7  ;;  %v696_v47 = vadd.f32 %v695_v45, %v575_v38  ;;  %v5235_v11 = vld [vmem:[#allocation69_spill] sm:$0xff] }
  0xd3   :  { %5228 = vst [vmem:[#allocation37_spill] sm:$0xff] %v3817_v35  ;;  %1383 = vmatmul.bf16.vlgmr.msra.gmra.mxu0 %v3817_v35  ;;  %v520_v25 = vmul.f32 %v3821_v12, %v3821_v12  ;;  %v3852_v4 = vsub.f32 %v3196_v30, %v3417_v15  ;;  %v587_v42 = vmul.f32 %v3827_v16, %v3827_v16  ;;  %v5237_v16 = vld [vmem:[#allocation73_spill] sm:$0xff]  ;;  %vm769_vm4 = vweird.f32 %v750_v7 }
  0xd4   :  { %5232 = vst [vmem:[#allocation74_spill] sm:$0xff] %v3840_v17  ;;  %v717_v41 = vadd.f32 %v716_v20, %v512_v6  ;;  %v697_v49 = vadd.f32 %v696_v47, %v579_v57  ;;  %v3858_v60 = vsub.f32 %v5235_v11, %v3644_v22  ;;  %v524_v38 = vmul.f32 %v3834_v59, %v3834_v59  ;;  %v5236_v20 = vld [vmem:[#allocation71_spill] sm:$0xff] }
  0xd5   :  { %5234 = vst [vmem:[#allocation43_spill] sm:$0xff] %v3852_v4  ;;  %v591_v27 = vmul.f32 %v3840_v17, %v3840_v17  ;;  %v3866_v30 = vsub.f32 %v5236_v20, %v3644_v22  ;;  %v528_v15 = vmul.f32 %v3846_v40, %v3846_v40  ;;  %v595_v11 = vmul.f32 %v3852_v4, %v3852_v4 }
  0xd6   :  { %v718_v45 = vadd.f32 %v717_v41, %v516_v34  ;;  %v698_v6 = vadd.f32 %v697_v49, %v583_v8  ;;  %v3874_v34 = vsub.f32 %v5237_v16, %v3644_v22  ;;  %v532_v8 = vmul.f32 %v3858_v60, %v3858_v60 }
  0xd7   :  { %v3880_v3 = vsub.f32 %v5238_v31, %v3644_v22  ;;  %v5240_v31 = vld [vmem:[#allocation83_spill] sm:$0xff] }
  0xd8   :  { %v719_v57 = vadd.f32 %v718_v45, %v520_v25  ;;  %v2646_v47 = vpop.eup %2645  ;;  %v699_v35 = vadd.f32 %v698_v6, %v587_v42  ;;  %v536_v25 = vmul.f32 %v3866_v30, %v3866_v30  ;;  %v5239_v6 = vld [vmem:[#allocation79_spill] sm:$0xff]  ;;  %v540_v4 = vmul.f32 %v3874_v34, %v3874_v34 }
  0xd9   :  { %v764_v41 = vmul.f32 %v2646_v47, %v750_v7  ;;  %v3886_v16 = vsub.f32 %v5239_v6, %v3644_v22  ;;  %vm770_vm5 = vweird.f32 %v2646_v47 }
  0xda   :  { %v720_v49 = vadd.f32 %v719_v57, %v524_v38  ;;  %v700_v20 = vadd.f32 %v699_v35, %v591_v27  ;;  %v3892_v57 = vsub.f32 %v5240_v31, %v3644_v22  ;;  %vm771_vm6 = vmor %vm769_vm4, %vm770_vm5  ;;  %v3924_v31 = vsub.f32 %v3218_v23, %v3644_v22 }
  0xdb   :  { %v765_v17 = vmul.f32 %v2646_v47, %v764_v41  ;;  %v548_v7 = vmul.f32 %v3886_v16, %v3886_v16  ;;  %v3938_v23 = vsub.f32 %v3274_v13, %v3644_v22  ;;  %vm2285_vm5 = vcmask 1040384  }
  0xdc   :  { %v721_v45 = vadd.f32 %v720_v49, %v528_v15  ;;  %v701_v42 = vadd.f32 %v700_v20, %v595_v11  ;;  %v544_v15 = vmul.f32 %v3880_v3, %v3880_v3  ;;  %v3898_v20 = vsub.f32 %v3163_v32, %v3644_v22 }
  0xdd   :  { %v766_v1 = vmul.f32 0.5, %v765_v17  ;;  %v576_v13 = vmul.f32 %v3938_v23, %v3938_v23 }
  0xde   :  { %v722_v35 = vadd.f32 %v721_v45, %v532_v8  ;;  %v702_v38 = vrot.slane %v701_v42, 4  ;;  %v3906_v45 = vsub.f32 %v3181_v58, %v3644_v22 }
  0xdf   :  { %v767_v27 = vsub.f32 1.5, %v766_v1 }
  0xe0   :  { %v723_v11 = vadd.f32 %v722_v35, %v536_v25  ;;  %v703_v41 = vadd.f32 %v702_v38, %v701_v42  ;;  %v552_v25 = vmul.f32 %v3892_v57, %v3892_v57 }
  0xe1   :  { %v768_v49 = vmul.f32 %v2646_v47, %v767_v27 }
  0xe2   :  { %v724_v17 = vadd.f32 %v723_v11, %v540_v4  ;;  %v704_v1 = vrot.slane %v703_v41, 2  ;;  %v3916_v4 = vsub.f32 %v3199_v54, %v3644_v22  ;;  %v3931_v54 = vsub.f32 %v3245_v46, %v3644_v22 }
  0xe3   :  { %v3902_v8 = vsel %vm771_vm6, %v2646_v47, %v768_v49  ;;  %v556_v47 = vmul.f32 %v3898_v20, %v3898_v20 }
  0xe4   :  { %v725_v42 = vadd.f32 %v724_v17, %v544_v15  ;;  %v794_v6 = vmul.f32 %v3902_v8, %v3228_v62  ;;  %v798_v32 = vmul.f32 %v3902_v8, %v3232_v28  ;;  %v705_v35 = vadd.f32 %v704_v1, %v703_v41 }
  0xe5   :  { %v560_v62 = vmul.f32 %v3906_v45, %v3906_v45  ;;  %v564_v11 = vmul.f32 %v3916_v4, %v3916_v4  ;;  %v572_v46 = vmul.f32 %v3931_v54, %v3931_v54 }
  0xe6   :  { %v726_v58 = vadd.f32 %v725_v42, %v548_v7  ;;  %v3920_v38 = vpack.c.bf16 %v798_v32, %v794_v6  ;;  %v706_v27 = vrot.slane %v705_v35, 1  ;;  %v568_v7 = vmul.f32 %v3924_v31, %v3924_v31 }
  0xe7   :  { %v3950_v6 = vsub.f32 %v3328_v56, %v3644_v22 }
  0xe8   :  { %v727_v28 = vadd.f32 %v726_v58, %v552_v25  ;;  %1472 = vmatmul.bf16.vlgmr.msra.gmra.mxu1 %v3920_v38  ;;  %v707_v15 = vadd.f32 %v706_v27, %v705_v35  ;;  %v3944_v25 = vsub.f32 %v3301_v21, %v3644_v22  ;;  %v3956_v35 = vsub.f32 %v3363_v33, %v3644_v22 }
  0xe9   :  { %v3962_v58 = vsub.f32 %v3398_v19, %v3644_v22  ;;  %v584_v56 = vmul.f32 %v3950_v6, %v3950_v6 }
  0xea   :  { %v728_v41 = vadd.f32 %v727_v28, %v556_v47  ;;  %v747_v49 = vmul.f32 %v707_v15, %v3101_v36  ;;  %v580_v21 = vmul.f32 %v3944_v25, %v3944_v25  ;;  %v3968_v28 = vsub.f32 %v3436_v10, %v3644_v22 }
  0xeb   :  { %v588_v33 = vmul.f32 %v3956_v35, %v3956_v35 }
  0xec   :  { %v729_v17 = vadd.f32 %v728_v41, %v560_v62  ;;  %v751_v1 = vadd.f32 1e-05, %v747_v49  ;;  %v592_v49 = vmul.f32 %v3962_v58, %v3962_v58 }
  0xee   :  { %v730_v42 = vadd.f32 %v729_v17, %v564_v11  ;;  %2647 = vrsqrt.f32 %v751_v1  ;;  %vm779_vm7 = vweird.f32 %v751_v1 }
  0xf0   :  { %v731_v32 = vadd.f32 %v730_v42, %v568_v7  ;;  %v596_v7 = vmul.f32 %v3968_v28, %v3968_v28 }
  0xf2   :  { %v732_v47 = vadd.f32 %v731_v32, %v572_v46 }
  0xf4   :  { %v733_v27 = vadd.f32 %v732_v47, %v576_v13  ;;  %v2648_v62 = vpop.eup %2647 }
  0xf5   :  { %v774_v15 = vmul.f32 %v2648_v62, %v751_v1  ;;  %vm780_vm8 = vweird.f32 %v2648_v62 }
  0xf6   :  { %v734_v11 = vadd.f32 %v733_v27, %v580_v21  ;;  %vm781_vm9 = vmor %vm779_vm7, %vm780_vm8 }
  0xf7   :  { %v775_v41 = vmul.f32 %v2648_v62, %v774_v15 }
  0xf8   :  { %v735_v19 = vadd.f32 %v734_v11, %v584_v56  ;;  %v5241_v11 = vld [vmem:[#allocation80_spill] sm:$0xff] }
  0xf9   :  { %v776_v17 = vmul.f32 0.5, %v775_v41  ;;  %v801_v41 = vmul.f32 %v3798_v48, %v5241_v11 }
  0xfa   :  { %v736_v46 = vadd.f32 %v735_v19, %v588_v33  ;;  %v802_v19 = vmul.f32 %v3902_v8, %v3243_v0 }
  0xfb   :  { %v777_v42 = vsub.f32 1.5, %v776_v17 }
  0xfc   :  { %v737_v10 = vadd.f32 %v736_v46, %v592_v49  ;;  %v5242_v49 = vld [vmem:[#allocation81_spill] sm:$0xff] }
  0xfd   :  { %v778_v22 = vmul.f32 %v2648_v62, %v777_v42 }
  0xfe   :  { %v738_v13 = vadd.f32 %v737_v10, %v596_v7 }
  0xff   :  { %v3976_v32 = vsel %vm781_vm9, %v2648_v62, %v778_v22  ;;  %v805_v62 = vmul.f32 %v3798_v48, %v5242_v49 }
 0x100   :  { %v739_v21 = vrot.slane %v738_v13, 4  ;;  %v795_v47 = vmul.f32 %v3976_v32, %v3450_v44  ;;  %v799_v56 = vmul.f32 %v3976_v32, %v3454_v39  ;;  %v806_v44 = vmul.f32 %v3902_v8, %v3255_v37 }
 0x101   :  { %v3993_v7 = vpack.c.bf16 %v805_v62, %v801_v41  ;;  %v803_v10 = vmul.f32 %v3976_v32, %v3469_v5  ;;  %v807_v0 = vmul.f32 %v3976_v32, %v3481_v9  ;;  %v814_v5 = vmul.f32 %v3902_v8, %v3284_v14 }
 0x102   :  { %v740_v27 = vadd.f32 %v739_v21, %v738_v13  ;;  %v3982_v15 = vpack.c.bf16 %v799_v56, %v795_v47  ;;  %v3995_v17 = vpack.c.bf16 %v806_v44, %v802_v19  ;;  %v809_v21 = vmul.f32 %v3798_v48, %v3149_v18  ;;  %v5243_v47 = vld [vmem:[#allocation84_spill] sm:$0xff] }
 0x103   :  { %1388 = vmatmul.bf16.gmra.mxu0 %v3993_v7  ;;  %v4004_v37 = vpack.c.bf16 %v807_v0, %v803_v10  ;;  %v813_v56 = vmul.f32 %v3798_v48, %v5243_v47  ;;  %v815_v14 = vmul.f32 %v3976_v32, %v3511_v43  ;;  %v821_v43 = vmul.f32 %v3798_v48, %v3175_v61  ;;  %v5245_v10 = vld [vmem:[#allocation97_spill] sm:$0xff] }
 0x104   :  { %v741_v1 = vrot.slane %v740_v27, 2  ;;  %1561 = vmatmul.bf16.vlgmr.msra.gmra.mxu2 %v3982_v15  ;;  %1477 = vmatmul.bf16.gmra.mxu1 %v3995_v17 }
 0x106   :  { %v742_v33 = vadd.f32 %v741_v1, %v740_v27  ;;  %v4015_v27 = vpack.c.bf16 %v813_v56, %v809_v21  ;;  %v5248_v21 = vld [vmem:[#allocation47_spill] sm:$0xff]  ;;  %v5249_v56 = vld [vmem:[#allocation21_spill] sm:$0xff] }
 0x108   :  { %v743_v39 = vrot.slane %v742_v33, 1 }
 0x10a   :  { %v744_v46 = vadd.f32 %v743_v39, %v742_v33 }
 0x10c   :  { %v748_v42 = vmul.f32 %v744_v46, %v3101_v36  ;;  %v810_v36 = vmul.f32 %v3902_v8, %v3270_v52  ;;  %v811_v52 = vmul.f32 %v3976_v32, %v3497_v63  ;;  %v817_v63 = vmul.f32 %v3798_v48, %v3167_v24  ;;  %v5244_v46 = vld [vmem:[#allocation95_spill] sm:$0xff] }
 0x10e   :  { %v752_v22 = vadd.f32 1e-05, %v748_v42  ;;  %v4017_v1 = vpack.c.bf16 %v814_v5, %v810_v36  ;;  %v4027_v62 = vpack.c.bf16 %v815_v14, %v811_v52  ;;  %v818_v42 = vmul.f32 %v3902_v8, %v5244_v46  ;;  %v5252_v14 = vld [vmem:[#allocation99_spill] sm:$0xff]  ;;  %v5254_v46 = vld [vmem:[#allocation17_spill] sm:$0xff] }
 0x10f   :  { %v4045_v0 = vpack.c.bf16 %v821_v43, %v817_v63 }
 0x110   :  { %2649 = vrsqrt.f32 %v752_v22  ;;  %vm789_vm10 = vweird.f32 %v752_v22 }
 0x113   :  { %1393 = vmatmul.bf16.gmra.mxu0 %v4015_v27 }
 0x114   :  { %1566 = vmatmul.bf16.gmra.mxu2 %v4004_v37  ;;  %1482 = vmatmul.bf16.gmra.mxu1 %v4017_v1 }
 0x116   :  { %v2650_v13 = vpop.eup %2649 }
 0x117   :  { %v784_v9 = vmul.f32 %v2650_v13, %v752_v22  ;;  %vm790_vm11 = vweird.f32 %v2650_v13  ;;  %v5246_v22 = vld [vmem:[#allocation15_spill] sm:$0xff] }
 0x118   :  { %vm791_vm12 = vmor %vm789_vm10, %vm790_vm11  ;;  %v819_v24 = vmul.f32 %v3976_v32, %v5246_v22  ;;  %v5256_v22 = vld [vmem:[#allocation59_spill] sm:$0xff] }
 0x119   :  { %v785_v33 = vmul.f32 %v2650_v13, %v784_v9 }
 0x11b   :  { %v786_v11 = vmul.f32 0.5, %v785_v33  ;;  %v5250_v33 = vld [vmem:[#allocation85_spill] sm:$0xff] }
 0x11d   :  { %v787_v18 = vsub.f32 1.5, %v786_v11  ;;  %v825_v11 = vmul.f32 %v3798_v48, %v5250_v33 }
 0x11f   :  { %v788_v41 = vmul.f32 %v2650_v13, %v787_v18  ;;  %v5251_v18 = vld [vmem:[#allocation86_spill] sm:$0xff] }
 0x120   :  { %v829_v52 = vmul.f32 %v3798_v48, %v5251_v18 }
 0x121   :  { %v4025_v49 = vsel %vm791_vm12, %v2650_v13, %v788_v41  ;;  %v5247_v13 = vld [vmem:[#allocation16_spill] sm:$0xff]  ;;  %v826_v41 = vmul.f32 %v3902_v8, %v5252_v14 }
 0x122   :  { %v796_v19 = vmul.f32 %v4025_v49, %v3673_v53  ;;  %v800_v44 = vmul.f32 %v4025_v49, %v3677_v26  ;;  %v822_v53 = vmul.f32 %v3902_v8, %v5245_v10  ;;  %v823_v61 = vmul.f32 %v3976_v32, %v5247_v13  ;;  %v5255_v10 = vld [vmem:[#allocation18_spill] sm:$0xff] }
 0x123   :  { %1398 = vmatmul.bf16.gmra.mxu0 %v4045_v0  ;;  %v804_v47 = vmul.f32 %v4025_v49, %v5248_v21  ;;  %v808_v36 = vmul.f32 %v4025_v49, %v5249_v56  ;;  %v4073_v63 = vpack.c.bf16 %v829_v52, %v825_v11  ;;  %v816_v13 = vmul.f32 %v4025_v49, %v3740_v29  ;;  %v5259_v11 = vld [vmem:[#allocation105_spill] sm:$0xff]  ;;  %v5260_v52 = vld [vmem:[#allocation108_spill] sm:$0xff] }
 0x124   :  { %v4033_v39 = vpack.c.bf16 %v800_v44, %v796_v19  ;;  %1571 = vmatmul.bf16.gmra.mxu2 %v4027_v62  ;;  %v4047_v26 = vpack.c.bf16 %v822_v53, %v818_v42  ;;  %v4059_v5 = vpack.c.bf16 %v823_v61, %v819_v24  ;;  %v5253_v19 = vld [vmem:[#allocation102_spill] sm:$0xff]  ;;  %v827_v42 = vmul.f32 %v3976_v32, %v5254_v46  ;;  %v5264_v46 = vld [vmem:[#allocation20_spill] sm:$0xff] }
 0x125   :  { %v4061_v9 = vpack.c.bf16 %v808_v36, %v804_v47  ;;  %v830_v44 = vmul.f32 %v3902_v8, %v5253_v19  ;;  %v831_v53 = vmul.f32 %v3976_v32, %v5255_v10  ;;  %v812_v24 = vmul.f32 %v4025_v49, %v5256_v22  ;;  %v5257_v47 = vld [vmem:[#allocation87_spill] sm:$0xff]  ;;  %v5258_v36 = vld [vmem:[#allocation88_spill] sm:$0xff]  ;;  %v5265_v10 = vld [vmem:[#allocation66_spill] sm:$0xff] }
 0x126   :  { %1650 = vmatmul.bf16.vlgmr.msra.gmra.mxu3 %v4033_v39  ;;  %1487 = vmatmul.bf16.gmra.mxu1 %v4047_v26  ;;  %v833_v56 = vmul.f32 %v3798_v48, %v5257_v47  ;;  %v837_v33 = vmul.f32 %v3798_v48, %v5258_v36  ;;  %v834_v18 = vmul.f32 %v3902_v8, %v5259_v11  ;;  %v5263_v19 = vld [vmem:[#allocation19_spill] sm:$0xff]  ;;  %v5266_v22 = vld [vmem:[#allocation68_spill] sm:$0xff] }
 0x127   :  { %v4075_v43 = vpack.c.bf16 %v830_v44, %v826_v41  ;;  %v4087_v61 = vpack.c.bf16 %v831_v53, %v827_v42  ;;  %v4089_v21 = vpack.c.bf16 %v816_v13, %v812_v24  ;;  %v838_v29 = vmul.f32 %v3902_v8, %v5260_v52 }
 0x128   :  { %v4101_v14 = vpack.c.bf16 %v837_v33, %v833_v56  ;;  %v835_v44 = vmul.f32 %v3976_v32, %v5263_v19  ;;  %v839_v42 = vmul.f32 %v3976_v32, %v5264_v46  ;;  %v820_v53 = vmul.f32 %v4025_v49, %v5265_v10  ;;  %v5269_v56 = vld [vmem:[#allocation89_spill] sm:$0xff]  ;;  %v5270_v33 = vld [vmem:[#allocation90_spill] sm:$0xff] }
 0x129   :  { %v4103_v41 = vpack.c.bf16 %v838_v29, %v834_v18  ;;  %v824_v24 = vmul.f32 %v4025_v49, %v5266_v22  ;;  %v841_v36 = vmul.f32 %v3798_v48, %v5269_v56  ;;  %v845_v11 = vmul.f32 %v3798_v48, %v5270_v33  ;;  %v5271_v18 = vld [vmem:[#allocation111_spill] sm:$0xff]  ;;  %v5272_v29 = vld [vmem:[#allocation24_spill] sm:$0xff] }
 0x12a   :  { %5261 = vst [vmem:[#allocation78_spill] sm:$0xff] %v4101_v14  ;;  %v4115_v13 = vpack.c.bf16 %v839_v42, %v835_v44  ;;  %v842_v52 = vmul.f32 %v3902_v8, %v5271_v18  ;;  %v846_v19 = vmul.f32 %v3902_v8, %v5272_v29  ;;  %v5275_v42 = vld [vmem:[#allocation23_spill] sm:$0xff]  ;;  %v832_v56 = vmul.f32 %v4025_v49, %v3784_v50 }
 0x12b   :  { %5262 = vst [vmem:[#allocation46_spill] sm:$0xff] %v4103_v41  ;;  %v4117_v47 = vpack.c.bf16 %v824_v24, %v820_v53  ;;  %v4129_v44 = vpack.c.bf16 %v845_v11, %v841_v36  ;;  %v843_v10 = vmul.f32 %v3976_v32, %v5275_v42  ;;  %v5276_v53 = vld [vmem:[#allocation26_spill] sm:$0xff]  ;;  %v828_v24 = vmul.f32 %v4025_v49, %v3770_v55  ;;  %v5279_v11 = vld [vmem:[#allocation91_spill] sm:$0xff] }
 0x12c   :  { %5267 = vst [vmem:[#allocation49_spill] sm:$0xff] %v4115_v13  ;;  %v4131_v46 = vpack.c.bf16 %v846_v19, %v842_v52  ;;  %v847_v22 = vmul.f32 %v3976_v32, %v5276_v53  ;;  %v849_v18 = vmul.f32 %v3798_v48, %v5279_v11  ;;  %v5280_v52 = vld [vmem:[#allocation92_spill] sm:$0xff]  ;;  %v5281_v19 = vld [vmem:[#allocation27_spill] sm:$0xff]  ;;  %v5282_v42 = vld [vmem:[#allocation30_spill] sm:$0xff] }
 0x12d   :  { %5268 = vst [vmem:[#allocation54_spill] sm:$0xff] %v4117_v47  ;;  %v4145_v33 = vpack.c.bf16 %v832_v56, %v828_v24  ;;  %v853_v29 = vmul.f32 %v3798_v48, %v5280_v52  ;;  %v850_v55 = vmul.f32 %v3902_v8, %v5281_v19  ;;  %v854_v50 = vmul.f32 %v3902_v8, %v5282_v42  ;;  %v5286_v56 = vld [vmem:[#allocation32_spill] sm:$0xff]  ;;  %v5289_v42 = vld [vmem:[#allocation93_spill] sm:$0xff] }
 0x12e   :  { %5273 = vst [vmem:[#allocation76_spill] sm:$0xff] %v4129_v44  ;;  %v4143_v36 = vpack.c.bf16 %v847_v22, %v843_v10  ;;  %v5285_v22 = vld [vmem:[#allocation29_spill] sm:$0xff]  ;;  %v855_v11 = vmul.f32 %v3976_v32, %v5286_v56  ;;  %v836_v52 = vmul.f32 %v4025_v49, %v3794_v51  ;;  %v840_v19 = vmul.f32 %v4025_v49, %v3802_v2  ;;  %v5291_v56 = vld [vmem:[#allocation12_spill] sm:$0xff] }
 0x12f   :  { %5274 = vst [vmem:[#allocation77_spill] sm:$0xff] %v4131_v46  ;;  %v4157_v10 = vpack.c.bf16 %v853_v29, %v849_v18  ;;  %v4159_v53 = vpack.c.bf16 %v854_v50, %v850_v55  ;;  %v851_v24 = vmul.f32 %v3976_v32, %v5285_v22  ;;  %v1049_v55 = vld [vmem:[%s4813_s2] sm:$0x3]  ;;  %v857_v50 = vmul.f32 %v3798_v48, %v5289_v42 }
 0x130   :  { %5277 = vst [vmem:[#allocation82_spill] sm:$0xff] %v4143_v36  ;;  %v4173_v29 = vpack.c.bf16 %v840_v19, %v836_v52  ;;  %v5290_v22 = vld [vmem:[#allocation94_spill] sm:$0xff]  ;;  %v858_v2 = vmul.f32 %v3902_v8, %v5291_v56  ;;  %v4188_v52 = vperm.slane %v1049_v55, 0 }
 0x131   :  { %5278 = vst [vmem:[#allocation60_spill] sm:$0xff] %v4145_v33  ;;  %v4171_v18 = vpack.c.bf16 %v855_v11, %v851_v24  ;;  %v861_v51 = vmul.f32 %v3798_v48, %v5290_v22  ;;  %v5292_v24 = vld [vmem:[#allocation13_spill] sm:$0xff]  ;;  %v5295_v22 = vld [vmem:[#allocation35_spill] sm:$0xff] }
 0x132   :  { %5283 = vst [vmem:[#allocation64_spill] sm:$0xff] %v4157_v10  ;;  %v862_v11 = vmul.f32 %v3902_v8, %v5292_v24  ;;  %v859_v56 = vmul.f32 %v3976_v32, %v5295_v22 }
 0x133   :  { %1403 = vmatmul.bf16.gmra.mxu0 %v4073_v63  ;;  %5284 = vst [vmem:[#allocation67_spill] sm:$0xff] %v4159_v53 }
 0x134   :  { %1576 = vmatmul.bf16.gmra.mxu2 %v4059_v5  ;;  %5287 = vst [vmem:[#allocation69_spill] sm:$0xff] %v4171_v18 }
 0x135   :  { %5288 = vst [vmem:[#allocation71_spill] sm:$0xff] %v4173_v29 }
 0x136   :  { %1655 = vmatmul.bf16.gmra.mxu3 %v4061_v9  ;;  %1492 = vmatmul.bf16.gmra.mxu1 %v4075_v43 }
 0x143   :  { %1408 = vmatmul.bf16.gmra.mxu0 %v4101_v14 }
 0x144   :  { %1581 = vmatmul.bf16.gmra.mxu2 %v4087_v61 }
 0x146   :  { %1660 = vmatmul.bf16.gmra.mxu3 %v4089_v21  ;;  %1497 = vmatmul.bf16.gmra.mxu1 %v4103_v41 }
 0x150   :  { %v1384_v19 = vpop.f32.mrf.mxu0 }
 0x153   :  { %1413 = vmatmul.bf16.gmra.mxu0 %v4129_v44 }
 0x154   :  { %1586 = vmatmul.bf16.gmra.mxu2 %v4115_v13  ;;  %v2347_v13 = vld [vmem:[#allocation6 + $0x48] sm:$0xf0] }
 0x156   :  { %1665 = vmatmul.bf16.gmra.mxu3 %v4117_v47  ;;  %1502 = vmatmul.bf16.gmra.mxu1 %v4131_v46 }
 0x163   :  { %1418 = vmatmul.bf16.gmra.mxu0 %v4157_v10  ;;  %v1385_v10 = vadd.f32 %v1384_v19, %v4188_v52 }
 0x164   :  { %1591 = vmatmul.bf16.gmra.mxu2 %v4143_v36  ;;  %v5296_v36 = vld [vmem:[#allocation70_spill] sm:$0xff] }
 0x165   :  { %v863_v55 = vmul.f32 %v3976_v32, %v5296_v36 }
 0x166   :  { %1670 = vmatmul.bf16.gmra.mxu3 %v4145_v33  ;;  %1507 = vmatmul.bf16.gmra.mxu1 %v4159_v53  ;;  %v4192_v53 = vpack.c.bf16 %v862_v11, %v858_v2  ;;  %v1386_v11 = vpop.f32.mrf.mxu0 }
 0x167   :  { %v4205_v2 = vpack.c.bf16 %v863_v55, %v859_v56  ;;  %v1387_v36 = vadd.f32 %v1386_v11, %v4188_v52 }
 0x168   :  { %5294 = vst [vmem:[#allocation75_spill] sm:$0xff] %v4192_v53 }
 0x169   :  { %5297 = vst [vmem:[#allocation79_spill] sm:$0xff] %v4205_v2 }
 0x174   :  { %1596 = vmatmul.bf16.gmra.mxu2 %v4171_v18  ;;  %v4190_v18 = vpack.c.bf16 %v861_v51, %v857_v50  ;;  %v844_v50 = vmul.f32 %v4025_v49, %v3821_v12  ;;  %v848_v51 = vmul.f32 %v4025_v49, %v3834_v59  ;;  %v852_v12 = vmul.f32 %v4025_v49, %v3846_v40 }
 0x175   :  { %v856_v59 = vmul.f32 %v4025_v49, %v3858_v60  ;;  %v5304_v60 = vld [vmem:[#allocation41_spill] sm:$0xff] }
 0x176   :  { %1675 = vmatmul.bf16.gmra.mxu3 %v4173_v29  ;;  %5293 = vst [vmem:[#allocation73_spill] sm:$0xff] %v4190_v18  ;;  %v1473_v29 = vpop.f32.mrf.mxu1  ;;  %1423 = vmatmul.bf16.gmra.mxu0 %v4190_v18  ;;  %v4207_v24 = vpack.c.bf16 %v848_v51, %v844_v50  ;;  %v5300_v51 = vld [vmem:[#allocation96_spill] sm:$0xff]  ;;  %v5303_v18 = vld [vmem:[#allocation14_spill] sm:$0xff] }
 0x177   :  { %v1474_v42 = vadd.f32 %v1473_v29, %v1385_v10  ;;  %1512 = vmatmul.bf16.gmra.mxu1 %v4192_v53  ;;  %v4216_v55 = vpack.c.bf16 %v856_v59, %v852_v12  ;;  %v5301_v53 = vld [vmem:[#allocation98_spill] sm:$0xff]  ;;  %v870_v40 = vmul.f32 %v3902_v8, %v5303_v18 }
 0x178   :  { %5298 = vst [vmem:[#allocation83_spill] sm:$0xff] %v4207_v24 }
 0x179   :  { %5299 = vst [vmem:[#allocation80_spill] sm:$0xff] %v4216_v55 }
 0x17e   :  { %v1475_v19 = vpop.f32.mrf.mxu1 }
 0x17f   :  { %v1476_v22 = vadd.f32 %v1475_v19, %v1387_v36  ;;  %v867_v19 = vmul.f32 %v3976_v32, %v5304_v60  ;;  %v5305_v36 = vld [vmem:[#allocation44_spill] sm:$0xff] }
 0x180   :  { %v871_v12 = vmul.f32 %v3976_v32, %v5305_v36 }
 0x184   :  { %1601 = vmatmul.bf16.gmra.mxu2 %v4205_v2  ;;  %v865_v2 = vmul.f32 %v3798_v48, %v5300_v51 }
 0x186   :  { %1680 = vmatmul.bf16.gmra.mxu3 %v4207_v24  ;;  %v1389_v24 = vpop.f32.mrf.mxu0  ;;  %v1478_v46 = vpop.f32.mrf.mxu1 }
 0x187   :  { %v1562_v10 = vpop.f32.mrf.mxu2  ;;  %v1390_v59 = vadd.f32 %v1389_v24, %v4188_v52 }
 0x188   :  { %v1563_v29 = vadd.f32 %v1562_v10, %v1474_v42  ;;  %v869_v42 = vmul.f32 %v3798_v48, %v5301_v53  ;;  %v5302_v10 = vld [vmem:[#allocation33_spill] sm:$0xff]  ;;  %v4235_v53 = vpack.c.bf16 %v871_v12, %v867_v19  ;;  %v5310_v12 = vld [vmem:[#allocation100_spill] sm:$0xff] }
 0x189   :  { %v866_v11 = vmul.f32 %v3902_v8, %v5302_v10  ;;  %v1479_v51 = vadd.f32 %v1478_v46, %v1390_v59  ;;  %v873_v59 = vmul.f32 %v3798_v48, %v5310_v12 }
 0x18a   :  { %5308 = vst [vmem:[#allocation95_spill] sm:$0xff] %v4235_v53 }
 0x18e   :  { %v1391_v60 = vpop.f32.mrf.mxu0  ;;  %v1480_v24 = vpop.f32.mrf.mxu1 }
 0x18f   :  { %v1564_v56 = vpop.f32.mrf.mxu2 }
 0x190   :  { %v1565_v50 = vadd.f32 %v1564_v56, %v1476_v22  ;;  %v4231_v22 = vpack.c.bf16 %v869_v42, %v865_v2  ;;  %v4233_v56 = vpack.c.bf16 %v870_v40, %v866_v11  ;;  %v1392_v2 = vadd.f32 %v1391_v60, %v4188_v52 }
 0x191   :  { %v860_v42 = vmul.f32 %v4025_v49, %v3866_v30  ;;  %v864_v11 = vmul.f32 %v4025_v49, %v3874_v34 }
 0x192   :  { %5306 = vst [vmem:[#allocation81_spill] sm:$0xff] %v4231_v22  ;;  %1428 = vmatmul.bf16.gmra.mxu0 %v4231_v22  ;;  %1517 = vmatmul.bf16.gmra.mxu1 %v4233_v56  ;;  %v1481_v46 = vadd.f32 %v1480_v24, %v1392_v2  ;;  %v5314_v24 = vld [vmem:[#allocation50_spill] sm:$0xff] }
 0x193   :  { %5307 = vst [vmem:[#allocation84_spill] sm:$0xff] %v4233_v56  ;;  %v4248_v19 = vpack.c.bf16 %v864_v11, %v860_v42  ;;  %v5313_v56 = vld [vmem:[#allocation39_spill] sm:$0xff]  ;;  %v875_v2 = vmul.f32 %v3976_v32, %v5314_v24  ;;  %v5315_v42 = vld [vmem:[#allocation22_spill] sm:$0xff] }
 0x194   :  { %1606 = vmatmul.bf16.gmra.mxu2 %v4235_v53  ;;  %v5312_v53 = vld [vmem:[#allocation36_spill] sm:$0xff]  ;;  %v878_v30 = vmul.f32 %v3902_v8, %v5313_v56  ;;  %v879_v11 = vmul.f32 %v3976_v32, %v5315_v42 }
 0x195   :  { %5309 = vst [vmem:[#allocation97_spill] sm:$0xff] %v4248_v19  ;;  %v874_v60 = vmul.f32 %v3902_v8, %v5312_v53 }
 0x196   :  { %1685 = vmatmul.bf16.gmra.mxu3 %v4216_v55  ;;  %v1394_v22 = vpop.f32.mrf.mxu0  ;;  %v1483_v34 = vpop.f32.mrf.mxu1 }
 0x197   :  { %v1567_v18 = vpop.f32.mrf.mxu2  ;;  %v4267_v12 = vpack.c.bf16 %v878_v30, %v874_v60  ;;  %v868_v30 = vmul.f32 %v4025_v49, %v3880_v3 }
 0x198   :  { %v4241_v10 = vadd.f32 %v1567_v18, %v1479_v51  ;;  %v5311_v51 = vld [vmem:[#allocation101_spill] sm:$0xff] }
 0x199   :  { %v877_v18 = vmul.f32 %v3798_v48, %v5311_v51  ;;  %5317 = vst [vmem:[#allocation16_spill] sm:$0xff] %v4267_v12  ;;  %v4269_v51 = vpack.c.bf16 %v879_v11, %v875_v2 }
 0x19b   :  { %5318 = vst [vmem:[#allocation47_spill] sm:$0xff] %v4269_v51 }
 0x19f   :  { %v1569_v40 = vpop.f32.mrf.mxu2 }
 0x1a0   :  { %v4250_v36 = vadd.f32 %v1569_v40, %v1481_v46  ;;  %v1395_v46 = vadd.f32 %v1394_v22, %v4188_v52  ;;  %v4265_v40 = vpack.c.bf16 %v877_v18, %v873_v59  ;;  %v1396_v59 = vpop.f32.mrf.mxu0  ;;  %v1485_v18 = vpop.f32.mrf.mxu1 }
 0x1a1   :  { %v1397_v60 = vadd.f32 %v1396_v59, %v4188_v52 }
 0x1a2   :  { %5316 = vst [vmem:[#allocation15_spill] sm:$0xff] %v4265_v40  ;;  %v1484_v53 = vadd.f32 %v1483_v34, %v1395_v46  ;;  %1433 = vmatmul.bf16.gmra.mxu0 %v4265_v40  ;;  %1522 = vmatmul.bf16.gmra.mxu1 %v4267_v12  ;;  %v872_v34 = vmul.f32 %v4025_v49, %v3886_v16  ;;  %v5322_v40 = vld [vmem:[#allocation42_spill] sm:$0xff]  ;;  %v5323_v16 = vld [vmem:[#allocation45_spill] sm:$0xff] }
 0x1a3   :  { %v1486_v2 = vadd.f32 %v1485_v18, %v1397_v60  ;;  %v882_v3 = vmul.f32 %v3902_v8, %v5322_v40  ;;  %v886_v18 = vmul.f32 %v3902_v8, %v5323_v16  ;;  %v5324_v60 = vld [vmem:[#allocation53_spill] sm:$0xff] }
 0x1a4   :  { %1611 = vmatmul.bf16.gmra.mxu2 %v4269_v51  ;;  %v4282_v12 = vpack.c.bf16 %v872_v34, %v868_v30  ;;  %v883_v30 = vmul.f32 %v3976_v32, %v5324_v60  ;;  %v5325_v34 = vld [vmem:[#allocation25_spill] sm:$0xff]  ;;  %v880_v60 = vmul.f32 %v4025_v49, %v3898_v20 }
 0x1a6   :  { %1690 = vmatmul.bf16.gmra.mxu3 %v4248_v19  ;;  %5319 = vst [vmem:[#allocation21_spill] sm:$0xff] %v4282_v12 }
 0x1a7   :  { %v1572_v56 = vpop.f32.mrf.mxu2 }
 0x1a8   :  { %v4275_v42 = vadd.f32 %v1572_v56, %v1484_v53  ;;  %v5320_v56 = vld [vmem:[#allocation103_spill] sm:$0xff]  ;;  %v1399_v19 = vpop.f32.mrf.mxu0  ;;  %v1488_v55 = vpop.f32.mrf.mxu1 }
 0x1a9   :  { %v1651_v24 = vpop.f32.mrf.mxu3 }
 0x1aa   :  { %v1652_v22 = vadd.f32 %v1651_v24, %v1563_v29  ;;  %v881_v29 = vmul.f32 %v3798_v48, %v5320_v56  ;;  %v5321_v24 = vld [vmem:[#allocation104_spill] sm:$0xff] }
 0x1ab   :  { %v885_v59 = vmul.f32 %v3798_v48, %v5321_v24  ;;  %v4301_v24 = vpack.c.bf16 %v886_v18, %v882_v3 }
 0x1ad   :  { %v4299_v56 = vpack.c.bf16 %v885_v59, %v881_v29  ;;  %5327 = vst [vmem:[#allocation86_spill] sm:$0xff] %v4301_v24 }
 0x1af   :  { %v1574_v11 = vpop.f32.mrf.mxu2  ;;  %5326 = vst [vmem:[#allocation85_spill] sm:$0xff] %v4299_v56 }
 0x1b0   :  { %v4284_v51 = vadd.f32 %v1574_v11, %v1486_v2  ;;  %v2087_v2 = vmax.f32 %v1652_v22, 0.0  ;;  %v1401_v59 = vpop.f32.mrf.mxu0  ;;  %v1490_v3 = vpop.f32.mrf.mxu1 }
 0x1b1   :  { %v1653_v46 = vpop.f32.mrf.mxu3  ;;  %v1402_v18 = vadd.f32 %v1401_v59, %v4188_v52  ;;  %v5333_v59 = vld [vmem:[#allocation48_spill] sm:$0xff] }
 0x1b2   :  { %v1654_v53 = vadd.f32 %v1653_v46, %v1565_v50  ;;  %v887_v50 = vmul.f32 %v3976_v32, %v5325_v34  ;;  %v1400_v46 = vadd.f32 %v1399_v19, %v4188_v52  ;;  %1438 = vmatmul.bf16.gmra.mxu0 %v4299_v56  ;;  %1527 = vmatmul.bf16.gmra.mxu1 %v4301_v24 }
 0x1b4   :  { %v2089_v11 = vmax.f32 %v1654_v53, 0.0  ;;  %v4303_v40 = vpack.c.bf16 %v887_v50, %v883_v30  ;;  %v1489_v44 = vadd.f32 %v1488_v55, %v1400_v46  ;;  %v876_v55 = vmul.f32 %v4025_v49, %v3892_v57 }
 0x1b5   :  { %v1491_v30 = vadd.f32 %v1490_v3, %v1402_v18  ;;  %v890_v57 = vmul.f32 %v3902_v8, %v5333_v59  ;;  %v5334_v3 = vld [vmem:[#allocation51_spill] sm:$0xff] }
 0x1b6   :  { %5328 = vst [vmem:[#allocation99_spill] sm:$0xff] %v4303_v40  ;;  %1695 = vmatmul.bf16.gmra.mxu3 %v4282_v12  ;;  %v4307_v16 = vpack.c.bf16 %v2089_v11, %v2087_v2  ;;  %1616 = vmatmul.bf16.gmra.mxu2 %v4303_v40  ;;  %v4319_v2 = vpack.c.bf16 %v880_v60, %v876_v55  ;;  %v5335_v55 = vld [vmem:[#allocation28_spill] sm:$0xff] }
 0x1b7   :  { %v1577_v22 = vpop.f32.mrf.mxu2  ;;  %v894_v18 = vmul.f32 %v3902_v8, %v5334_v3  ;;  %v891_v60 = vmul.f32 %v3976_v32, %v5335_v55  ;;  %v2615_v3 = vld [vmem:[#allocation6 + $0x174] sm:$0xf]  ;;  %v2499_v55 = vld [vmem:[#allocation6 + $0x178] sm:$0xf0] }
 0x1b8   :  { %5329 = vst [vmem:[#allocation102_spill] sm:$0xff] %v4307_v16  ;;  %v4311_v19 = vadd.f32 %v1577_v22, %v1489_v44  ;;  %v5332_v22 = vld [vmem:[#allocation107_spill] sm:$0xff]  ;;  %v1404_v40 = vpop.f32.mrf.mxu0  ;;  %v1493_v20 = vpop.f32.mrf.mxu1  ;;  %v2577_v16 = vld [vmem:[#allocation6 + $0x44] sm:$0xf] }
 0x1b9   :  { %v1656_v53 = vpop.f32.mrf.mxu3  ;;  %5330 = vst [vmem:[#allocation17_spill] sm:$0xff] %v4319_v2 }
 0x1ba   :  { %v1657_v29 = vadd.f32 %v1656_v53, %v4241_v10  ;;  %v5331_v10 = vld [vmem:[#allocation106_spill] sm:$0xff]  ;;  %v893_v53 = vmul.f32 %v3798_v48, %v5332_v22  ;;  %v4339_v22 = vpack.c.bf16 %v894_v18, %v890_v57 }
 0x1bb   :  { %v889_v46 = vmul.f32 %v3798_v48, %v5331_v10  ;;  %v1405_v10 = vadd.f32 %v1404_v40, %v4188_v52  ;;  %v2502_v40 = vor.u32 %v2615_v3, %v2499_v55  ;;  %v2583_v18 = vld [vmem:[#allocation6 + $0x74] sm:$0xf]  ;;  %v2563_v3 = vld [vmem:[#allocation6 + $0x1f8] sm:$0xf0] }
 0x1bc   :  { %5338 = vst [vmem:[#allocation59_spill] sm:$0xff] %v4339_v22  ;;  %v2599_v55 = vld [vmem:[#allocation6 + $0xf4] sm:$0xf] }
 0x1bd   :  { %v4337_v24 = vpack.c.bf16 %v893_v53, %v889_v46  ;;  %v1494_v56 = vadd.f32 %v1493_v20, %v1405_v10  ;;  %1909 = vmatpush.bf16.msrb.mxu2 %v2502_v40  ;;  %v2631_v10 = vld [vmem:[#allocation6 + $0x1f4] sm:$0xf] }
 0x1bf   :  { %v1579_v34 = vpop.f32.mrf.mxu2  ;;  %5337 = vst [vmem:[#allocation18_spill] sm:$0xff] %v4337_v24 }
 0x1c0   :  { %v4321_v11 = vadd.f32 %v1579_v34, %v1491_v30  ;;  %v5336_v30 = vld [vmem:[#allocation63_spill] sm:$0xff]  ;;  %v2091_v34 = vmax.f32 %v1657_v29, 0.0  ;;  %v1406_v57 = vpop.f32.mrf.mxu0  ;;  %v1495_v20 = vpop.f32.mrf.mxu1 }
 0x1c1   :  { %v1658_v50 = vpop.f32.mrf.mxu3 }
 0x1c2   :  { %v1659_v44 = vadd.f32 %v1658_v50, %v4250_v36  ;;  %v895_v36 = vmul.f32 %v3976_v32, %v5336_v30  ;;  %1443 = vmatmul.bf16.gmra.mxu0 %v4337_v24  ;;  %1532 = vmatmul.bf16.gmra.mxu1 %v4339_v22  ;;  %v1407_v30 = vadd.f32 %v1406_v57, %v4188_v52 }
 0x1c4   :  { %v2093_v50 = vmax.f32 %v1659_v44, 0.0  ;;  %v4341_v59 = vpack.c.bf16 %v895_v36, %v891_v60  ;;  %v2371_v60 = vld [vmem:[#allocation6 + $0x78] sm:$0xf0]  ;;  %v884_v36 = vmul.f32 %v4025_v49, %v3906_v45  ;;  %v1496_v40 = vadd.f32 %v1495_v20, %v1407_v30  ;;  %v5344_v20 = vld [vmem:[#allocation52_spill] sm:$0xff] }
 0x1c5   :  { %v898_v30 = vmul.f32 %v3902_v8, %v5344_v20 }
 0x1c6   :  { %5339 = vst [vmem:[#allocation87_spill] sm:$0xff] %v4341_v59  ;;  %1700 = vmatmul.bf16.gmra.mxu3 %v4319_v2  ;;  %v4345_v12 = vpack.c.bf16 %v2093_v50, %v2091_v34  ;;  %1621 = vmatmul.bf16.gmra.mxu2 %v4341_v59  ;;  %v888_v34 = vmul.f32 %v4025_v49, %v3916_v4  ;;  %v5342_v4 = vld [vmem:[#allocation109_spill] sm:$0xff]  ;;  %v2613_v2 = vld [vmem:[#allocation6 + $0x164] sm:$0xf] }
 0x1c7   :  { %v1582_v29 = vpop.f32.mrf.mxu2  ;;  %v2374_v50 = vor.u32 %v2583_v18, %v2371_v60  ;;  %v897_v18 = vmul.f32 %v3798_v48, %v5342_v4  ;;  %v5343_v60 = vld [vmem:[#allocation110_spill] sm:$0xff] }
 0x1c8   :  { %5340 = vst [vmem:[#allocation88_spill] sm:$0xff] %v4345_v12  ;;  %v4349_v46 = vadd.f32 %v1582_v29, %v1494_v56  ;;  %v2566_v56 = vor.u32 %v2631_v10, %v2563_v3  ;;  %v2435_v29 = vld [vmem:[#allocation6 + $0xf8] sm:$0xf0]  ;;  %v4357_v22 = vpack.c.bf16 %v888_v34, %v884_v36  ;;  %v901_v10 = vmul.f32 %v3798_v48, %v5343_v60  ;;  %v4370_v3 = vpop.f32.mrf.mxu1  ;;  %v5345_v36 = vld [vmem:[#allocation56_spill] sm:$0xff] }
 0x1c9   :  { %v1661_v44 = vpop.f32.mrf.mxu3  ;;  %1731 = vmatpush.bf16.msrb.mxu0 %v2374_v50  ;;  %v4368_v50 = vpop.f32.mrf.mxu0  ;;  %v902_v34 = vmul.f32 %v3902_v8, %v5345_v36  ;;  %v896_v36 = vmul.f32 %v4025_v49, %v3931_v54  ;;  %v5355_v54 = vld [vmem:[#allocation62_spill] sm:$0xff] }
 0x1ca   :  { %v1662_v53 = vadd.f32 %v1661_v44, %v4275_v42  ;;  %v2438_v42 = vor.u32 %v2599_v55, %v2435_v29  ;;  %1998 = vmatpush.bf16.msrb.mxu3 %v2566_v56  ;;  %5341 = vst [vmem:[#allocation105_spill] sm:$0xff] %v4357_v22  ;;  %v5346_v55 = vld [vmem:[#allocation31_spill] sm:$0xff] }
 0x1cb   :  { %v899_v56 = vmul.f32 %v3976_v32, %v5346_v55 }
 0x1cc   :  { %1820 = vmatpush.bf16.msrb.mxu1 %v2438_v42  ;;  %v4378_v42 = vpack.c.bf16 %v901_v10, %v897_v18 }
 0x1ce   :  { %5348 = vst [vmem:[#allocation108_spill] sm:$0xff] %v4378_v42 }
 0x1cf   :  { %v1584_v44 = vpop.f32.mrf.mxu2 }
 0x1d0   :  { %v4359_v57 = vadd.f32 %v1584_v44, %v1496_v40  ;;  %v2095_v40 = vmax.f32 %v1662_v53, 0.0  ;;  %v4380_v44 = vpack.c.bf16 %v902_v34, %v898_v30  ;;  %v4395_v10 = vpop.f32.mrf.mxu1  ;;  %v892_v30 = vmul.f32 %v4025_v49, %v3924_v31 }
 0x1d1   :  { %v1663_v59 = vpop.f32.mrf.mxu3  ;;  %v4393_v18 = vpop.f32.mrf.mxu0 }
 0x1d2   :  { %v1664_v45 = vadd.f32 %v1663_v59, %v4284_v51  ;;  %v5347_v51 = vld [vmem:[#allocation72_spill] sm:$0xff]  ;;  %5349 = vst [vmem:[#allocation19_spill] sm:$0xff] %v4380_v44  ;;  %1448 = vmatmul.bf16.gmra.mxu0 %v4378_v42  ;;  %1537 = vmatmul.bf16.gmra.mxu1 %v4380_v44  ;;  %v910_v42 = vmul.f32 %v3902_v8, %v5355_v54  ;;  %v2491_v54 = vld [vmem:[#allocation6 + $0x168] sm:$0xf0] }
 0x1d3   :  { %v903_v59 = vmul.f32 %v3976_v32, %v5347_v51 }
 0x1d4   :  { %v2097_v29 = vmax.f32 %v1664_v45, 0.0 }
 0x1d5   :  { %v4382_v4 = vpack.c.bf16 %v903_v59, %v899_v56  ;;  %v4403_v56 = vpack.c.bf16 %v896_v36, %v892_v30  ;;  %v5352_v59 = vld [vmem:[#allocation112_spill] sm:$0xff]  ;;  %v5356_v30 = vld [vmem:[#allocation34_spill] sm:$0xff] }
 0x1d6   :  { %1705 = vmatmul.bf16.gmra.mxu3 %v4357_v22  ;;  %v4386_v60 = vpack.c.bf16 %v2097_v29, %v2095_v40  ;;  %v5353_v40 = vld [vmem:[#allocation55_spill] sm:$0xff]  ;;  %v907_v36 = vmul.f32 %v3976_v32, %v5356_v30 }
 0x1d7   :  { %5350 = vst [vmem:[#allocation20_spill] sm:$0xff] %v4382_v4  ;;  %1626 = vmatmul.bf16.gmra.mxu2 %v4382_v4  ;;  %v4390_v20 = vpop.f32.mrf.mxu2  ;;  %v909_v29 = vmul.f32 %v3798_v48, %v5353_v40 }
 0x1d8   :  { %5351 = vst [vmem:[#allocation66_spill] sm:$0xff] %v4403_v56  ;;  %v4414_v44 = vpop.f32.mrf.mxu1 }
 0x1d9   :  { %v1666_v53 = vpop.f32.mrf.mxu3  ;;  %v4412_v31 = vpop.f32.mrf.mxu0 }
 0x1da   :  { %v1667_v45 = vadd.f32 %v1666_v53, %v4311_v19  ;;  %v905_v19 = vmul.f32 %v3798_v48, %v5352_v59  ;;  %v5354_v53 = vld [vmem:[#allocation58_spill] sm:$0xff] }
 0x1db   :  { %v906_v4 = vmul.f32 %v3902_v8, %v5354_v53 }
 0x1dc   :  { %v2099_v59 = vmax.f32 %v1667_v45, 0.0  ;;  %v4422_v24 = vpack.c.bf16 %v909_v29, %v905_v19  ;;  %v2494_v45 = vor.u32 %v2613_v2, %v2491_v54  ;;  %v2581_v19 = vld [vmem:[#allocation6 + $0x64] sm:$0xf]  ;;  %v2579_v54 = vld [vmem:[#allocation6 + $0x54] sm:$0xf] }
 0x1dd   :  { %v4424_v40 = vpack.c.bf16 %v910_v42, %v906_v4  ;;  %v2363_v42 = vld [vmem:[#allocation6 + $0x68] sm:$0xf0]  ;;  %v2629_v4 = vld [vmem:[#allocation6 + $0x1e4] sm:$0xf] }
 0x1de   :  { %5358 = vst [vmem:[#allocation68_spill] sm:$0xff] %v4422_v24  ;;  %1910 = vmatpush.bf16.msrb.mxu2 %v2494_v45  ;;  %v2366_v30 = vor.u32 %v2581_v19, %v2363_v42  ;;  %v900_v45 = vmul.f32 %v4025_v49, %v3938_v23  ;;  %v904_v19 = vmul.f32 %v4025_v49, %v3944_v25  ;;  %v2593_v23 = vld [vmem:[#allocation6 + $0xc4] sm:$0xf] }
 0x1df   :  { %v4401_v34 = vpop.f32.mrf.mxu2  ;;  %5359 = vst [vmem:[#allocation89_spill] sm:$0xff] %v4424_v40  ;;  %v2350_v25 = vor.u32 %v2577_v16, %v2347_v13  ;;  %v5364_v16 = vld [vmem:[#allocation65_spill] sm:$0xff] }
 0x1e0   :  { %1732 = vmatpush.bf16.msrb.mxu0 %v2366_v30  ;;  %v4441_v2 = vpop.f32.mrf.mxu1  ;;  %v2483_v30 = vld [vmem:[#allocation6 + $0x158] sm:$0xf0]  ;;  %v4449_v12 = vpack.c.bf16 %v904_v19, %v900_v45  ;;  %v5363_v45 = vld [vmem:[#allocation61_spill] sm:$0xff]  ;;  %v914_v19 = vmul.f32 %v3902_v8, %v5364_v16  ;;  %v2607_v16 = vld [vmem:[#allocation6 + $0x134] sm:$0xf] }
 0x1e1   :  { %v1668_v55 = vpop.f32.mrf.mxu3  ;;  %v917_v13 = vmul.f32 %v3798_v48, %v5363_v45  ;;  %v2591_v45 = vld [vmem:[#allocation6 + $0xb4] sm:$0xf] }
 0x1e2   :  { %v1669_v51 = vadd.f32 %v1668_v55, %v4321_v11  ;;  %v5357_v11 = vld [vmem:[#allocation40_spill] sm:$0xff]  ;;  %1453 = vmatmul.bf16.gmra.mxu0 %v4422_v24  ;;  %1542 = vmatmul.bf16.gmra.mxu1 %v4424_v40  ;;  %v4439_v40 = vpop.f32.mrf.mxu0  ;;  %5361 = vst [vmem:[#allocation111_spill] sm:$0xff] %v4449_v12 }
 0x1e3   :  { %v911_v55 = vmul.f32 %v3976_v32, %v5357_v11  ;;  %v2597_v11 = vld [vmem:[#allocation6 + $0xe4] sm:$0xf] }
 0x1e4   :  { %v2101_v22 = vmax.f32 %v1669_v51, 0.0 }
 0x1e5   :  { %v4426_v53 = vpack.c.bf16 %v911_v55, %v907_v36  ;;  %v2555_v36 = vld [vmem:[#allocation6 + $0x1e8] sm:$0xf0] }
 0x1e6   :  { %1710 = vmatmul.bf16.gmra.mxu3 %v4403_v56  ;;  %v4430_v33 = vpack.c.bf16 %v2101_v22, %v2099_v59  ;;  %v2427_v55 = vld [vmem:[#allocation6 + $0xe8] sm:$0xf0]  ;;  %v2558_v22 = vor.u32 %v2629_v4, %v2555_v36  ;;  %v2611_v4 = vld [vmem:[#allocation6 + $0x154] sm:$0xf] }
 0x1e7   :  { %5360 = vst [vmem:[#allocation90_spill] sm:$0xff] %v4426_v53  ;;  %1631 = vmatmul.bf16.gmra.mxu2 %v4426_v53  ;;  %v4434_v51 = vpop.f32.mrf.mxu2  ;;  %v2430_v59 = vor.u32 %v2597_v11, %v2427_v55  ;;  %v2355_v53 = vld [vmem:[#allocation6 + $0x58] sm:$0xf0]  ;;  %v2627_v11 = vld [vmem:[#allocation6 + $0x1d4] sm:$0xf]  ;;  %v2486_v56 = vor.u32 %v2611_v4, %v2483_v30 }
 0x1e8   :  { %1999 = vmatpush.bf16.msrb.mxu3 %v2558_v22  ;;  %v2358_v42 = vor.u32 %v2579_v54, %v2355_v53  ;;  %v2547_v55 = vld [vmem:[#allocation6 + $0x1d8] sm:$0xf0]  ;;  %v2411_v53 = vld [vmem:[#allocation6 + $0xc8] sm:$0xf0]  ;;  %v2609_v54 = vld [vmem:[#allocation6 + $0x144] sm:$0xf]  ;;  %v4456_v47 = vpop.f32.mrf.mxu1 }
 0x1e9   :  { %v1671_v29 = vpop.f32.mrf.mxu3  ;;  %1821 = vmatpush.bf16.msrb.mxu1 %v2430_v59  ;;  %v2550_v22 = vor.u32 %v2627_v11, %v2547_v55  ;;  %1911 = vmatpush.bf16.msrb.mxu2 %v2486_v56  ;;  %v2625_v30 = vld [vmem:[#allocation6 + $0x1c4] sm:$0xf]  ;;  %v5362_v11 = vld [vmem:[#allocation57_spill] sm:$0xff] }
 0x1ea   :  { %v4437_v24 = vadd.f32 %v1671_v29, %v4349_v46  ;;  %v2595_v46 = vld [vmem:[#allocation6 + $0xd4] sm:$0xf]  ;;  %v2419_v29 = vld [vmem:[#allocation6 + $0xd8] sm:$0xf0]  ;;  %1733 = vmatpush.bf16.msrb.mxu0 %v2358_v42  ;;  %v2414_v42 = vor.u32 %v2593_v23, %v2411_v53  ;;  %v913_v55 = vmul.f32 %v3798_v48, %v5362_v11  ;;  %v4454_v14 = vpop.f32.mrf.mxu0 }
 0x1eb   :  { %v2422_v36 = vor.u32 %v2595_v46, %v2419_v29  ;;  %v2475_v46 = vld [vmem:[#allocation6 + $0x148] sm:$0xf0]  ;;  %v5366_v53 = vld [vmem:[#allocation74_spill] sm:$0xff] }
 0x1ec   :  { %2000 = vmatpush.bf16.msrb.mxu3 %v2550_v22  ;;  %v2478_v4 = vor.u32 %v2609_v54, %v2475_v46  ;;  %v2103_v22 = vmax.f32 %v4437_v24, 0.0  ;;  %v915_v54 = vmul.f32 %v3976_v32, %v5366_v53  ;;  %v5367_v46 = vld [vmem:[#allocation43_spill] sm:$0xff]  ;;  %v4469_v48 = vpack.c.bf16 %v917_v13, %v913_v55  ;;  %v2573_v13 = vld [vmem:[#allocation6 + $0x24] sm:$0xf] }
 0x1ed   :  { %1822 = vmatpush.bf16.msrb.mxu1 %v2422_v36  ;;  %v2539_v36 = vld [vmem:[#allocation6 + $0x1c8] sm:$0xf0]  ;;  %v2531_v53 = vld [vmem:[#allocation6 + $0x1b8] sm:$0xf0] }
 0x1ee   :  { %1734 = vmatpush.bf16.msrb.mxu0 %v2350_v25  ;;  %v2542_v56 = vor.u32 %v2625_v30, %v2539_v36  ;;  %v919_v25 = vmul.f32 %v3976_v32, %v5367_v46  ;;  %v2575_v30 = vld [vmem:[#allocation6 + $0x34] sm:$0xf]  ;;  %v2339_v36 = vld [vmem:[#allocation6 + $0x38] sm:$0xf0]  ;;  %1912 = vmatpush.bf16.msrb.mxu2 %v2478_v4  ;;  %5368 = vst [vmem:[#allocation24_spill] sm:$0xff] %v4469_v48 }
 0x1ef   :  { %v4447_v59 = vpop.f32.mrf.mxu2 }
 0x1f0   :  { %2001 = vmatpush.bf16.msrb.mxu3 %v2542_v56  ;;  %v4474_v24 = vpack.c.bf16 %v919_v25, %v915_v54 }
 0x1f1   :  { %v1673_v41 = vpop.f32.mrf.mxu3  ;;  %1823 = vmatpush.bf16.msrb.mxu1 %v2414_v42  ;;  %v2467_v42 = vld [vmem:[#allocation6 + $0x138] sm:$0xf0] }
 0x1f2   :  { %v1674_v29 = vadd.f32 %v1673_v41, %v4359_v57  ;;  %v5365_v41 = vld [vmem:[#allocation38_spill] sm:$0xff]  ;;  %5370 = vst [vmem:[#allocation26_spill] sm:$0xff] %v4474_v24  ;;  %1458 = vmatmul.bf16.gmra.mxu0 %v4469_v48  ;;  %v2470_v4 = vor.u32 %v2607_v16, %v2467_v42  ;;  %v2621_v42 = vld [vmem:[#allocation6 + $0x1a4] sm:$0xf]  ;;  %v2379_v48 = vld [vmem:[#allocation6 + $0x88] sm:$0xf0] }
 0x1f3   :  { %v918_v57 = vmul.f32 %v3902_v8, %v5365_v41  ;;  %v2403_v8 = vld [vmem:[#allocation6 + $0xb8] sm:$0xf0]  ;;  %v2623_v41 = vld [vmem:[#allocation6 + $0x1b4] sm:$0xf] }
 0x1f4   :  { %v2105_v23 = vmax.f32 %v1674_v29, 0.0  ;;  %v2342_v29 = vor.u32 %v2575_v30, %v2339_v36  ;;  %v2406_v32 = vor.u32 %v2591_v45, %v2403_v8  ;;  %v2534_v55 = vor.u32 %v2623_v41, %v2531_v53  ;;  %1913 = vmatpush.bf16.msrb.mxu2 %v2470_v4  ;;  %v2395_v30 = vld [vmem:[#allocation6 + $0xa8] sm:$0xf0]  ;;  %v2605_v36 = vld [vmem:[#allocation6 + $0x124] sm:$0xf]  ;;  %v4485_v41 = vpop.f32.mrf.mxu0  ;;  %v4487_v53 = vpop.f32.mrf.mxu1 }
 0x1f5   :  { %v4471_v11 = vpack.c.bf16 %v918_v57, %v914_v19  ;;  %v2331_v19 = vld [vmem:[#allocation6 + $0x28] sm:$0xf0]  ;;  %v2589_v57 = vld [vmem:[#allocation6 + $0xa4] sm:$0xf]  ;;  %v2587_v4 = vld [vmem:[#allocation6 + $0x94] sm:$0xf] }
 0x1f6   :  { %1715 = vmatmul.bf16.gmra.mxu3 %v4449_v12  ;;  %1735 = vmatpush.bf16.msrb.mxu0 %v2342_v29  ;;  %v4481_v54 = vpack.c.bf16 %v2105_v23, %v2103_v22  ;;  %v2334_v25 = vor.u32 %v2573_v13, %v2331_v19  ;;  %v2459_v45 = vld [vmem:[#allocation6 + $0x128] sm:$0xf0]  ;;  %v2398_v8 = vor.u32 %v2589_v57, %v2395_v30  ;;  %v2571_v22 = vld [vmem:[#allocation6 + $0x14] sm:$0xf]  ;;  %v2323_v23 = vld [vmem:[#allocation6 + $0x18] sm:$0xf0] }
 0x1f7   :  { %5369 = vst [vmem:[#allocation23_spill] sm:$0xff] %v4471_v11  ;;  %1547 = vmatmul.bf16.gmra.mxu1 %v4471_v11  ;;  %1636 = vmatmul.bf16.gmra.mxu2 %v4474_v24  ;;  %v4479_v56 = vpop.f32.mrf.mxu2  ;;  %v2462_v16 = vor.u32 %v2605_v36, %v2459_v45  ;;  %v2523_v29 = vld [vmem:[#allocation6 + $0x1a8] sm:$0xf0]  ;;  %v2387_v13 = vld [vmem:[#allocation6 + $0x98] sm:$0xf0]  ;;  %v912_v57 = vmul.f32 %v4025_v49, %v3956_v35 }
 0x1f8   :  { %1824 = vmatpush.bf16.msrb.mxu1 %v2406_v32  ;;  %2002 = vmatpush.bf16.msrb.mxu3 %v2534_v55  ;;  %v2526_v24 = vor.u32 %v2621_v42, %v2523_v29  ;;  %v2326_v32 = vor.u32 %v2571_v22, %v2323_v23  ;;  %v2603_v19 = vld [vmem:[#allocation6 + $0x114] sm:$0xf]  ;;  %v908_v55 = vmul.f32 %v4025_v49, %v3950_v6  ;;  %v2451_v36 = vld [vmem:[#allocation6 + $0x118] sm:$0xf0]  ;;  %v2315_v22 = vld [vmem:[#allocation6 + $0x8] sm:$0xf0] }
 0x1f9   :  { %v4483_v46 = vpop.f32.mrf.mxu3  ;;  %1914 = vmatpush.bf16.msrb.mxu2 %v2462_v16  ;;  %v2390_v30 = vor.u32 %v2587_v4, %v2387_v13  ;;  %v2619_v45 = vld [vmem:[#allocation6 + $0x194] sm:$0xf]  ;;  %v2515_v42 = vld [vmem:[#allocation6 + $0x198] sm:$0xf0]  ;;  %v2569_v16 = vld [vmem:[#allocation6 + $0x4] sm:$0xf] }
 0x1fa   :  { %1736 = vmatpush.bf16.msrb.mxu0 %v2334_v25  ;;  %v2454_v25 = vor.u32 %v2603_v19, %v2451_v36  ;;  %v2518_v29 = vor.u32 %v2619_v45, %v2515_v42  ;;  %v2585_v23 = vld [vmem:[#allocation6 + $0x84] sm:$0xf]  ;;  %v2318_v6 = vor.u32 %v2569_v16, %v2315_v22  ;;  %v4497_v4 = vpack.c.bf16 %v912_v57, %v908_v55 }
 0x1fb   :  { %v2601_v35 = vld [vmem:[#allocation6 + $0x104] sm:$0xf]  ;;  %v2382_v13 = vor.u32 %v2585_v23, %v2379_v48 }
 0x1fc   :  { %1825 = vmatpush.bf16.msrb.mxu1 %v2398_v8  ;;  %2003 = vmatpush.bf16.msrb.mxu3 %v2526_v24  ;;  %v2443_v24 = vld [vmem:[#allocation6 + $0x108] sm:$0xf0]  ;;  %v2617_v36 = vld [vmem:[#allocation6 + $0x184] sm:$0xf]  ;;  %v1424_v45 = vpop.f32.mrf.mxu0  ;;  %v1513_v42 = vpop.f32.mrf.mxu1 }
 0x1fd   :  { %1915 = vmatpush.bf16.msrb.mxu2 %v2454_v25  ;;  %v2446_v19 = vor.u32 %v2601_v35, %v2443_v24  ;;  %v5371_v25 = vld [vmem:[#allocation37_spill] sm:$0xff] }
 0x1fe   :  { %1737 = vmatpush.bf16.msrb.mxu0 %v2326_v32  ;;  %v2507_v32 = vld [vmem:[#allocation6 + $0x188] sm:$0xf0] }
 0x1ff   :  { %v4493_v8 = vpop.f32.mrf.mxu2  ;;  %v2510_v12 = vor.u32 %v2617_v36, %v2507_v32  ;;  %v1420_v36 = vadd.f32 %v4454_v14, %v4188_v52  ;;  %v1415_v14 = vadd.f32 %v4412_v31, %v4188_v52 }
 0x200   :  { %1826 = vmatpush.bf16.msrb.mxu1 %v2390_v30  ;;  %2004 = vmatpush.bf16.msrb.mxu3 %v2518_v29  ;;  %v1425_v30 = vadd.f32 %v1424_v45, %v4188_v52 }
 0x201   :  { %v4495_v11 = vpop.f32.mrf.mxu3  ;;  %1916 = vmatpush.bf16.msrb.mxu2 %v2446_v19 }
 0x202   :  { %1738 = vmatpush.bf16.msrb.mxu0 %v2318_v6  ;;  %v1514_v55 = vadd.f32 %v1513_v42, %v1425_v30  ;;  %v916_v6 = vmul.f32 %v4025_v49, %v3962_v58 }
 0x204   :  { %1827 = vmatpush.bf16.msrb.mxu1 %v2382_v13  ;;  %2005 = vmatpush.bf16.msrb.mxu3 %v2510_v12  ;;  %v1426_v16 = vpop.f32.mrf.mxu0  ;;  %v1515_v22 = vpop.f32.mrf.mxu1  ;;  %v920_v12 = vmul.f32 %v4025_v49, %v3968_v28  ;;  %v1509_v28 = vadd.f32 %v4456_v47, %v1420_v36  ;;  %v1422_v49 = vadd.f32 %v4485_v41, %v4188_v52 }
 0x205   :  { %1739 = vmatmul.bf16.vlgmr.msrb.gmra.mxu0 %v5371_v25  ;;  %v1427_v23 = vadd.f32 %v1426_v16, %v4188_v52 }
 0x206   :  { %1720 = vmatmul.bf16.gmra.mxu3 %v4497_v4  ;;  %v1598_v47 = vadd.f32 %v4479_v56, %v1509_v28  ;;  %v1410_v56 = vadd.f32 %v4368_v50, %v4188_v52 }
 0x207   :  { %1828 = vmatmul.bf16.vlgmr.msrb.gmra.mxu1 %v3920_v38  ;;  %1917 = vmatmul.bf16.vlgmr.msrb.gmra.mxu2 %v3982_v15  ;;  %v1602_v48 = vpop.f32.mrf.mxu2  ;;  %v1516_v35 = vadd.f32 %v1515_v22, %v1427_v23  ;;  %v4513_v15 = vpack.c.bf16 %v920_v12, %v916_v6  ;;  %v1504_v22 = vadd.f32 %v4414_v44, %v1415_v14 }
 0x208   :  { %v4504_v29 = vadd.f32 %v1602_v48, %v1514_v55  ;;  %v1511_v48 = vadd.f32 %v4487_v53, %v1422_v49  ;;  %v1412_v53 = vadd.f32 %v4393_v18, %v4188_v52  ;;  %v1499_v50 = vadd.f32 %v4370_v3, %v1410_v56 }
 0x209   :  { %v1681_v57 = vpop.f32.mrf.mxu3 }
 0x20a   :  { %v1501_v18 = vadd.f32 %v4395_v10, %v1412_v53 }
 0x20c   :  { %v1590_v49 = vadd.f32 %v4401_v34, %v1501_v18 }
 0x20f   :  { %v1604_v24 = vpop.f32.mrf.mxu2  ;;  %v1429_v19 = vpop.f32.mrf.mxu0 }
 0x210   :  { %v4511_v38 = vadd.f32 %v1604_v24, %v1516_v35  ;;  %v1430_v32 = vadd.f32 %v1429_v19, %v4188_v52  ;;  %v1518_v45 = vpop.f32.mrf.mxu1  ;;  %v1593_v19 = vadd.f32 %v4434_v51, %v1504_v22 }
 0x211   :  { %v1683_v13 = vpop.f32.mrf.mxu3 }
 0x212   :  { %v1519_v58 = vadd.f32 %v1518_v45, %v1430_v32  ;;  %v1682_v28 = vadd.f32 %v1681_v57, %v1593_v19 }
 0x214   :  { %v2111_v3 = vmax.f32 %v1682_v28, 0.0 }
 0x215   :  { %1744 = vmatmul.bf16.gmra.mxu0 %v3993_v7  ;;  %v1417_v7 = vadd.f32 %v4439_v40, %v4188_v52 }
 0x216   :  { %1725 = vmatmul.bf16.gmra.mxu3 %v4513_v15 }
 0x217   :  { %1833 = vmatmul.bf16.gmra.mxu1 %v3995_v17  ;;  %1922 = vmatmul.bf16.gmra.mxu2 %v4004_v37  ;;  %v1607_v30 = vpop.f32.mrf.mxu2  ;;  %v1431_v55 = vpop.f32.mrf.mxu0  ;;  %v1600_v37 = vadd.f32 %v4493_v8, %v1511_v48  ;;  %v1506_v31 = vadd.f32 %v4441_v2, %v1417_v7 }
 0x218   :  { %v4527_v25 = vadd.f32 %v1607_v30, %v1519_v58  ;;  %v1432_v41 = vadd.f32 %v1431_v55, %v4188_v52  ;;  %v1520_v17 = vpop.f32.mrf.mxu1  ;;  %v1679_v55 = vadd.f32 %v4495_v11, %v1590_v49 }
 0x219   :  { %v1686_v42 = vpop.f32.mrf.mxu3  ;;  %v1595_v12 = vadd.f32 %v4447_v59, %v1506_v31 }
 0x21a   :  { %v1521_v16 = vadd.f32 %v1520_v17, %v1432_v41  ;;  %v1687_v23 = vadd.f32 %v1686_v42, %v1598_v47  ;;  %v2109_v47 = vmax.f32 %v1679_v55, 0.0 }
 0x21b   :  { %v1684_v45 = vadd.f32 %v1683_v13, %v1595_v12 }
 0x21c   :  { %v2115_v44 = vmax.f32 %v1687_v23, 0.0 }
 0x21d   :  { %v2113_v13 = vmax.f32 %v1684_v45, 0.0 }
 0x21f   :  { %v1609_v40 = vpop.f32.mrf.mxu2  ;;  %v1434_v8 = vpop.f32.mrf.mxu0 }
 0x220   :  { %v4542_v24 = vadd.f32 %v1609_v40, %v1521_v16  ;;  %v1435_v2 = vadd.f32 %v1434_v8, %v4188_v52  ;;  %v1523_v32 = vpop.f32.mrf.mxu1 }
 0x221   :  { %v1688_v6 = vpop.f32.mrf.mxu3 }
 0x222   :  { %v1689_v35 = vadd.f32 %v1688_v6, %v1600_v37  ;;  %v1524_v58 = vadd.f32 %v1523_v32, %v1435_v2 }
 0x224   :  { %v2117_v36 = vmax.f32 %v1689_v35, 0.0 }
 0x225   :  { %1749 = vmatmul.bf16.gmra.mxu0 %v4015_v27  ;;  %v1588_v27 = vadd.f32 %v4390_v20, %v1499_v50 }
 0x226   :  { %v2166_v59 = vpack.c.bf16 %v2117_v36, %v2115_v44  ;;  %2006 = vmatmul.bf16.vlgmr.msrb.gmra.mxu3 %v4033_v39 }
 0x227   :  { %1838 = vmatmul.bf16.gmra.mxu1 %v4017_v1  ;;  %1927 = vmatmul.bf16.gmra.mxu2 %v4027_v62  ;;  %v1612_v39 = vpop.f32.mrf.mxu2  ;;  %v1436_v14 = vpop.f32.mrf.mxu0  ;;  %v2164_v1 = vpack.c.bf16 %v2113_v13, %v2111_v3  ;;  %v1677_v62 = vadd.f32 %v4483_v46, %v1588_v27  ;;  %v5374_v27 = vld [vmem:[#allocation88_spill] sm:$0xff]  ;;  %v5375_v3 = vld [vmem:[#allocation46_spill] sm:$0xff] }
 0x228   :  { %2192 = vmatpush.bf16.xpose.msra.mxu0 %v2166_v59  ;;  %v1613_v30 = vadd.f32 %v1612_v39, %v1524_v58  ;;  %v1437_v10 = vadd.f32 %v1436_v14, %v4188_v52  ;;  %v1525_v57 = vpop.f32.mrf.mxu1  ;;  %v5373_v14 = vld [vmem:[#allocation78_spill] sm:$0xff] }
 0x229   :  { %v1691_v51 = vpop.f32.mrf.mxu3  ;;  %v2107_v37 = vmax.f32 %v1677_v62, 0.0  ;;  %v5377_v62 = vld [vmem:[#allocation102_spill] sm:$0xff] }
 0x22a   :  { %v1692_v42 = vadd.f32 %v1691_v51, %v4504_v29  ;;  %v1526_v7 = vadd.f32 %v1525_v57, %v1437_v10  ;;  %v5376_v10 = vld [vmem:[#allocation49_spill] sm:$0xff] }
 0x22b   :  { %v2162_v11 = vpack.c.bf16 %v2109_v47, %v2107_v37 }
 0x22c   :  { %v2119_v20 = vmax.f32 %v1692_v42, 0.0 }
 0x22f   :  { %v1614_v48 = vpop.f32.mrf.mxu2  ;;  %v1439_v17 = vpop.f32.mrf.mxu0 }
 0x230   :  { %2193 = vmatpush.bf16.xpose.msra.mxu0 %v2164_v1  ;;  %v1615_v41 = vadd.f32 %v1614_v48, %v1526_v7  ;;  %v1440_v22 = vadd.f32 %v1439_v17, %v4188_v52  ;;  %v1528_v31 = vpop.f32.mrf.mxu1 }
 0x231   :  { %v1693_v34 = vpop.f32.mrf.mxu3 }
 0x232   :  { %v1694_v29 = vadd.f32 %v1693_v34, %v4511_v38  ;;  %v1529_v23 = vadd.f32 %v1528_v31, %v1440_v22  ;;  %v5379_v22 = vld [vmem:[#allocation76_spill] sm:$0xff]  ;;  %v5380_v31 = vld [vmem:[#allocation77_spill] sm:$0xff] }
 0x234   :  { %v2121_v16 = vmax.f32 %v1694_v29, 0.0 }
 0x235   :  { %1754 = vmatmul.bf16.gmra.mxu0 %v4045_v0 }
 0x236   :  { %2011 = vmatmul.bf16.gmra.mxu3 %v4061_v9  ;;  %v4561_v6 = vpack.c.bf16 %v2121_v16, %v2119_v20  ;;  %v5378_v20 = vld [vmem:[#allocation60_spill] sm:$0xff] }
 0x237   :  { %1843 = vmatmul.bf16.gmra.mxu1 %v4047_v26  ;;  %1932 = vmatmul.bf16.gmra.mxu2 %v4059_v5  ;;  %v1441_v40 = vpop.f32.mrf.mxu0 }
 0x238   :  { %2194 = vmatpush.bf16.xpose.msra.mxu0 %v2162_v11  ;;  %v1442_v56 = vadd.f32 %v1441_v40, %v4188_v52  ;;  %v1530_v9 = vpop.f32.mrf.mxu1 }
 0x239   :  { %v1696_v46 = vpop.f32.mrf.mxu3  ;;  %v1617_v12 = vpop.f32.mrf.mxu2 }
 0x23a   :  { %v1697_v38 = vadd.f32 %v1696_v46, %v4527_v25  ;;  %v1618_v35 = vadd.f32 %v1617_v12, %v1529_v23  ;;  %v1531_v53 = vadd.f32 %v1530_v9, %v1442_v56  ;;  %v5381_v23 = vld [vmem:[#allocation82_spill] sm:$0xff] }
 0x23c   :  { %v2123_v36 = vmax.f32 %v1697_v38, 0.0 }
 0x23f   :  { %v1444_v26 = vpop.f32.mrf.mxu0 }
 0x240   :  { %2195 = vmatpush.bf16.xpose.msra.mxu0 %v4481_v54  ;;  %v1445_v5 = vadd.f32 %v1444_v26, %v4188_v52  ;;  %v1533_v25 = vpop.f32.mrf.mxu1 }
 0x241   :  { %v1698_v8 = vpop.f32.mrf.mxu3  ;;  %v1619_v19 = vpop.f32.mrf.mxu2 }
 0x242   :  { %v1699_v0 = vadd.f32 %v1698_v8, %v4542_v24  ;;  %v1620_v44 = vadd.f32 %v1619_v19, %v1531_v53  ;;  %v1534_v32 = vadd.f32 %v1533_v25, %v1445_v5  ;;  %v5385_v25 = vld [vmem:[#allocation69_spill] sm:$0xff] }
 0x244   :  { %v2125_v2 = vmax.f32 %v1699_v0, 0.0 }
 0x245   :  { %1759 = vmatmul.bf16.gmra.mxu0 %v4073_v63 }
 0x246   :  { %2016 = vmatmul.bf16.gmra.mxu3 %v4089_v21  ;;  %v4572_v45 = vpack.c.bf16 %v2125_v2, %v2123_v36  ;;  %v5383_v36 = vld [vmem:[#allocation64_spill] sm:$0xff]  ;;  %v5384_v2 = vld [vmem:[#allocation67_spill] sm:$0xff] }
 0x247   :  { %1848 = vmatmul.bf16.gmra.mxu1 %v4075_v43  ;;  %1937 = vmatmul.bf16.gmra.mxu2 %v4087_v61  ;;  %v1446_v50 = vpop.f32.mrf.mxu0  ;;  %v5372_v61 = vld [vmem:[#allocation54_spill] sm:$0xff] }
 0x248   :  { %2196 = vmatpush.bf16.xpose.msra.mxu0 %v4430_v33  ;;  %v1447_v18 = vadd.f32 %v1446_v50, %v4188_v52  ;;  %v1535_v28 = vpop.f32.mrf.mxu1  ;;  %v2659_v50 = vld [vmem:[%s4813_s2] sm:$0x3] }
 0x249   :  { %v1701_v54 = vpop.f32.mrf.mxu3  ;;  %v1622_v59 = vpop.f32.mrf.mxu2 }
 0x24a   :  { %v1702_v24 = vadd.f32 %v1701_v54, %v1613_v30  ;;  %v1623_v58 = vadd.f32 %v1622_v59, %v1534_v32  ;;  %v1536_v21 = vadd.f32 %v1535_v28, %v1447_v18  ;;  %v4629_v18 = vperm.slane %v2659_v50, 1 }
 0x24c   :  { %v2127_v43 = vmax.f32 %v1702_v24, 0.0 }
 0x24f   :  { %v4580_v33 = vpop.f32.mrf.mxu0 }
 0x250   :  { %2197 = vmatpush.bf16.xpose.msra.mxu0 %v4386_v60  ;;  %v4582_v39 = vpop.f32.mrf.mxu1 }
 0x251   :  { %v1703_v51 = vpop.f32.mrf.mxu3  ;;  %v1624_v63 = vpop.f32.mrf.mxu2 }
 0x252   :  { %v1704_v49 = vadd.f32 %v1703_v51, %v1615_v41  ;;  %v1625_v13 = vadd.f32 %v1624_v63, %v1536_v21  ;;  %v5386_v51 = vld [vmem:[#allocation83_spill] sm:$0xff]  ;;  %v5387_v63 = vld [vmem:[#allocation73_spill] sm:$0xff] }
 0x254   :  { %v2129_v42 = vmax.f32 %v1704_v49, 0.0 }
 0x255   :  { %1764 = vmatmul.bf16.gmra.mxu0 %v5373_v14 }
 0x256   :  { %2021 = vmatmul.bf16.gmra.mxu3 %v5372_v61  ;;  %v4585_v30 = vpack.c.bf16 %v2129_v42, %v2127_v43  ;;  %v5388_v43 = vld [vmem:[#allocation75_spill] sm:$0xff] }
 0x257   :  { %1853 = vmatmul.bf16.gmra.mxu1 %v5375_v3  ;;  %1942 = vmatmul.bf16.gmra.mxu2 %v5376_v10  ;;  %v4593_v1 = vpop.f32.mrf.mxu0  ;;  %v5389_v61 = vld [vmem:[#allocation79_spill] sm:$0xff] }
 0x258   :  { %2198 = vmatpush.bf16.xpose.msra.mxu0 %v5374_v27  ;;  %v4595_v7 = vpop.f32.mrf.mxu1 }
 0x259   :  { %v1706_v60 = vpop.f32.mrf.mxu3 }
 0x25a   :  { %v1707_v57 = vadd.f32 %v1706_v60, %v1618_v35  ;;  %v4591_v55 = vpop.f32.mrf.mxu2 }
 0x25c   :  { %v2131_v41 = vmax.f32 %v1707_v57, 0.0 }
 0x25f   :  { %v4600_v48 = vpop.f32.mrf.mxu0 }
 0x260   :  { %2199 = vmatpush.bf16.xpose.msra.mxu0 %v5377_v62  ;;  %v4602_v37 = vpop.f32.mrf.mxu1 }
 0x261   :  { %v1708_v34 = vpop.f32.mrf.mxu3 }
 0x262   :  { %v1709_v47 = vadd.f32 %v1708_v34, %v1620_v44  ;;  %v4598_v29 = vpop.f32.mrf.mxu2  ;;  %v5382_v44 = vld [vmem:[#allocation71_spill] sm:$0xff] }
 0x264   :  { %v2133_v17 = vmax.f32 %v1709_v47, 0.0 }
 0x265   :  { %1769 = vmatmul.bf16.gmra.mxu0 %v5379_v22 }
 0x266   :  { %2026 = vmatmul.bf16.gmra.mxu3 %v5378_v20  ;;  %v4605_v16 = vpack.c.bf16 %v2133_v17, %v2131_v41 }
 0x267   :  { %1858 = vmatmul.bf16.gmra.mxu1 %v5380_v31  ;;  %1947 = vmatmul.bf16.gmra.mxu2 %v5381_v23  ;;  %v1456_v12 = vpop.f32.mrf.mxu0  ;;  %v5390_v31 = vld [vmem:[#allocation80_spill] sm:$0xff]  ;;  %v5391_v23 = vld [vmem:[#allocation81_spill] sm:$0xff] }
 0x268   :  { %v4612_v35 = vpop.f32.mrf.mxu1 }
 0x269   :  { %v1711_v11 = vpop.f32.mrf.mxu3 }
 0x26a   :  { %v1712_v46 = vadd.f32 %v1711_v11, %v1623_v58  ;;  %v4610_v38 = vpop.f32.mrf.mxu2 }
 0x26c   :  { %v2135_v53 = vmax.f32 %v1712_v46, 0.0 }
 0x26f   :  { %v1459_v0 = vpop.f32.mrf.mxu0 }
 0x270   :  { %v1460_v47 = vadd.f32 %v1459_v0, %v4188_v52  ;;  %v1455_v0 = vadd.f32 %v4600_v48, %v4188_v52 }
 0x271   :  { %v1713_v40 = vpop.f32.mrf.mxu3 }
 0x272   :  { %v1714_v56 = vadd.f32 %v1713_v40, %v1625_v13  ;;  %v4614_v9 = vpop.f32.mrf.mxu2 }
 0x274   :  { %v2137_v8 = vmax.f32 %v1714_v56, 0.0  ;;  %v1548_v19 = vpop.f32.mrf.mxu1  ;;  %v5392_v56 = vld [vmem:[#allocation84_spill] sm:$0xff] }
 0x275   :  { %1774 = vmatmul.bf16.gmra.mxu0 %v5383_v36  ;;  %v1549_v46 = vadd.f32 %v1548_v19, %v1460_v47  ;;  %v1457_v36 = vadd.f32 %v1456_v12, %v4188_v52  ;;  %v1450_v12 = vadd.f32 %v4580_v33, %v4188_v52 }
 0x276   :  { %2031 = vmatmul.bf16.gmra.mxu3 %v5382_v44  ;;  %v4617_v26 = vpack.c.bf16 %v2137_v8, %v2135_v53  ;;  %v5393_v8 = vld [vmem:[#allocation95_spill] sm:$0xff] }
 0x277   :  { %1863 = vmatmul.bf16.gmra.mxu1 %v5384_v2  ;;  %1952 = vmatmul.bf16.gmra.mxu2 %v5385_v25  ;;  %v1461_v54 = vpop.f32.mrf.mxu0  ;;  %v1539_v33 = vadd.f32 %v4582_v39, %v1450_v12 }
 0x278   :  { %v1462_v40 = vadd.f32 %v1461_v54, %v4188_v52 }
 0x279   :  { %v4621_v5 = vpop.f32.mrf.mxu3 }
 0x27a   :  { %v1637_v32 = vpop.f32.mrf.mxu2 }
 0x27b   :  { %v1638_v2 = vadd.f32 %v1637_v32, %v1549_v46  ;;  %v1452_v32 = vadd.f32 %v4593_v1, %v4188_v52 }
 0x27c   :  { %v1550_v24 = vpop.f32.mrf.mxu1 }
 0x27d   :  { %v1551_v25 = vadd.f32 %v1550_v24, %v1462_v40  ;;  %v1541_v52 = vadd.f32 %v4595_v7, %v1452_v32 }
 0x281   :  { %v4624_v59 = vpop.f32.mrf.mxu3 }
 0x282   :  { %v1639_v58 = vpop.f32.mrf.mxu2  ;;  %v1740_v28 = vpop.f32.mrf.mxu0 }
 0x283   :  { %v1741_v49 = vadd.f32 %v1740_v28, %v4629_v18  ;;  %v1640_v54 = vadd.f32 %v1639_v58, %v1551_v25 }
 0x284   :  { %v1829_v21 = vpop.f32.mrf.mxu1 }
 0x285   :  { %1779 = vmatmul.bf16.gmra.mxu0 %v5387_v63  ;;  %v1830_v13 = vadd.f32 %v1829_v21, %v1741_v49  ;;  %v1544_v49 = vadd.f32 %v4602_v37, %v1455_v0  ;;  %v1546_v63 = vadd.f32 %v4612_v35, %v1457_v36 }
 0x286   :  { %2036 = vmatmul.bf16.gmra.mxu3 %v5386_v51 }
 0x287   :  { %1868 = vmatmul.bf16.gmra.mxu1 %v5388_v43  ;;  %1957 = vmatmul.bf16.gmra.mxu2 %v5389_v61  ;;  %v1635_v48 = vadd.f32 %v4614_v9, %v1546_v63  ;;  %v5394_v9 = vld [vmem:[#allocation97_spill] sm:$0xff] }
 0x289   :  { %v1721_v42 = vpop.f32.mrf.mxu3 }
 0x28a   :  { %v1918_v14 = vpop.f32.mrf.mxu2  ;;  %v1742_v3 = vpop.f32.mrf.mxu0 }
 0x28b   :  { %v1919_v27 = vadd.f32 %v1918_v14, %v1830_v13  ;;  %v1743_v60 = vadd.f32 %v1742_v3, %v4629_v18  ;;  %v1633_v14 = vadd.f32 %v4610_v38, %v1544_v49  ;;  %v5396_v38 = vld [vmem:[#allocation16_spill] sm:$0xff]  ;;  %v5398_v49 = vld [vmem:[#allocation21_spill] sm:$0xff] }
 0x28c   :  { %v1831_v10 = vpop.f32.mrf.mxu1 }
 0x28d   :  { %v1832_v57 = vadd.f32 %v1831_v10, %v1743_v60  ;;  %v1722_v1 = vadd.f32 %v1721_v42, %v1633_v14 }
 0x28f   :  { %v2143_v46 = vmax.f32 %v1722_v1, 0.0 }
 0x291   :  { %v1723_v62 = vpop.f32.mrf.mxu3 }
 0x292   :  { %v1920_v34 = vpop.f32.mrf.mxu2  ;;  %v1745_v17 = vpop.f32.mrf.mxu0 }
 0x293   :  { %v4638_v41 = vadd.f32 %v1920_v34, %v1832_v57  ;;  %v1746_v20 = vadd.f32 %v1745_v17, %v4629_v18  ;;  %v1724_v57 = vadd.f32 %v1723_v62, %v1635_v48  ;;  %v5395_v17 = vld [vmem:[#allocation15_spill] sm:$0xff] }
 0x294   :  { %v1834_v22 = vpop.f32.mrf.mxu1  ;;  %v5401_v48 = vld [vmem:[#allocation99_spill] sm:$0xff] }
 0x295   :  { %v1835_v11 = vadd.f32 %v1834_v22, %v1746_v20  ;;  %1784 = vmatmul.bf16.gmra.mxu0 %v5391_v23  ;;  %v5397_v22 = vld [vmem:[#allocation47_spill] sm:$0xff]  ;;  %v2145_v62 = vmax.f32 %v1724_v57, 0.0  ;;  %v1628_v23 = vadd.f32 %v4591_v55, %v1539_v33 }
 0x296   :  { %2041 = vmatmul.bf16.gmra.mxu3 %v5390_v31  ;;  %v1630_v31 = vadd.f32 %v4598_v29, %v1541_v52 }
 0x297   :  { %1873 = vmatmul.bf16.gmra.mxu1 %v5392_v56  ;;  %1962 = vmatmul.bf16.gmra.mxu2 %v5393_v8  ;;  %v2180_v8 = vpack.c.bf16 %v2145_v62, %v2143_v46 }
 0x298   :  { %v1719_v42 = vadd.f32 %v4624_v59, %v1630_v31 }
 0x299   :  { %v1726_v53 = vpop.f32.mrf.mxu3 }
 0x29a   :  { %v1923_v44 = vpop.f32.mrf.mxu2  ;;  %v1747_v28 = vpop.f32.mrf.mxu0  ;;  %v1727_v13 = vadd.f32 %v1726_v53, %v1638_v2  ;;  %v2141_v29 = vmax.f32 %v1719_v42, 0.0 }
 0x29b   :  { %v4649_v50 = vadd.f32 %v1923_v44, %v1835_v11  ;;  %v1748_v19 = vadd.f32 %v1747_v28, %v4629_v18  ;;  %v1717_v44 = vadd.f32 %v4621_v5, %v1628_v23 }
 0x29c   :  { %v1836_v21 = vpop.f32.mrf.mxu1  ;;  %v2147_v58 = vmax.f32 %v1727_v13, 0.0  ;;  %v5399_v13 = vld [vmem:[#allocation85_spill] sm:$0xff] }
 0x29d   :  { %v1837_v51 = vadd.f32 %v1836_v21, %v1748_v19  ;;  %v2139_v2 = vmax.f32 %v1717_v44, 0.0  ;;  %v5408_v44 = vld [vmem:[#allocation19_spill] sm:$0xff] }
 0x29f   :  { %v2178_v59 = vpack.c.bf16 %v2141_v29, %v2139_v2 }
 0x2a1   :  { %v1728_v43 = vpop.f32.mrf.mxu3 }
 0x2a2   :  { %v1729_v61 = vadd.f32 %v1728_v43, %v1640_v54  ;;  %v1925_v24 = vpop.f32.mrf.mxu2  ;;  %v1750_v37 = vpop.f32.mrf.mxu0  ;;  %v5400_v43 = vld [vmem:[#allocation86_spill] sm:$0xff] }
 0x2a3   :  { %v1926_v60 = vadd.f32 %v1925_v24, %v1837_v51  ;;  %v1751_v35 = vadd.f32 %v1750_v37, %v4629_v18 }
 0x2a4   :  { %v2149_v3 = vmax.f32 %v1729_v61, 0.0  ;;  %v1839_v10 = vpop.f32.mrf.mxu1 }
 0x2a5   :  { %v1840_v47 = vadd.f32 %v1839_v10, %v1751_v35  ;;  %1789 = vmatmul.bf16.gmra.mxu0 %v5395_v17 }
 0x2a6   :  { %v2182_v34 = vpack.c.bf16 %v2149_v3, %v2147_v58  ;;  %2046 = vmatmul.bf16.gmra.mxu3 %v5394_v9 }
 0x2a7   :  { %1878 = vmatmul.bf16.gmra.mxu1 %v5396_v38  ;;  %1967 = vmatmul.bf16.gmra.mxu2 %v5397_v22  ;;  %v5403_v38 = vld [vmem:[#allocation18_spill] sm:$0xff] }
 0x2a8   :  { %2218 = vmatpush.bf16.xpose.msra.mxu2 %v2182_v34 }
 0x2a9   :  { %v2007_v20 = vpop.f32.mrf.mxu3 }
 0x2aa   :  { %v2008_v11 = vadd.f32 %v2007_v20, %v1919_v27  ;;  %v1928_v40 = vpop.f32.mrf.mxu2  ;;  %v1752_v56 = vpop.f32.mrf.mxu0  ;;  %v5405_v20 = vld [vmem:[#allocation87_spill] sm:$0xff] }
 0x2ab   :  { %v1929_v53 = vadd.f32 %v1928_v40, %v1840_v47  ;;  %v1753_v39 = vadd.f32 %v1752_v56, %v4629_v18 }
 0x2ac   :  { %v1841_v7 = vpop.f32.mrf.mxu1  ;;  %v2088_v55 = vmax.f32 %v2008_v11, 0.0 }
 0x2ad   :  { %v1842_v0 = vadd.f32 %v1841_v7, %v1753_v39 }
 0x2b0   :  { %2219 = vmatpush.bf16.xpose.msra.mxu2 %v2180_v8  ;;  %v5406_v8 = vld [vmem:[#allocation105_spill] sm:$0xff] }
 0x2b1   :  { %v2009_v36 = vpop.f32.mrf.mxu3 }
 0x2b2   :  { %v2010_v27 = vadd.f32 %v2009_v36, %v4638_v41  ;;  %v1930_v28 = vpop.f32.mrf.mxu2  ;;  %v1755_v19 = vpop.f32.mrf.mxu0  ;;  %v5409_v36 = vld [vmem:[#allocation20_spill] sm:$0xff] }
 0x2b3   :  { %v1931_v21 = vadd.f32 %v1930_v28, %v1842_v0  ;;  %v1756_v54 = vadd.f32 %v1755_v19, %v4629_v18  ;;  %v5407_v0 = vld [vmem:[#allocation108_spill] sm:$0xff] }
 0x2b4   :  { %v2090_v25 = vmax.f32 %v2010_v27, 0.0  ;;  %v1844_v51 = vpop.f32.mrf.mxu1 }
 0x2b5   :  { %v1845_v5 = vadd.f32 %v1844_v51, %v1756_v54  ;;  %1794 = vmatmul.bf16.gmra.mxu0 %v5399_v13  ;;  %v5412_v13 = vld [vmem:[#allocation89_spill] sm:$0xff] }
 0x2b6   :  { %2051 = vmatmul.bf16.gmra.mxu3 %v5398_v49  ;;  %v4675_v63 = vpack.c.bf16 %v2090_v25, %v2088_v55  ;;  %v5410_v49 = vld [vmem:[#allocation66_spill] sm:$0xff] }
 0x2b7   :  { %1883 = vmatmul.bf16.gmra.mxu1 %v5400_v43  ;;  %1972 = vmatmul.bf16.gmra.mxu2 %v5401_v48 }
 0x2b8   :  { %2220 = vmatpush.bf16.xpose.msra.mxu2 %v2178_v59 }
 0x2b9   :  { %v2012_v41 = vpop.f32.mrf.mxu3 }
 0x2ba   :  { %v2013_v61 = vadd.f32 %v2012_v41, %v4649_v50  ;;  %v1933_v12 = vpop.f32.mrf.mxu2  ;;  %v1757_v32 = vpop.f32.mrf.mxu0  ;;  %v5402_v50 = vld [vmem:[#allocation17_spill] sm:$0xff]  ;;  %v5413_v41 = vld [vmem:[#allocation90_spill] sm:$0xff] }
 0x2bb   :  { %v1934_v24 = vadd.f32 %v1933_v12, %v1845_v5  ;;  %v1758_v14 = vadd.f32 %v1757_v32, %v4629_v18  ;;  %v5411_v5 = vld [vmem:[#allocation68_spill] sm:$0xff] }
 0x2bc   :  { %v1846_v58 = vpop.f32.mrf.mxu1  ;;  %v2092_v10 = vmax.f32 %v2013_v61, 0.0 }
 0x2bd   :  { %v1847_v3 = vadd.f32 %v1846_v58, %v1758_v14 }
 0x2c0   :  { %2221 = vmatpush.bf16.xpose.msra.mxu2 %v4617_v26  ;;  %v5404_v26 = vld [vmem:[#allocation59_spill] sm:$0xff] }
 0x2c1   :  { %v2014_v37 = vpop.f32.mrf.mxu3 }
 0x2c2   :  { %v2015_v35 = vadd.f32 %v2014_v37, %v1926_v60  ;;  %v1935_v34 = vpop.f32.mrf.mxu2  ;;  %v1760_v9 = vpop.f32.mrf.mxu0  ;;  %v5415_v37 = vld [vmem:[#allocation24_spill] sm:$0xff] }
 0x2c3   :  { %v1936_v47 = vadd.f32 %v1935_v34, %v1847_v3  ;;  %v1761_v17 = vadd.f32 %v1760_v9, %v4629_v18  ;;  %v5414_v3 = vld [vmem:[#allocation111_spill] sm:$0xff] }
 0x2c4   :  { %v2094_v57 = vmax.f32 %v2015_v35, 0.0  ;;  %v1849_v33 = vpop.f32.mrf.mxu1  ;;  %v5416_v35 = vld [vmem:[#allocation23_spill] sm:$0xff] }
 0x2c5   :  { %v1850_v1 = vadd.f32 %v1849_v33, %v1761_v17  ;;  %1799 = vmatmul.bf16.gmra.mxu0 %v5403_v38 }
 0x2c6   :  { %2056 = vmatmul.bf16.gmra.mxu3 %v5402_v50  ;;  %v4685_v52 = vpack.c.bf16 %v2094_v57, %v2092_v10  ;;  %v5417_v57 = vld [vmem:[#allocation26_spill] sm:$0xff] }
 0x2c7   :  { %1888 = vmatmul.bf16.gmra.mxu1 %v5404_v26  ;;  %1977 = vmatmul.bf16.gmra.mxu2 %v5405_v20 }
 0x2c8   :  { %2222 = vmatpush.bf16.xpose.msra.mxu2 %v4605_v16 }
 0x2c9   :  { %v2017_v60 = vpop.f32.mrf.mxu3 }
 0x2ca   :  { %v2018_v22 = vadd.f32 %v2017_v60, %v1929_v53  ;;  %v1938_v31 = vpop.f32.mrf.mxu2  ;;  %v4691_v62 = vpop.f32.mrf.mxu0 }
 0x2cb   :  { %v1939_v11 = vadd.f32 %v1938_v31, %v1850_v1 }
 0x2cc   :  { %v4693_v23 = vpop.f32.mrf.mxu1  ;;  %v2096_v56 = vmax.f32 %v2018_v22, 0.0 }
 0x2d0   :  { %2223 = vmatpush.bf16.xpose.msra.mxu2 %v4585_v30 }
 0x2d1   :  { %v2019_v46 = vpop.f32.mrf.mxu3 }
 0x2d2   :  { %v2020_v40 = vadd.f32 %v2019_v46, %v1931_v21  ;;  %v4696_v7 = vpop.f32.mrf.mxu2  ;;  %v4698_v16 = vpop.f32.mrf.mxu0 }
 0x2d4   :  { %v2098_v39 = vmax.f32 %v2020_v40, 0.0  ;;  %v4700_v42 = vpop.f32.mrf.mxu1 }
 0x2d5   :  { %1804 = vmatmul.bf16.gmra.mxu0 %v5407_v0 }
 0x2d6   :  { %2061 = vmatmul.bf16.gmra.mxu3 %v5406_v8  ;;  %v4703_v53 = vpack.c.bf16 %v2098_v39, %v2096_v56 }
 0x2d7   :  { %1893 = vmatmul.bf16.gmra.mxu1 %v5408_v44  ;;  %1982 = vmatmul.bf16.gmra.mxu2 %v5409_v36 }
 0x2d8   :  { %2224 = vmatpush.bf16.xpose.msra.mxu2 %v4572_v45 }
 0x2d9   :  { %v2022_v30 = vpop.f32.mrf.mxu3 }
 0x2da   :  { %v2023_v29 = vadd.f32 %v2022_v30, %v1934_v24  ;;  %v4709_v27 = vpop.f32.mrf.mxu2  ;;  %v4711_v2 = vpop.f32.mrf.mxu0 }
 0x2dc   :  { %v4713_v55 = vpop.f32.mrf.mxu1  ;;  %v2100_v19 = vmax.f32 %v2023_v29, 0.0 }
 0x2e0   :  { %2225 = vmatpush.bf16.xpose.msra.mxu2 %v4561_v6 }
 0x2e1   :  { %v2024_v25 = vpop.f32.mrf.mxu3 }
 0x2e2   :  { %v2025_v28 = vadd.f32 %v2024_v25, %v1936_v47  ;;  %v4716_v54 = vpop.f32.mrf.mxu2  ;;  %v1770_v45 = vpop.f32.mrf.mxu0 }
 0x2e4   :  { %v2102_v21 = vmax.f32 %v2025_v28, 0.0  ;;  %v1859_v51 = vpop.f32.mrf.mxu1 }
 0x2e5   :  { %1809 = vmatmul.bf16.gmra.mxu0 %v5411_v5 }
 0x2e6   :  { %2066 = vmatmul.bf16.gmra.mxu3 %v5410_v49  ;;  %v4719_v59 = vpack.c.bf16 %v2102_v21, %v2100_v19  ;;  %v1771_v19 = vadd.f32 %v1770_v45, %v4629_v18  ;;  %v1766_v45 = vadd.f32 %v4698_v16, %v4629_v18 }
 0x2e7   :  { %1898 = vmatmul.bf16.gmra.mxu1 %v5412_v13  ;;  %1987 = vmatmul.bf16.gmra.mxu2 %v5413_v41 }
 0x2e9   :  { %v2027_v43 = vpop.f32.mrf.mxu3 }
 0x2ea   :  { %v4724_v6 = vadd.f32 %v2027_v43, %v1939_v11  ;;  %v1948_v48 = vpop.f32.mrf.mxu2  ;;  %v1772_v61 = vpop.f32.mrf.mxu0 }
 0x2eb   :  { %v1773_v21 = vadd.f32 %v1772_v61, %v4629_v18  ;;  %v1768_v61 = vadd.f32 %v4711_v2, %v4629_v18 }
 0x2ec   :  { %v1861_v12 = vpop.f32.mrf.mxu1 }
 0x2f1   :  { %v4726_v32 = vpop.f32.mrf.mxu3 }
 0x2f2   :  { %v1950_v24 = vpop.f32.mrf.mxu2  ;;  %v1775_v14 = vpop.f32.mrf.mxu0 }
 0x2f3   :  { %v1776_v39 = vadd.f32 %v1775_v14, %v4629_v18 }
 0x2f4   :  { %v1864_v58 = vpop.f32.mrf.mxu1 }
 0x2f5   :  { %1814 = vmatmul.bf16.gmra.mxu0 %v5415_v37  ;;  %v1865_v36 = vadd.f32 %v1864_v58, %v1776_v39  ;;  %v1860_v58 = vadd.f32 %v1859_v51, %v1771_v19 }
 0x2f6   :  { %2071 = vmatmul.bf16.gmra.mxu3 %v5414_v3 }
 0x2f7   :  { %1903 = vmatmul.bf16.gmra.mxu1 %v5416_v35  ;;  %1992 = vmatmul.bf16.gmra.mxu2 %v5417_v57  ;;  %v1862_v35 = vadd.f32 %v1861_v12, %v1773_v21 }
 0x2f9   :  { %v4731_v10 = vpop.f32.mrf.mxu3 }
 0x2fa   :  { %v1953_v34 = vpop.f32.mrf.mxu2  ;;  %v1777_v9 = vpop.f32.mrf.mxu0 }
 0x2fb   :  { %v1778_v29 = vadd.f32 %v1777_v9, %v4629_v18  ;;  %v1954_v49 = vadd.f32 %v1953_v34, %v1865_v36  ;;  %v1949_v34 = vadd.f32 %v1948_v48, %v1860_v58 }
 0x2fc   :  { %v1866_v47 = vpop.f32.mrf.mxu1 }
 0x2fd   :  { %v1867_v5 = vadd.f32 %v1866_v47, %v1778_v29 }
 0x301   :  { %v4734_v17 = vpop.f32.mrf.mxu3 }
 0x302   :  { %v1955_v33 = vpop.f32.mrf.mxu2  ;;  %v1780_v50 = vpop.f32.mrf.mxu0 }
 0x303   :  { %v1781_v38 = vadd.f32 %v1780_v50, %v4629_v18  ;;  %v1956_v3 = vadd.f32 %v1955_v33, %v1867_v5  ;;  %v1951_v50 = vadd.f32 %v1950_v24, %v1862_v35  ;;  %v1855_v24 = vadd.f32 %v4700_v42, %v1766_v45 }
 0x304   :  { %v1869_v1 = vpop.f32.mrf.mxu1 }
 0x305   :  { %v1870_v26 = vadd.f32 %v1869_v1, %v1781_v38 }
 0x306   :  { %2076 = vmatmul.bf16.gmra.mxu3 %v4497_v4 }
 0x309   :  { %v2037_v60 = vpop.f32.mrf.mxu3 }
 0x30a   :  { %v1958_v20 = vpop.f32.mrf.mxu2  ;;  %v1782_v22 = vpop.f32.mrf.mxu0 }
 0x30b   :  { %v1959_v31 = vadd.f32 %v1958_v20, %v1870_v26  ;;  %v1783_v11 = vadd.f32 %v1782_v22, %v4629_v18 }
 0x30c   :  { %v1871_v46 = vpop.f32.mrf.mxu1 }
 0x30d   :  { %v1872_v40 = vadd.f32 %v1871_v46, %v1783_v11  ;;  %v1857_v46 = vadd.f32 %v4713_v55, %v1768_v61 }
 0x30f   :  { %v1946_v2 = vadd.f32 %v4716_v54, %v1857_v46 }
 0x311   :  { %v2039_v56 = vpop.f32.mrf.mxu3 }
 0x312   :  { %v1960_v8 = vpop.f32.mrf.mxu2  ;;  %v1785_v0 = vpop.f32.mrf.mxu0  ;;  %v2040_v11 = vadd.f32 %v2039_v56, %v1951_v50  ;;  %v1944_v56 = vadd.f32 %v4709_v27, %v1855_v24 }
 0x313   :  { %v4740_v44 = vadd.f32 %v1960_v8, %v1872_v40  ;;  %v1786_v4 = vadd.f32 %v1785_v0, %v4629_v18  ;;  %v2038_v40 = vadd.f32 %v2037_v60, %v1949_v34  ;;  %v1763_v0 = vadd.f32 %v4691_v62, %v4629_v18 }
 0x314   :  { %v1874_v30 = vpop.f32.mrf.mxu1  ;;  %v2114_v48 = vmax.f32 %v2040_v11, 0.0  ;;  %v2035_v60 = vadd.f32 %v4734_v17, %v1946_v2 }
 0x315   :  { %v1875_v25 = vadd.f32 %v1874_v30, %v1786_v4  ;;  %v2112_v30 = vmax.f32 %v2038_v40, 0.0  ;;  %v1852_v54 = vadd.f32 %v4693_v23, %v1763_v0 }
 0x316   :  { %2081 = vmatmul.bf16.gmra.mxu3 %v4513_v15  ;;  %v2110_v27 = vmax.f32 %v2035_v60, 0.0 }
 0x317   :  { %v1941_v62 = vadd.f32 %v4696_v7, %v1852_v54 }
 0x319   :  { %v2042_v28 = vpop.f32.mrf.mxu3 }
 0x31a   :  { %v1963_v13 = vpop.f32.mrf.mxu2  ;;  %v1787_v43 = vpop.f32.mrf.mxu0  ;;  %v2043_v57 = vadd.f32 %v2042_v28, %v1954_v49 }
 0x31b   :  { %v4747_v41 = vadd.f32 %v1963_v13, %v1875_v25  ;;  %v1788_v14 = vadd.f32 %v1787_v43, %v4629_v18  ;;  %v2165_v25 = vpack.c.bf16 %v2114_v48, %v2112_v30 }
 0x31c   :  { %v1876_v15 = vpop.f32.mrf.mxu1  ;;  %v2116_v47 = vmax.f32 %v2043_v57, 0.0  ;;  %v2104_v57 = vmax.f32 %v4724_v6, 0.0 }
 0x31d   :  { %v1877_v37 = vadd.f32 %v1876_v15, %v1788_v14 }
 0x321   :  { %v2044_v9 = vpop.f32.mrf.mxu3 }
 0x322   :  { %v2045_v1 = vadd.f32 %v2044_v9, %v1956_v3  ;;  %v1965_v26 = vpop.f32.mrf.mxu2  ;;  %v1790_v20 = vpop.f32.mrf.mxu0  ;;  %v2030_v3 = vadd.f32 %v4726_v32, %v1941_v62 }
 0x323   :  { %v1966_v22 = vadd.f32 %v1965_v26, %v1877_v37  ;;  %v1791_v12 = vadd.f32 %v1790_v20, %v4629_v18 }
 0x324   :  { %v2118_v38 = vmax.f32 %v2045_v1, 0.0  ;;  %v1879_v33 = vpop.f32.mrf.mxu1  ;;  %v2106_v35 = vmax.f32 %v2030_v3, 0.0 }
 0x325   :  { %v1880_v16 = vadd.f32 %v1879_v33, %v1791_v12 }
 0x326   :  { %v2167_v51 = vpack.c.bf16 %v2118_v38, %v2116_v47  ;;  %v2161_v32 = vpack.c.bf16 %v2106_v35, %v2104_v57 }
 0x328   :  { %2205 = vmatpush.bf16.xpose.msra.mxu1 %v2167_v51 }
 0x329   :  { %v2047_v39 = vpop.f32.mrf.mxu3 }
 0x32a   :  { %v2048_v8 = vadd.f32 %v2047_v39, %v1959_v31  ;;  %v1968_v4 = vpop.f32.mrf.mxu2  ;;  %v1792_v36 = vpop.f32.mrf.mxu0  ;;  %v2033_v31 = vadd.f32 %v4731_v10, %v1944_v56 }
 0x32b   :  { %v1969_v29 = vadd.f32 %v1968_v4, %v1880_v16  ;;  %v1793_v42 = vadd.f32 %v1792_v36, %v4629_v18 }
 0x32c   :  { %v1881_v55 = vpop.f32.mrf.mxu1  ;;  %v2108_v49 = vmax.f32 %v2033_v31, 0.0  ;;  %v2120_v5 = vmax.f32 %v2048_v8, 0.0 }
 0x32d   :  { %v1882_v28 = vadd.f32 %v1881_v55, %v1793_v42 }
 0x32e   :  { %v2163_v37 = vpack.c.bf16 %v2110_v27, %v2108_v49 }
 0x330   :  { %2206 = vmatpush.bf16.xpose.msra.mxu1 %v2165_v25 }
 0x331   :  { %v2049_v19 = vpop.f32.mrf.mxu3 }
 0x332   :  { %v2050_v21 = vadd.f32 %v2049_v19, %v4740_v44  ;;  %v1970_v43 = vpop.f32.mrf.mxu2  ;;  %v1795_v14 = vpop.f32.mrf.mxu0 }
 0x333   :  { %v1971_v15 = vadd.f32 %v1970_v43, %v1882_v28  ;;  %v1796_v10 = vadd.f32 %v1795_v14, %v4629_v18 }
 0x334   :  { %v2122_v13 = vmax.f32 %v2050_v21, 0.0  ;;  %v1884_v17 = vpop.f32.mrf.mxu1 }
 0x335   :  { %v1885_v58 = vadd.f32 %v1884_v17, %v1796_v10 }
 0x336   :  { %v4768_v23 = vpack.c.bf16 %v2122_v13, %v2120_v5 }
 0x338   :  { %2207 = vmatpush.bf16.xpose.msra.mxu1 %v2163_v37 }
 0x339   :  { %v2052_v7 = vpop.f32.mrf.mxu3 }
 0x33a   :  { %v2053_v44 = vadd.f32 %v2052_v7, %v4747_v41  ;;  %v1973_v9 = vpop.f32.mrf.mxu2  ;;  %v1797_v50 = vpop.f32.mrf.mxu0 }
 0x33b   :  { %v1974_v1 = vadd.f32 %v1973_v9, %v1885_v58  ;;  %v1798_v45 = vadd.f32 %v1797_v50, %v4629_v18 }
 0x33c   :  { %v1886_v61 = vpop.f32.mrf.mxu1  ;;  %v2124_v26 = vmax.f32 %v2053_v44, 0.0 }
 0x33d   :  { %v1887_v34 = vadd.f32 %v1886_v61, %v1798_v45 }
 0x340   :  { %2208 = vmatpush.bf16.xpose.msra.mxu1 %v2161_v32 }
 0x341   :  { %v2054_v47 = vpop.f32.mrf.mxu3 }
 0x342   :  { %v2055_v38 = vadd.f32 %v2054_v47, %v1966_v22  ;;  %v1975_v33 = vpop.f32.mrf.mxu2  ;;  %v1800_v11 = vpop.f32.mrf.mxu0 }
 0x343   :  { %v1976_v51 = vadd.f32 %v1975_v33, %v1887_v34  ;;  %v1801_v6 = vadd.f32 %v1800_v11, %v4629_v18 }
 0x344   :  { %v2126_v20 = vmax.f32 %v2055_v38, 0.0  ;;  %v1889_v12 = vpop.f32.mrf.mxu1 }
 0x345   :  { %v1890_v24 = vadd.f32 %v1889_v12, %v1801_v6 }
 0x346   :  { %v4774_v41 = vpack.c.bf16 %v2126_v20, %v2124_v26 }
 0x348   :  { %2209 = vmatpush.bf16.xpose.msra.mxu1 %v4719_v59 }
 0x349   :  { %v2057_v46 = vpop.f32.mrf.mxu3 }
 0x34a   :  { %v2058_v40 = vadd.f32 %v2057_v46, %v1969_v29  ;;  %v1978_v16 = vpop.f32.mrf.mxu2  ;;  %v1802_v39 = vpop.f32.mrf.mxu0 }
 0x34b   :  { %v1979_v2 = vadd.f32 %v1978_v16, %v1890_v24  ;;  %v1803_v22 = vadd.f32 %v1802_v39, %v4629_v18 }
 0x34c   :  { %v1891_v48 = vpop.f32.mrf.mxu1  ;;  %v2128_v30 = vmax.f32 %v2058_v40, 0.0 }
 0x34d   :  { %v1892_v8 = vadd.f32 %v1891_v48, %v1803_v22 }
 0x350   :  { %2210 = vmatpush.bf16.xpose.msra.mxu1 %v4703_v53 }
 0x351   :  { %v2059_v0 = vpop.f32.mrf.mxu3 }
 0x352   :  { %v2060_v56 = vadd.f32 %v2059_v0, %v1971_v15  ;;  %v1980_v36 = vpop.f32.mrf.mxu2  ;;  %v1805_v28 = vpop.f32.mrf.mxu0 }
 0x353   :  { %v1981_v42 = vadd.f32 %v1980_v36, %v1892_v8  ;;  %v1806_v22 = vadd.f32 %v1805_v28, %v4629_v18 }
 0x354   :  { %v2130_v4 = vmax.f32 %v2060_v56, 0.0  ;;  %v1894_v19 = vpop.f32.mrf.mxu1 }
 0x355   :  { %v1895_v36 = vadd.f32 %v1894_v19, %v1806_v22 }
 0x356   :  { %v4780_v55 = vpack.c.bf16 %v2130_v4, %v2128_v30 }
 0x358   :  { %2211 = vmatpush.bf16.xpose.msra.mxu1 %v4685_v52 }
 0x359   :  { %v2062_v59 = vpop.f32.mrf.mxu3 }
 0x35a   :  { %v2063_v29 = vadd.f32 %v2062_v59, %v1974_v1  ;;  %v1983_v27 = vpop.f32.mrf.mxu2  ;;  %v1807_v49 = vpop.f32.mrf.mxu0 }
 0x35b   :  { %v1808_v48 = vadd.f32 %v1807_v49, %v4629_v18  ;;  %v2151_v49 = vld [vmem:[%s4814_s3] sm:$0x3] }
 0x35c   :  { %v2132_v54 = vmax.f32 %v2063_v29, 0.0  ;;  %v1896_v43 = vpop.f32.mrf.mxu1  ;;  %2187 = vst [vmem:[#allocation1] ss:$9 sm:$0xff] %v2151_v49 }
 0x360   :  { %2212 = vmatpush.bf16.xpose.msra.mxu1 %v4675_v63 }
 0x361   :  { %v2064_v60 = vpop.f32.mrf.mxu3 }
 0x362   :  { %v2065_v25 = vadd.f32 %v2064_v60, %v1976_v51  ;;  %v1985_v52 = vpop.f32.mrf.mxu2  ;;  %v1810_v63 = vpop.f32.mrf.mxu0 }
 0x363   :  { %v1811_v33 = vadd.f32 %v1810_v63, %v4629_v18  ;;  %v2188_v19 = vld [vmem:[#allocation1] sm:$0xff] }
 0x364   :  { %v2134_v31 = vmax.f32 %v2065_v25, 0.0  ;;  %v1899_v37 = vpop.f32.mrf.mxu1  ;;  %v1984_v25 = vadd.f32 %v1983_v27, %v1895_v36  ;;  %2226 = vmatmul.bf16.vlgmr.msra.gmra.mxu2 %v2188_v19  ;;  %2200 = vmatmul.bf16.vlgmr.msra.gmra.mxu0 %v2188_v19 }
 0x365   :  { %v1900_v24 = vadd.f32 %v1899_v37, %v1811_v33 }
 0x366   :  { %v4784_v53 = vpack.c.bf16 %v2134_v31, %v2132_v54 }
 0x369   :  { %v2067_v62 = vpop.f32.mrf.mxu3 }
 0x36a   :  { %v2068_v21 = vadd.f32 %v2067_v62, %v1979_v2  ;;  %v1988_v10 = vpop.f32.mrf.mxu2  ;;  %v1812_v7 = vpop.f32.mrf.mxu0 }
 0x36b   :  { %v1813_v11 = vadd.f32 %v1812_v7, %v4629_v18  ;;  %v1989_v8 = vadd.f32 %v1988_v10, %v1900_v24 }
 0x36c   :  { %v2136_v14 = vmax.f32 %v2068_v21, 0.0  ;;  %v1901_v35 = vpop.f32.mrf.mxu1 }
 0x36d   :  { %v1902_v46 = vadd.f32 %v1901_v35, %v1813_v11 }
 0x371   :  { %v2069_v5 = vpop.f32.mrf.mxu3 }
 0x372   :  { %v2070_v13 = vadd.f32 %v2069_v5, %v1981_v42  ;;  %v1990_v44 = vpop.f32.mrf.mxu2  ;;  %v1815_v9 = vpop.f32.mrf.mxu0  ;;  %v1897_v42 = vadd.f32 %v1896_v43, %v1808_v48 }
 0x373   :  { %v1816_v61 = vadd.f32 %v1815_v9, %v4629_v18  ;;  %v1991_v39 = vadd.f32 %v1990_v44, %v1902_v46 }
 0x374   :  { %v2138_v15 = vmax.f32 %v2070_v13, 0.0  ;;  %v1904_v50 = vpop.f32.mrf.mxu1  ;;  %v1986_v29 = vadd.f32 %v1985_v52, %v1897_v42  ;;  %v2189_v13 = vld [vmem:[#allocation1 + $0x9] sm:$0xff] }
 0x375   :  { %v1905_v34 = vadd.f32 %v1904_v50, %v1816_v61  ;;  %2213 = vmatmul.bf16.vlgmr.msra.gmra.mxu1 %v2189_v13 }
 0x376   :  { %v2177_v17 = vpack.c.bf16 %v2138_v15, %v2136_v14 }
 0x379   :  { %v2072_v3 = vpop.f32.mrf.mxu3 }
 0x37a   :  { %v1993_v45 = vpop.f32.mrf.mxu2  ;;  %v1817_v32 = vpop.f32.mrf.mxu0  ;;  %v2073_v21 = vadd.f32 %v2072_v3, %v1984_v25 }
 0x37b   :  { %v1818_v47 = vadd.f32 %v1817_v32, %v4629_v18  ;;  %v1994_v51 = vadd.f32 %v1993_v45, %v1905_v34 }
 0x37c   :  { %v1906_v26 = vpop.f32.mrf.mxu1  ;;  %v2140_v5 = vmax.f32 %v2073_v21, 0.0 }
 0x37d   :  { %v1907_v12 = vadd.f32 %v1906_v26, %v1818_v47 }
 0x381   :  { %v2074_v58 = vpop.f32.mrf.mxu3 }
 0x382   :  { %v1995_v20 = vpop.f32.mrf.mxu2  ;;  %v2075_v31 = vadd.f32 %v2074_v58, %v1986_v29 }
 0x383   :  { %v1996_v6 = vadd.f32 %v1995_v20, %v1907_v12 }
 0x384   :  { %v2142_v28 = vmax.f32 %v2075_v31, 0.0 }
 0x386   :  { %v2179_v18 = vpack.c.bf16 %v2142_v28, %v2140_v5 }
 0x389   :  { %v2077_v57 = vpop.f32.mrf.mxu3 }
 0x38a   :  { %v2078_v59 = vadd.f32 %v2077_v57, %v1989_v8 }
 0x38c   :  { %v2144_v54 = vmax.f32 %v2078_v59, 0.0 }
 0x391   :  { %v2079_v1 = vpop.f32.mrf.mxu3 }
 0x392   :  { %v2080_v30 = vadd.f32 %v2079_v1, %v1991_v39 }
 0x394   :  { %v2146_v60 = vmax.f32 %v2080_v30, 0.0 }
 0x396   :  { %v2181_v62 = vpack.c.bf16 %v2146_v60, %v2144_v54 }
 0x399   :  { %v2082_v38 = vpop.f32.mrf.mxu3 }
 0x39a   :  { %v2083_v40 = vadd.f32 %v2082_v38, %v1994_v51 }
 0x39c   :  { %v2148_v0 = vmax.f32 %v2083_v40, 0.0 }
 0x3a1   :  { %v2084_v16 = vpop.f32.mrf.mxu3 }
 0x3a2   :  { %v2085_v2 = vadd.f32 %v2084_v16, %v1996_v6  ;;  %v2288_v6 = vlaneseq }
 0x3a4   :  { %v2150_v56 = vmax.f32 %v2085_v2, 0.0  ;;  %vm2290_vm6 = vcmp.lt.s32.totalorder %v2288_v6, 256 }
 0x3a6   :  { %v2183_v4 = vpack.c.bf16 %v2150_v56, %v2148_v0 }
 0x3a8   :  { %2231 = vmatpush.bf16.xpose.msra.mxu3 %v2183_v4 }
 0x3b0   :  { %2232 = vmatpush.bf16.xpose.msra.mxu3 %v2181_v62 }
 0x3b8   :  { %2233 = vmatpush.bf16.xpose.msra.mxu3 %v2179_v18 }
 0x3c0   :  { %2234 = vmatpush.bf16.xpose.msra.mxu3 %v2177_v17  ;;  %v2185_v17 = vstv %s4815_s4  ;;  %s2745_s4 = smov [#allocation8]  }
 0x3c1   :  { %s2298_s11 = sshll.u32 %s2745_s4, 4  ;;  %s2299_s11 = int_to_ptr.vmem [resolvable:$true] %s2298_s11 }
 0x3c8   :  { %2235 = vmatpush.bf16.xpose.msra.mxu3 %v4784_v53 }
 0x3d0   :  { %2236 = vmatpush.bf16.xpose.msra.mxu3 %v4780_v55 }
 0x3d8   :  { %2237 = vmatpush.bf16.xpose.msra.mxu3 %v4774_v41 }
 0x3e0   :  { %2238 = vmatpush.bf16.xpose.msra.mxu3 %v4768_v23 }
 0x3e1   :  { %v2201_v27 = vpop.f32.mrf.mxu0 }
 0x3e2   :  { %v2202_v3 = vadd.f32 %v2201_v27, %v2185_v17 }
 0x3e7   :  { %2239 = vmatmul.bf16.vlgmr.msra.gmra.mxu3 %v2189_v13  ;;  %v2227_v52 = vpop.f32.mrf.mxu2 }
 0x3e8   :  { %v2228_v10 = vadd.f32 %v2227_v52, %v2185_v17 }
 0x3e9   :  { %v2203_v14 = vpop.f32.mrf.mxu0 }
 0x3ef   :  { %v2229_v63 = vpop.f32.mrf.mxu2 }
 0x3f2   :  { %v2214_v43 = vpop.f32.mrf.mxu1 }
 0x3f3   :  { %v2215_v37 = vadd.f32 %v2214_v43, %v2202_v3 }
 0x3f5   :  { %v2567_v53 = vmul.f32 -1.442695, %v2215_v37 }
 0x3f7   :  { %2651 = vpow2.f32 %v2567_v53 }
 0x3fa   :  { %v2216_v15 = vpop.f32.mrf.mxu1 }
 0x3fd   :  { %v2652_v55 = vpop.eup %2651 }
 0x3fe   :  { %v2250_v41 = vadd.f32 1.0, %v2652_v55 }
 0x400   :  { %2653 = vrcp.f32 %v2250_v41  ;;  %vm2257_vm13 = vweird.f32 %v2250_v41  ;;  %v2263_v38 = vand.u32 2147483648, %v2250_v41  ;;  %v2261_v33 = vand.u32 2147483647, %v2250_v41 }
 0x402   :  { %v2264_v24 = vor.u32 1.1754944e-38, %v2263_v38  ;;  %vm2262_vm3 = vcmp.eq.f32.partialorder %v2261_v33, 8.507059e+37 }
 0x406   :  { %v2654_v44 = vpop.eup %2653 }
 0x407   :  { %v2253_v50 = vmul.f32 %v2654_v44, %v2250_v41  ;;  %vm2258_vm14 = vweird.f32 %v2654_v44 }
 0x408   :  { %vm4802_vm0 = vmor %vm2257_vm13, %vm2258_vm14 }
 0x409   :  { %v2254_v1 = vsub.f32 1.0, %v2253_v50 }
 0x40b   :  { %v2255_v61 = vmul.f32 %v2654_v44, %v2254_v1 }
 0x40d   :  { %v2256_v47 = vadd.f32 %v2654_v44, %v2255_v61 }
 0x40f   :  { %v2260_v40 = vsel %vm4802_vm0, %v2654_v44, %v2256_v47 }
 0x410   :  { %v2265_v22 = vsel %vm2262_vm3, %v2264_v24, %v2260_v40 }
 0x46a   :  { %v2240_v58 = vpop.f32.mrf.mxu3 }
 0x46b   :  { %v2241_v23 = vadd.f32 %v2240_v58, %v2228_v10 }
 0x46d   :  { %v2568_v7 = vmul.f32 -1.442695, %v2241_v23 }
 0x46f   :  { %2655 = vpow2.f32 %v2568_v7 }
 0x472   :  { %v2242_v35 = vpop.f32.mrf.mxu3 }
 0x475   :  { %v2656_v57 = vpop.eup %2655 }
 0x476   :  { %v2251_v9 = vadd.f32 1.0, %v2656_v57 }
 0x478   :  { %2657 = vrcp.f32 %v2251_v9  ;;  %v2278_v26 = vand.u32 2147483648, %v2251_v9  ;;  %v2276_v11 = vand.u32 2147483647, %v2251_v9  ;;  %vm2272_vm1 = vweird.f32 %v2251_v9 }
 0x47a   :  { %v2279_v46 = vor.u32 1.1754944e-38, %v2278_v26  ;;  %vm2277_vm4 = vcmp.eq.f32.partialorder %v2276_v11, 8.507059e+37 }
 0x47e   :  { %v2658_v45 = vpop.eup %2657 }
 0x47f   :  { %v2268_v32 = vmul.f32 %v2658_v45, %v2251_v9  ;;  %vm2273_vm15 = vweird.f32 %v2658_v45 }
 0x480   :  { %vm2274_vm2 = vmor %vm2272_vm1, %vm2273_vm15 }
 0x481   :  { %v2269_v34 = vsub.f32 1.0, %v2268_v32 }
 0x483   :  { %v2270_v20 = vmul.f32 %v2658_v45, %v2269_v34 }
 0x485   :  { %v2271_v12 = vadd.f32 %v2658_v45, %v2270_v20 }
 0x487   :  { %v2275_v16 = vsel %vm2274_vm2, %v2658_v45, %v2271_v12 }
 0x488   :  { %v2280_v39 = vsel %vm2277_vm4, %v2279_v46, %v2275_v16 }
 0x489   :  { %v2284_v2 = vrot.slane %v2280_v39, 7 }
 0x48b   :  { %v2286_v48 = vsel %vm2285_vm5, %v2265_v22, %v2284_v2 }
 0x48c   :  { %2292 = vst.msk [vmem:[#allocation8] sm:$0x3] %vm2290_vm6, %v2286_v48 }
 0x48d   :  { %2303 = dma.vmem_to_hbm [thread:$0]  %s2299_s11, 32, %s2301_s14, [#allocation5]  }
 0x48e   :  { %2736 = dma.done.wait [#allocation5], 32  }
 0x48f   :  { %2737 = vsyncadd [#allocation5], 4294967264 }
 0x490   :  { %2308 = vsyncpa [#allocation4], 1 }
 0x491   :  { %2309 = vsyncpa [#allocation7], 1 }
 0x492   :  { %2310 = vsyncpa [#allocation5], 1 }

</bundles_post_ra>
